<compile_context>
chip_gen: v7x
topology: tpu7x:2x2x1
jax: 0.10.0
libtpu: 0.0.40
codegen_flags: <defaults>
</compile_context>

<pallas_src>
import functools
import math

import jax
import jax.numpy as jnp
from jax import lax
from jax.experimental import pallas as pl
from jax.experimental.pallas import tpu as pltpu

SEQUENCE_LENGTH = 45  # hard-coded in the PyTorch module
_SUBLANE = 8
_LANE = 128


# ----------------------------------------------------------------------------
# Fused wavefront kernel: 2-layer LSTM + Linear(hidden*seq_len, classes)
# ----------------------------------------------------------------------------
def _wavefront_lstm_fc_kernel(x_ref, wih0_ref, b0_ref, wih1_ref, b1_ref,
                              whh_ref, fcw_ref, fcb_ref, out_ref, gx_ref, *,
                              seq_len, batch_tile, hidden, unroll):
    """Packed gate layout (width 8H): [ i0 i1 | f0 f1 | g0 g1 | o0 o1 ],
    each gate block is 2H wide (layer-0 half then layer-1 half).

    Refs:
      x_ref    (T*Bt, D)      batch-tile of the input sequence (time-major)
      wih0_ref (D, 8H)        layer-0 input proj, packed columns
      b0_ref   (1, 8H)
      wih1_ref (H, 8H)        layer-1 input proj, packed columns
      b1_ref   (1, 8H)
      whh_ref  (2H, 8H)       block-diagonal [W_hh0; W_hh1], packed columns
      fcw_ref  (T, H, Cp)     FC weight, time-major, lane-padded
      fcb_ref  (1, Cp)
      out_ref  (Bt, Cp)
      gx_ref   (T*Bt, 8H)     scratch: hoisted layer-0 input projection
    """
    T, Bt, H = seq_len, batch_tile, hidden
    Cp = fcw_ref.shape[-1]

    # ---- hoisted layer-0 input projection: one MXU pass for the whole seq ----
    gx_ref[...] = jnp.dot(x_ref[...], wih0_ref[...],
                          preferred_element_type=jnp.float32) + b0_ref[...]

    whh = whh_ref[...]      # (2H, 8H) stays resident in vregs
    wih1 = wih1_ref[...]    # (H, 8H)
    b1 = b1_ref[...]        # (1, 8H)

    lane = lax.broadcasted_iota(jnp.int32, (Bt, 2 * H), 1)
    l0_mask = (lane < H).astype(jnp.float32)   # keep layer-0 half, zero layer-1

    def fused_cell(gates, c_cat):
        # gates: (Bt, 8H) packed pre-activations for BOTH layers.
        sig = jax.nn.sigmoid(gates)                      # full-width EUP pass
        i_cat = sig[:, 0 * 2 * H:1 * 2 * H]
        f_cat = sig[:, 1 * 2 * H:2 * 2 * H]
        g_cat = jnp.tanh(gates[:, 2 * 2 * H:3 * 2 * H])  # (Bt, 2H) EUP
        o_cat = sig[:, 3 * 2 * H:4 * 2 * H]
        c_new = f_cat * c_cat + i_cat * g_cat
        h_new = o_cat * jnp.tanh(c_new)                  # ONE tanh(c) for both layers
        return h_new, c_new

    # ---- prologue: layer-0 step t = 0 (layer-1 half masked back to zero) ----
    zeros_cat = jnp.zeros((Bt, 2 * H), jnp.float32)
    h_cat, c_cat = fused_cell(gx_ref[pl.ds(0, Bt), :], zeros_cat)
    h_cat = h_cat * l0_mask
    c_cat = c_cat * l0_mask
    # layer-1 input projection for time 0 (consumed on the first wavefront step)
    gx1 = jnp.dot(h_cat[:, :H], wih1, preferred_element_type=jnp.float32) + b1
    acc = jnp.zeros((Bt, Cp), jnp.float32)

    # ---- wavefront main loop: layer-0 time s, layer-1 time s-1 --------------
    def step(s, carry):
        h_cat, c_cat, gx1, acc = carry
        row = pl.multiple_of(s * Bt, Bt)
        gates = gx_ref[pl.ds(row, Bt), :] + gx1 + jnp.dot(
            h_cat, whh, preferred_element_type=jnp.float32)
        h_new, c_new = fused_cell(gates, c_cat)
        # layer-1 input projection for time s (used next iteration; off the
        # h0 critical path so it overlaps under the recurrence for free).
        gx1_next = jnp.dot(h_new[:, :H], wih1,
                           preferred_element_type=jnp.float32) + b1
        # fused FC: accumulate layer-1 hidden state at time s-1.
        acc = acc + jnp.dot(h_new[:, H:], fcw_ref[s - 1],
                            preferred_element_type=jnp.float32)
        return h_new, c_new, gx1_next, acc

    def outer(i, carry):
        for j in range(unroll):        # manual unroll for LLO scheduler window
            carry = step(1 + i * unroll + j, carry)
        return carry

    h_cat, c_cat, gx1, acc = lax.fori_loop(
        0, (T - 1) // unroll, outer, (h_cat, c_cat, gx1, acc))

    # ---- epilogue: layer-1 step t = T-1 (layer-0 half is garbage, unused) ---
    gates = gx1 + jnp.dot(h_cat, whh, preferred_element_type=jnp.float32)
    h_new, _ = fused_cell(gates, c_cat)
    acc = acc + jnp.dot(h_new[:, H:], fcw_ref[T - 1],
                        preferred_element_type=jnp.float32)

    out_ref[...] = acc + fcb_ref[...]


# ----------------------------------------------------------------------------
# Parameter construction (PyTorch layout) + one-time kernel-layout preparation
# ----------------------------------------------------------------------------
def init_params(key, input_size, hidden_size, num_layers, num_classes):
    params = {"lstm": [], "fc": {}}
    stdv = 1.0 / math.sqrt(hidden_size)
    for layer in range(num_layers):
        d_in = input_size if layer == 0 else hidden_size
        key, k1, k2, k3, k4 = jax.random.split(key, 5)
        w_ih = jax.random.uniform(k1, (4 * hidden_size, d_in), jnp.float32, -stdv, stdv)
        w_hh = jax.random.uniform(k2, (4 * hidden_size, hidden_size), jnp.float32, -stdv, stdv)
        b_ih = jax.random.uniform(k3, (4 * hidden_size,), jnp.float32, -stdv, stdv)
        b_hh = jax.random.uniform(k4, (4 * hidden_size,), jnp.float32, -stdv, stdv)
        params["lstm"].append({"w_ih": w_ih, "w_hh": w_hh, "b_ih": b_ih, "b_hh": b_hh})
    fc_in = hidden_size * SEQUENCE_LENGTH
    fc_std = 1.0 / math.sqrt(fc_in)
    key, k1, k2 = jax.random.split(key, 3)
    params["fc"]["w"] = jax.random.uniform(k1, (num_classes, fc_in), jnp.float32, -fc_std, fc_std)
    params["fc"]["b"] = jax.random.uniform(k2, (num_classes,), jnp.float32, -fc_std, fc_std)
    return params


def prepare_kernel_params(params):
    """Pack weights once into the gate-major / layer-interleaved kernel layout."""
    lstm = params["lstm"]
    assert len(lstm) == 2, "wavefront kernel is specialized for num_layers=2"
    H = lstm[0]["w_hh"].shape[1]

    def pack_cols(mat, layer):
        # mat: (rows, 4H), columns in PyTorch gate order [i|f|g|o] for ONE layer
        # -> (rows, 8H) packed: [ i0 i1 | f0 f1 | g0 g1 | o0 o1 ].
        rows = mat.shape[0]
        out = jnp.zeros((rows, 8 * H), mat.dtype)
        for gate in range(4):
            out = out.at[:, gate * 2 * H + layer * H:
                            gate * 2 * H + (layer + 1) * H].set(
                mat[:, gate * H:(gate + 1) * H])
        return out

    kp = {}
    kp["wih0"] = pack_cols(jnp.transpose(lstm[0]["w_ih"]), 0)                 # (D, 8H)
    kp["b0"] = pack_cols((lstm[0]["b_ih"] + lstm[0]["b_hh"])[None, :], 0)     # (1, 8H)
    kp["wih1"] = pack_cols(jnp.transpose(lstm[1]["w_ih"]), 1)                 # (H, 8H)
    kp["b1"] = pack_cols((lstm[1]["b_ih"] + lstm[1]["b_hh"])[None, :], 1)     # (1, 8H)
    kp["whh"] = jnp.concatenate(
        [pack_cols(jnp.transpose(lstm[0]["w_hh"]), 0),
         pack_cols(jnp.transpose(lstm[1]["w_hh"]), 1)], axis=0)               # (2H, 8H)

    C, TH = params["fc"]["w"].shape
    T = TH // H
    Cp = max(_LANE, ((C + _LANE - 1) // _LANE) * _LANE)
    # FC weight indexed as W[c, t*H + h] -> (T, H, Cp) time-major, lane-padded.
    fcw = params["fc"]["w"].reshape(C, T, H).transpose(1, 2, 0)               # (T, H, C)
    kp["fc_w"] = jnp.pad(fcw, ((0, 0), (0, 0), (0, Cp - C)))                  # (T, H, Cp)
    kp["fc_b"] = jnp.pad(params["fc"]["b"], (0, Cp - C))[None, :]             # (1, Cp)
    return kp


# ----------------------------------------------------------------------------
# Forward pass
# ----------------------------------------------------------------------------
@functools.partial(jax.jit, static_argnames=("num_classes",))
def rnn_lstm_forward(x, kparams, *, num_classes):
    """x: (B, T, input_size) float32, T == SEQUENCE_LENGTH."""
    B, T, D = x.shape
    assert T >= 2
    H = kparams["wih1"].shape[0]
    Cp = kparams["fc_w"].shape[-1]
    assert kparams["fc_w"].shape[0] == T

    Bt = _SUBLANE                       # rows per batch tile (one sublane group)
    G = pl.cdiv(B, Bt)                  # number of batch tiles (grid size)
    Bp = G * Bt

    # batch-tile-major, time-major within a tile: row = g*(T*Bt) + t*Bt + b
    xp = jnp.pad(x, ((0, Bp - B), (0, 0), (0, 0)))            # (Bp, T, D)
    xp = xp.reshape(G, Bt, T, D).transpose(0, 2, 1, 3)        # (G, T, Bt, D)
    x2d = xp.reshape(G * T * Bt, D)
    # TODO(synk): fold this host-side transpose/pad into the kernel's layer-0
    # projection via an index_map if B*T*D ever gets large.

    # wavefront main loop has T-1 steps; pick the deepest clean unroll (11 for T=45)
    unroll = next(u for u in (11, 9, 8, 7, 6, 5, 4, 3, 2, 1) if (T - 1) % u == 0)

    kernel = functools.partial(
        _wavefront_lstm_fc_kernel,
        seq_len=T, batch_tile=Bt, hidden=H, unroll=unroll)

    weights = [kparams["wih0"], kparams["b0"], kparams["wih1"], kparams["b1"],
               kparams["whh"], kparams["fc_w"], kparams["fc_b"]]

    def const_spec(a):
        nd = a.ndim
        return pl.BlockSpec(a.shape, lambda g, _nd=nd: (0,) * _nd)

    out = pl.pallas_call(
        kernel,
        out_shape=jax.ShapeDtypeStruct((Bp, Cp), jnp.float32),
        grid=(G,),
        in_specs=[pl.BlockSpec((T * Bt, D), lambda g: (g, 0))]
                 + [const_spec(w) for w in weights],
        out_specs=pl.BlockSpec((Bt, Cp), lambda g: (g, 0)),
        scratch_shapes=[
            pltpu.VMEM((T * Bt, 8 * H), jnp.float32),   # hoisted layer-0 proj
        ],
        compiler_params=pltpu.CompilerParams(
            dimension_semantics=("parallel",)),          # batch tiles shard across cores
    )(x2d, *weights)

    return out[:B, :num_classes]


# ----------------------------------------------------------------------------
# Pure-JAX reference (sanity check only)
# ----------------------------------------------------------------------------
def rnn_lstm_reference(x, params):
    B, T, _ = x.shape
    seq = x
    for lp in params["lstm"]:
        H = lp["w_hh"].shape[1]
        h = jnp.zeros((B, H), jnp.float32)
        c = jnp.zeros((B, H), jnp.float32)
        outs = []
        for t in range(T):
            gates = seq[:, t, :] @ lp["w_ih"].T + h @ lp["w_hh"].T + lp["b_ih"] + lp["b_hh"]
            i_g = jax.nn.sigmoid(gates[:, 0 * H:1 * H])
            f_g = jax.nn.sigmoid(gates[:, 1 * H:2 * H])
            g_g = jnp.tanh(gates[:, 2 * H:3 * H])
            o_g = jax.nn.sigmoid(gates[:, 3 * H:4 * H])
            c = f_g * c + i_g * g_g
            h = o_g * jnp.tanh(c)
            outs.append(h)
        seq = jnp.stack(outs, axis=1)
    out = seq.reshape(B, -1)
    return out @ params["fc"]["w"].T + params["fc"]["b"]


# ----------------------------------------------------------------------------
if __name__ == "__main__":
    input_size = 8
    hidden_size = 32
    num_layers = 2
    num_classes = 4
    batch = 2

    key = jax.random.PRNGKey(0)
    key, pkey, xkey = jax.random.split(key, 3)
    params = init_params(pkey, input_size, hidden_size, num_layers, num_classes)
    kparams = prepare_kernel_params(params)
    x = jax.random.normal(xkey, (batch, SEQUENCE_LENGTH, input_size), jnp.float32)

    out = rnn_lstm_forward(x, kparams, num_classes=num_classes)
    out = jax.block_until_ready(out)

    ref = rnn_lstm_reference(x, params)
    assert out.shape == (batch, num_classes)
    assert bool(jnp.all(jnp.isfinite(out)))
    err = float(jnp.max(jnp.abs(out - ref)))
    assert err < 1e-3, f"mismatch vs reference: {err}"

    print("KERNEL_OK")
</pallas_src>

<mosaic_0001>
module attributes {stable_mosaic.version = 11 : i64} {
  func.func @_wavefront_lstm_fc_kernel(%arg0: i32, %arg1: memref<360x8xf32, #tpu.memory_space<vmem>>, %arg2: memref<8x256xf32, #tpu.memory_space<vmem>>, %arg3: memref<1x256xf32, #tpu.memory_space<vmem>>, %arg4: memref<32x256xf32, #tpu.memory_space<vmem>>, %arg5: memref<1x256xf32, #tpu.memory_space<vmem>>, %arg6: memref<64x256xf32, #tpu.memory_space<vmem>>, %arg7: memref<45x32x128xf32, #tpu.memory_space<vmem>>, %arg8: memref<1x128xf32, #tpu.memory_space<vmem>>, %arg9: memref<8x128xf32, #tpu.memory_space<vmem>>, %arg10: memref<360x256xf32, #tpu.memory_space<vmem>>) attributes {dimension_semantics = [#tpu.dimension_semantics<parallel>], iteration_bounds = array<i64: 1>, scalar_prefetch = 0 : i64, scratch_operands = 1 : i64, tpu.core_type = #tpu.core_type<tc>, window_params = [{transform_indices = @transform_0, window_bounds = array<i64: 360, 8>}, {pipeline_mode = #tpu.pipeline_mode<synchronous>, transform_indices = @transform_1, window_bounds = array<i64: 8, 256>}, {pipeline_mode = #tpu.pipeline_mode<synchronous>, transform_indices = @transform_2, window_bounds = array<i64: 1, 256>}, {pipeline_mode = #tpu.pipeline_mode<synchronous>, transform_indices = @transform_3, window_bounds = array<i64: 32, 256>}, {pipeline_mode = #tpu.pipeline_mode<synchronous>, transform_indices = @transform_4, window_bounds = array<i64: 1, 256>}, {pipeline_mode = #tpu.pipeline_mode<synchronous>, transform_indices = @transform_5, window_bounds = array<i64: 64, 256>}, {pipeline_mode = #tpu.pipeline_mode<synchronous>, transform_indices = @transform_6, window_bounds = array<i64: 45, 32, 128>}, {pipeline_mode = #tpu.pipeline_mode<synchronous>, transform_indices = @transform_7, window_bounds = array<i64: 1, 128>}, {transform_indices = @transform_8, window_bounds = array<i64: 8, 128>}]} {
    %c0 = arith.constant 0 : index
    %c0_0 = arith.constant 0 : index
    %0 = vector.load %arg1[%c0, %c0_0] : memref<360x8xf32, #tpu.memory_space<vmem>>, vector<360x8xf32>
    %c0_1 = arith.constant 0 : index
    %c0_2 = arith.constant 0 : index
    %1 = vector.load %arg2[%c0_1, %c0_2] : memref<8x256xf32, #tpu.memory_space<vmem>>, vector<8x256xf32>
    %cst = arith.constant dense<0.000000e+00> : vector<360x256xf32>
    %2 = tpu.matmul %0, %1, %cst {dimension_numbers = #tpu.dot_dimension_numbers<[1], [0], [0], [1], [0, 0, 1, 1], [], []>} : vector<360x8xf32>, vector<8x256xf32>, vector<360x256xf32> -> vector<360x256xf32>
    %c0_3 = arith.constant 0 : index
    %c0_4 = arith.constant 0 : index
    %3 = vector.load %arg3[%c0_3, %c0_4] : memref<1x256xf32, #tpu.memory_space<vmem>>, vector<1x256xf32>
    %4 = vector.broadcast %3 : vector<1x256xf32> to vector<360x256xf32>
    %5 = arith.addf %2, %4 : vector<360x256xf32>
    %c0_5 = arith.constant 0 : index
    %c0_6 = arith.constant 0 : index
    %6 = vector.load %arg10[%c0_5, %c0_6] : memref<360x256xf32, #tpu.memory_space<vmem>>, vector<360x256xf32>
    tpu.vector_store %arg10[%c0_5, %c0_6], %5 {strides = array<i32>} : memref<360x256xf32, #tpu.memory_space<vmem>>, vector<360x256xf32>,
    %c0_7 = arith.constant 0 : index
    %c0_8 = arith.constant 0 : index
    %7 = vector.load %arg6[%c0_7, %c0_8] : memref<64x256xf32, #tpu.memory_space<vmem>>, vector<64x256xf32>
    %c0_9 = arith.constant 0 : index
    %c0_10 = arith.constant 0 : index
    %8 = vector.load %arg4[%c0_9, %c0_10] : memref<32x256xf32, #tpu.memory_space<vmem>>, vector<32x256xf32>
    %c0_11 = arith.constant 0 : index
    %c0_12 = arith.constant 0 : index
    %9 = vector.load %arg5[%c0_11, %c0_12] : memref<1x256xf32, #tpu.memory_space<vmem>>, vector<1x256xf32>
    %10 = tpu.iota {dimensions = array<i32: 1>} : vector<8x64xi32>
    %c32_i32 = arith.constant 32 : i32
    %11 = vector.broadcast %c32_i32 : i32 to vector<8x64xi32>
    %12 = arith.cmpi slt, %10, %11 : vector<8x64xi32>
    %13 = arith.extui %12 : vector<8x64xi1> to vector<8x64xi32>
    %14 = arith.sitofp %13 : vector<8x64xi32> to vector<8x64xf32>
    %cst_13 = arith.constant 0.000000e+00 : f32
    %15 = vector.broadcast %cst_13 : f32 to vector<8x64xf32>
    %c0_14 = arith.constant 0 : index
    %c0_15 = arith.constant 0 : index
    %16 = vector.load %arg10[%c0_14, %c0_15] : memref<360x256xf32, #tpu.memory_space<vmem>>, vector<8x256xf32>
    %17 = arith.negf %16 : vector<8x256xf32>
    %18 = math.exp %17 : vector<8x256xf32>
    %cst_16 = arith.constant 1.000000e+00 : f32
    %19 = vector.broadcast %cst_16 : f32 to vector<8x256xf32>
    %20 = arith.addf %19, %18 : vector<8x256xf32>
    %21 = arith.divf %19, %20 : vector<8x256xf32>
    %22 = vector.extract_strided_slice %21 {offsets = [0, 0], sizes = [8, 64], strides = [1, 1]} : vector<8x256xf32> to vector<8x64xf32>
    %23 = vector.extract_strided_slice %21 {offsets = [0, 64], sizes = [8, 64], strides = [1, 1]} : vector<8x256xf32> to vector<8x64xf32>
    %24 = vector.extract_strided_slice %16 {offsets = [0, 128], sizes = [8, 64], strides = [1, 1]} : vector<8x256xf32> to vector<8x64xf32>
    %25 = math.tanh %24 : vector<8x64xf32>
    %26 = vector.extract_strided_slice %21 {offsets = [0, 192], sizes = [8, 64], strides = [1, 1]} : vector<8x256xf32> to vector<8x64xf32>
    %27 = arith.mulf %23, %15 : vector<8x64xf32>
    %28 = arith.mulf %22, %25 : vector<8x64xf32>
    %29 = arith.addf %27, %28 : vector<8x64xf32>
    %30 = math.tanh %29 : vector<8x64xf32>
    %31 = arith.mulf %26, %30 : vector<8x64xf32>
    %32 = arith.mulf %31, %14 : vector<8x64xf32>
    %33 = arith.mulf %29, %14 : vector<8x64xf32>
    %34 = vector.extract_strided_slice %32 {offsets = [0, 0], sizes = [8, 32], strides = [1, 1]} : vector<8x64xf32> to vector<8x32xf32>
    %cst_17 = arith.constant dense<0.000000e+00> : vector<8x256xf32>
    %35 = tpu.matmul %34, %8, %cst_17 {dimension_numbers = #tpu.dot_dimension_numbers<[1], [0], [0], [1], [0, 0, 1, 1], [], []>} : vector<8x32xf32>, vector<32x256xf32>, vector<8x256xf32> -> vector<8x256xf32>
    %36 = vector.broadcast %9 : vector<1x256xf32> to vector<8x256xf32>
    %37 = arith.addf %35, %36 : vector<8x256xf32>
    %cst_18 = arith.constant 0.000000e+00 : f32
    %38 = vector.broadcast %cst_18 : f32 to vector<8x128xf32>
    %c0_i32 = arith.constant 0 : i32
    %c4_i32 = arith.constant 4 : i32
    %39 = arith.addi %c0_i32, %c4_i32 : i32
    %c1_i32 = arith.constant 1 : i32
    %40:4 = scf.for %arg11 = %c0_i32 to %39 step %c1_i32 iter_args(%arg12 = %32, %arg13 = %33, %arg14 = %37, %arg15 = %38) -> (vector<8x64xf32>, vector<8x64xf32>, vector<8x256xf32>, vector<8x128xf32>)  : i32 {
      %c11_i32 = arith.constant 11 : i32
      %67 = arith.muli %arg11, %c11_i32 : i32
      %c1_i32_29 = arith.constant 1 : i32
      %68 = arith.addi %c1_i32_29, %67 : i32
      %c0_i32_30 = arith.constant 0 : i32
      %69 = arith.addi %68, %c0_i32_30 : i32
      %c8_i32 = arith.constant 8 : i32
      %70 = arith.muli %69, %c8_i32 : i32
      %71 = tpu.assume_multiple %70, 8 : i32
      %72 = arith.index_cast %71 : i32 to index
      %c0_31 = arith.constant 0 : index
      %73 = vector.load %arg10[%72, %c0_31] : memref<360x256xf32, #tpu.memory_space<vmem>>, vector<8x256xf32>
      %74 = arith.addf %73, %arg14 : vector<8x256xf32>
      %cst_32 = arith.constant dense<0.000000e+00> : vector<8x256xf32>
      %75 = tpu.matmul %arg12, %7, %cst_32 {dimension_numbers = #tpu.dot_dimension_numbers<[1], [0], [0], [1], [0, 0, 1, 1], [], []>} : vector<8x64xf32>, vector<64x256xf32>, vector<8x256xf32> -> vector<8x256xf32>
      %76 = arith.addf %74, %75 : vector<8x256xf32>
      %77 = arith.negf %76 : vector<8x256xf32>
      %78 = math.exp %77 : vector<8x256xf32>
      %cst_33 = arith.constant 1.000000e+00 : f32
      %79 = vector.broadcast %cst_33 : f32 to vector<8x256xf32>
      %80 = arith.addf %79, %78 : vector<8x256xf32>
      %81 = arith.divf %79, %80 : vector<8x256xf32>
      %82 = vector.extract_strided_slice %81 {offsets = [0, 0], sizes = [8, 64], strides = [1, 1]} : vector<8x256xf32> to vector<8x64xf32>
      %83 = vector.extract_strided_slice %81 {offsets = [0, 64], sizes = [8, 64], strides = [1, 1]} : vector<8x256xf32> to vector<8x64xf32>
      %84 = vector.extract_strided_slice %76 {offsets = [0, 128], sizes = [8, 64], strides = [1, 1]} : vector<8x256xf32> to vector<8x64xf32>
      %85 = math.tanh %84 : vector<8x64xf32>
      %86 = vector.extract_strided_slice %81 {offsets = [0, 192], sizes = [8, 64], strides = [1, 1]} : vector<8x256xf32> to vector<8x64xf32>
      %87 = arith.mulf %83, %arg13 : vector<8x64xf32>
      %88 = arith.mulf %82, %85 : vector<8x64xf32>
      %89 = arith.addf %87, %88 : vector<8x64xf32>
      %90 = math.tanh %89 : vector<8x64xf32>
      %91 = arith.mulf %86, %90 : vector<8x64xf32>
      %92 = vector.extract_strided_slice %91 {offsets = [0, 0], sizes = [8, 32], strides = [1, 1]} : vector<8x64xf32> to vector<8x32xf32>
      %cst_34 = arith.constant dense<0.000000e+00> : vector<8x256xf32>
      %93 = tpu.matmul %92, %8, %cst_34 {dimension_numbers = #tpu.dot_dimension_numbers<[1], [0], [0], [1], [0, 0, 1, 1], [], []>} : vector<8x32xf32>, vector<32x256xf32>, vector<8x256xf32> -> vector<8x256xf32>
      %94 = vector.broadcast %9 : vector<1x256xf32> to vector<8x256xf32>
      %95 = arith.addf %93, %94 : vector<8x256xf32>
      %96 = vector.extract_strided_slice %91 {offsets = [0, 32], sizes = [8, 32], strides = [1, 1]} : vector<8x64xf32> to vector<8x32xf32>
      %c1_i32_35 = arith.constant 1 : i32
      %97 = arith.subi %69, %c1_i32_35 : i32
      %98 = arith.index_cast %97 : i32 to index
      %c0_36 = arith.constant 0 : index
      %c0_37 = arith.constant 0 : index
      %99 = vector.load %arg7[%98, %c0_36, %c0_37] : memref<45x32x128xf32, #tpu.memory_space<vmem>>, vector<1x32x128xf32>
      %100 = vector.shape_cast %99 : vector<1x32x128xf32> to vector<32x128xf32>
      %cst_38 = arith.constant dense<0.000000e+00> : vector<8x128xf32>
      %101 = tpu.matmul %96, %100, %cst_38 {dimension_numbers = #tpu.dot_dimension_numbers<[1], [0], [0], [1], [0, 0, 1, 1], [], []>} : vector<8x32xf32>, vector<32x128xf32>, vector<8x128xf32> -> vector<8x128xf32>
      %102 = arith.addf %arg15, %101 : vector<8x128xf32>
      %c11_i32_39 = arith.constant 11 : i32
      %103 = arith.muli %arg11, %c11_i32_39 : i32
      %c1_i32_40 = arith.constant 1 : i32
      %104 = arith.addi %c1_i32_40, %103 : i32
      %c1_i32_41 = arith.constant 1 : i32
      %105 = arith.addi %104, %c1_i32_41 : i32
      %c8_i32_42 = arith.constant 8 : i32
      %106 = arith.muli %105, %c8_i32_42 : i32
      %107 = tpu.assume_multiple %106, 8 : i32
      %108 = arith.index_cast %107 : i32 to index
      %c0_43 = arith.constant 0 : index
      %109 = vector.load %arg10[%108, %c0_43] : memref<360x256xf32, #tpu.memory_space<vmem>>, vector<8x256xf32>
      %110 = arith.addf %109, %95 : vector<8x256xf32>
      %cst_44 = arith.constant dense<0.000000e+00> : vector<8x256xf32>
      %111 = tpu.matmul %91, %7, %cst_44 {dimension_numbers = #tpu.dot_dimension_numbers<[1], [0], [0], [1], [0, 0, 1, 1], [], []>} : vector<8x64xf32>, vector<64x256xf32>, vector<8x256xf32> -> vector<8x256xf32>
      %112 = arith.addf %110, %111 : vector<8x256xf32>
      %113 = arith.negf %112 : vector<8x256xf32>
      %114 = math.exp %113 : vector<8x256xf32>
      %cst_45 = arith.constant 1.000000e+00 : f32
      %115 = vector.broadcast %cst_45 : f32 to vector<8x256xf32>
      %116 = arith.addf %115, %114 : vector<8x256xf32>
      %117 = arith.divf %115, %116 : vector<8x256xf32>
      %118 = vector.extract_strided_slice %117 {offsets = [0, 0], sizes = [8, 64], strides = [1, 1]} : vector<8x256xf32> to vector<8x64xf32>
      %119 = vector.extract_strided_slice %117 {offsets = [0, 64], sizes = [8, 64], strides = [1, 1]} : vector<8x256xf32> to vector<8x64xf32>
      %120 = vector.extract_strided_slice %112 {offsets = [0, 128], sizes = [8, 64], strides = [1, 1]} : vector<8x256xf32> to vector<8x64xf32>
      %121 = math.tanh %120 : vector<8x64xf32>
      %122 = vector.extract_strided_slice %117 {offsets = [0, 192], sizes = [8, 64], strides = [1, 1]} : vector<8x256xf32> to vector<8x64xf32>
      %123 = arith.mulf %119, %89 : vector<8x64xf32>
      %124 = arith.mulf %118, %121 : vector<8x64xf32>
      %125 = arith.addf %123, %124 : vector<8x64xf32>
      %126 = math.tanh %125 : vector<8x64xf32>
      %127 = arith.mulf %122, %126 : vector<8x64xf32>
      %128 = vector.extract_strided_slice %127 {offsets = [0, 0], sizes = [8, 32], strides = [1, 1]} : vector<8x64xf32> to vector<8x32xf32>
      %cst_46 = arith.constant dense<0.000000e+00> : vector<8x256xf32>
      %129 = tpu.matmul %128, %8, %cst_46 {dimension_numbers = #tpu.dot_dimension_numbers<[1], [0], [0], [1], [0, 0, 1, 1], [], []>} : vector<8x32xf32>, vector<32x256xf32>, vector<8x256xf32> -> vector<8x256xf32>
      %130 = vector.broadcast %9 : vector<1x256xf32> to vector<8x256xf32>
      %131 = arith.addf %129, %130 : vector<8x256xf32>
      %132 = vector.extract_strided_slice %127 {offsets = [0, 32], sizes = [8, 32], strides = [1, 1]} : vector<8x64xf32> to vector<8x32xf32>
      %c1_i32_47 = arith.constant 1 : i32
      %133 = arith.subi %105, %c1_i32_47 : i32
      %134 = arith.index_cast %133 : i32 to index
      %c0_48 = arith.constant 0 : index
      %c0_49 = arith.constant 0 : index
      %135 = vector.load %arg7[%134, %c0_48, %c0_49] : memref<45x32x128xf32, #tpu.memory_space<vmem>>, vector<1x32x128xf32>
      %136 = vector.shape_cast %135 : vector<1x32x128xf32> to vector<32x128xf32>
      %cst_50 = arith.constant dense<0.000000e+00> : vector<8x128xf32>
      %137 = tpu.matmul %132, %136, %cst_50 {dimension_numbers = #tpu.dot_dimension_numbers<[1], [0], [0], [1], [0, 0, 1, 1], [], []>} : vector<8x32xf32>, vector<32x128xf32>, vector<8x128xf32> -> vector<8x128xf32>
      %138 = arith.addf %102, %137 : vector<8x128xf32>
      %c11_i32_51 = arith.constant 11 : i32
      %139 = arith.muli %arg11, %c11_i32_51 : i32
      %c1_i32_52 = arith.constant 1 : i32
      %140 = arith.addi %c1_i32_52, %139 : i32
      %c2_i32 = arith.constant 2 : i32
      %141 = arith.addi %140, %c2_i32 : i32
      %c8_i32_53 = arith.constant 8 : i32
      %142 = arith.muli %141, %c8_i32_53 : i32
      %143 = tpu.assume_multiple %142, 8 : i32
      %144 = arith.index_cast %143 : i32 to index
      %c0_54 = arith.constant 0 : index
      %145 = vector.load %arg10[%144, %c0_54] : memref<360x256xf32, #tpu.memory_space<vmem>>, vector<8x256xf32>
      %146 = arith.addf %145, %131 : vector<8x256xf32>
      %cst_55 = arith.constant dense<0.000000e+00> : vector<8x256xf32>
      %147 = tpu.matmul %127, %7, %cst_55 {dimension_numbers = #tpu.dot_dimension_numbers<[1], [0], [0], [1], [0, 0, 1, 1], [], []>} : vector<8x64xf32>, vector<64x256xf32>, vector<8x256xf32> -> vector<8x256xf32>
      %148 = arith.addf %146, %147 : vector<8x256xf32>
      %149 = arith.negf %148 : vector<8x256xf32>
      %150 = math.exp %149 : vector<8x256xf32>
      %cst_56 = arith.constant 1.000000e+00 : f32
      %151 = vector.broadcast %cst_56 : f32 to vector<8x256xf32>
      %152 = arith.addf %151, %150 : vector<8x256xf32>
      %153 = arith.divf %151, %152 : vector<8x256xf32>
      %154 = vector.extract_strided_slice %153 {offsets = [0, 0], sizes = [8, 64], strides = [1, 1]} : vector<8x256xf32> to vector<8x64xf32>
      %155 = vector.extract_strided_slice %153 {offsets = [0, 64], sizes = [8, 64], strides = [1, 1]} : vector<8x256xf32> to vector<8x64xf32>
      %156 = vector.extract_strided_slice %148 {offsets = [0, 128], sizes = [8, 64], strides = [1, 1]} : vector<8x256xf32> to vector<8x64xf32>
      %157 = math.tanh %156 : vector<8x64xf32>
      %158 = vector.extract_strided_slice %153 {offsets = [0, 192], sizes = [8, 64], strides = [1, 1]} : vector<8x256xf32> to vector<8x64xf32>
      %159 = arith.mulf %155, %125 : vector<8x64xf32>
      %160 = arith.mulf %154, %157 : vector<8x64xf32>
      %161 = arith.addf %159, %160 : vector<8x64xf32>
      %162 = math.tanh %161 : vector<8x64xf32>
      %163 = arith.mulf %158, %162 : vector<8x64xf32>
      %164 = vector.extract_strided_slice %163 {offsets = [0, 0], sizes = [8, 32], strides = [1, 1]} : vector<8x64xf32> to vector<8x32xf32>
      %cst_57 = arith.constant dense<0.000000e+00> : vector<8x256xf32>
      %165 = tpu.matmul %164, %8, %cst_57 {dimension_numbers = #tpu.dot_dimension_numbers<[1], [0], [0], [1], [0, 0, 1, 1], [], []>} : vector<8x32xf32>, vector<32x256xf32>, vector<8x256xf32> -> vector<8x256xf32>
      %166 = vector.broadcast %9 : vector<1x256xf32> to vector<8x256xf32>
      %167 = arith.addf %165, %166 : vector<8x256xf32>
      %168 = vector.extract_strided_slice %163 {offsets = [0, 32], sizes = [8, 32], strides = [1, 1]} : vector<8x64xf32> to vector<8x32xf32>
      %c1_i32_58 = arith.constant 1 : i32
      %169 = arith.subi %141, %c1_i32_58 : i32
      %170 = arith.index_cast %169 : i32 to index
      %c0_59 = arith.constant 0 : index
      %c0_60 = arith.constant 0 : index
      %171 = vector.load %arg7[%170, %c0_59, %c0_60] : memref<45x32x128xf32, #tpu.memory_space<vmem>>, vector<1x32x128xf32>
      %172 = vector.shape_cast %171 : vector<1x32x128xf32> to vector<32x128xf32>
      %cst_61 = arith.constant dense<0.000000e+00> : vector<8x128xf32>
      %173 = tpu.matmul %168, %172, %cst_61 {dimension_numbers = #tpu.dot_dimension_numbers<[1], [0], [0], [1], [0, 0, 1, 1], [], []>} : vector<8x32xf32>, vector<32x128xf32>, vector<8x128xf32> -> vector<8x128xf32>
      %174 = arith.addf %138, %173 : vector<8x128xf32>
      %c11_i32_62 = arith.constant 11 : i32
      %175 = arith.muli %arg11, %c11_i32_62 : i32
      %c1_i32_63 = arith.constant 1 : i32
      %176 = arith.addi %c1_i32_63, %175 : i32
      %c3_i32 = arith.constant 3 : i32
      %177 = arith.addi %176, %c3_i32 : i32
      %c8_i32_64 = arith.constant 8 : i32
      %178 = arith.muli %177, %c8_i32_64 : i32
      %179 = tpu.assume_multiple %178, 8 : i32
      %180 = arith.index_cast %179 : i32 to index
      %c0_65 = arith.constant 0 : index
      %181 = vector.load %arg10[%180, %c0_65] : memref<360x256xf32, #tpu.memory_space<vmem>>, vector<8x256xf32>
      %182 = arith.addf %181, %167 : vector<8x256xf32>
      %cst_66 = arith.constant dense<0.000000e+00> : vector<8x256xf32>
      %183 = tpu.matmul %163, %7, %cst_66 {dimension_numbers = #tpu.dot_dimension_numbers<[1], [0], [0], [1], [0, 0, 1, 1], [], []>} : vector<8x64xf32>, vector<64x256xf32>, vector<8x256xf32> -> vector<8x256xf32>
      %184 = arith.addf %182, %183 : vector<8x256xf32>
      %185 = arith.negf %184 : vector<8x256xf32>
      %186 = math.exp %185 : vector<8x256xf32>
      %cst_67 = arith.constant 1.000000e+00 : f32
      %187 = vector.broadcast %cst_67 : f32 to vector<8x256xf32>
      %188 = arith.addf %187, %186 : vector<8x256xf32>
      %189 = arith.divf %187, %188 : vector<8x256xf32>
      %190 = vector.extract_strided_slice %189 {offsets = [0, 0], sizes = [8, 64], strides = [1, 1]} : vector<8x256xf32> to vector<8x64xf32>
      %191 = vector.extract_strided_slice %189 {offsets = [0, 64], sizes = [8, 64], strides = [1, 1]} : vector<8x256xf32> to vector<8x64xf32>
      %192 = vector.extract_strided_slice %184 {offsets = [0, 128], sizes = [8, 64], strides = [1, 1]} : vector<8x256xf32> to vector<8x64xf32>
      %193 = math.tanh %192 : vector<8x64xf32>
      %194 = vector.extract_strided_slice %189 {offsets = [0, 192], sizes = [8, 64], strides = [1, 1]} : vector<8x256xf32> to vector<8x64xf32>
      %195 = arith.mulf %191, %161 : vector<8x64xf32>
      %196 = arith.mulf %190, %193 : vector<8x64xf32>
      %197 = arith.addf %195, %196 : vector<8x64xf32>
      %198 = math.tanh %197 : vector<8x64xf32>
      %199 = arith.mulf %194, %198 : vector<8x64xf32>
      %200 = vector.extract_strided_slice %199 {offsets = [0, 0], sizes = [8, 32], strides = [1, 1]} : vector<8x64xf32> to vector<8x32xf32>
      %cst_68 = arith.constant dense<0.000000e+00> : vector<8x256xf32>
      %201 = tpu.matmul %200, %8, %cst_68 {dimension_numbers = #tpu.dot_dimension_numbers<[1], [0], [0], [1], [0, 0, 1, 1], [], []>} : vector<8x32xf32>, vector<32x256xf32>, vector<8x256xf32> -> vector<8x256xf32>
      %202 = vector.broadcast %9 : vector<1x256xf32> to vector<8x256xf32>
      %203 = arith.addf %201, %202 : vector<8x256xf32>
      %204 = vector.extract_strided_slice %199 {offsets = [0, 32], sizes = [8, 32], strides = [1, 1]} : vector<8x64xf32> to vector<8x32xf32>
      %c1_i32_69 = arith.constant 1 : i32
      %205 = arith.subi %177, %c1_i32_69 : i32
      %206 = arith.index_cast %205 : i32 to index
      %c0_70 = arith.constant 0 : index
      %c0_71 = arith.constant 0 : index
      %207 = vector.load %arg7[%206, %c0_70, %c0_71] : memref<45x32x128xf32, #tpu.memory_space<vmem>>, vector<1x32x128xf32>
      %208 = vector.shape_cast %207 : vector<1x32x128xf32> to vector<32x128xf32>
      %cst_72 = arith.constant dense<0.000000e+00> : vector<8x128xf32>
      %209 = tpu.matmul %204, %208, %cst_72 {dimension_numbers = #tpu.dot_dimension_numbers<[1], [0], [0], [1], [0, 0, 1, 1], [], []>} : vector<8x32xf32>, vector<32x128xf32>, vector<8x128xf32> -> vector<8x128xf32>
      %210 = arith.addf %174, %209 : vector<8x128xf32>
      %c11_i32_73 = arith.constant 11 : i32
      %211 = arith.muli %arg11, %c11_i32_73 : i32
      %c1_i32_74 = arith.constant 1 : i32
      %212 = arith.addi %c1_i32_74, %211 : i32
      %c4_i32_75 = arith.constant 4 : i32
      %213 = arith.addi %212, %c4_i32_75 : i32
      %c8_i32_76 = arith.constant 8 : i32
      %214 = arith.muli %213, %c8_i32_76 : i32
      %215 = tpu.assume_multiple %214, 8 : i32
      %216 = arith.index_cast %215 : i32 to index
      %c0_77 = arith.constant 0 : index
      %217 = vector.load %arg10[%216, %c0_77] : memref<360x256xf32, #tpu.memory_space<vmem>>, vector<8x256xf32>
      %218 = arith.addf %217, %203 : vector<8x256xf32>
      %cst_78 = arith.constant dense<0.000000e+00> : vector<8x256xf32>
      %219 = tpu.matmul %199, %7, %cst_78 {dimension_numbers = #tpu.dot_dimension_numbers<[1], [0], [0], [1], [0, 0, 1, 1], [], []>} : vector<8x64xf32>, vector<64x256xf32>, vector<8x256xf32> -> vector<8x256xf32>
      %220 = arith.addf %218, %219 : vector<8x256xf32>
      %221 = arith.negf %220 : vector<8x256xf32>
      %222 = math.exp %221 : vector<8x256xf32>
      %cst_79 = arith.constant 1.000000e+00 : f32
      %223 = vector.broadcast %cst_79 : f32 to vector<8x256xf32>
      %224 = arith.addf %223, %222 : vector<8x256xf32>
      %225 = arith.divf %223, %224 : vector<8x256xf32>
      %226 = vector.extract_strided_slice %225 {offsets = [0, 0], sizes = [8, 64], strides = [1, 1]} : vector<8x256xf32> to vector<8x64xf32>
      %227 = vector.extract_strided_slice %225 {offsets = [0, 64], sizes = [8, 64], strides = [1, 1]} : vector<8x256xf32> to vector<8x64xf32>
      %228 = vector.extract_strided_slice %220 {offsets = [0, 128], sizes = [8, 64], strides = [1, 1]} : vector<8x256xf32> to vector<8x64xf32>
      %229 = math.tanh %228 : vector<8x64xf32>
      %230 = vector.extract_strided_slice %225 {offsets = [0, 192], sizes = [8, 64], strides = [1, 1]} : vector<8x256xf32> to vector<8x64xf32>
      %231 = arith.mulf %227, %197 : vector<8x64xf32>
      %232 = arith.mulf %226, %229 : vector<8x64xf32>
      %233 = arith.addf %231, %232 : vector<8x64xf32>
      %234 = math.tanh %233 : vector<8x64xf32>
      %235 = arith.mulf %230, %234 : vector<8x64xf32>
      %236 = vector.extract_strided_slice %235 {offsets = [0, 0], sizes = [8, 32], strides = [1, 1]} : vector<8x64xf32> to vector<8x32xf32>
      %cst_80 = arith.constant dense<0.000000e+00> : vector<8x256xf32>
      %237 = tpu.matmul %236, %8, %cst_80 {dimension_numbers = #tpu.dot_dimension_numbers<[1], [0], [0], [1], [0, 0, 1, 1], [], []>} : vector<8x32xf32>, vector<32x256xf32>, vector<8x256xf32> -> vector<8x256xf32>
      %238 = vector.broadcast %9 : vector<1x256xf32> to vector<8x256xf32>
      %239 = arith.addf %237, %238 : vector<8x256xf32>
      %240 = vector.extract_strided_slice %235 {offsets = [0, 32], sizes = [8, 32], strides = [1, 1]} : vector<8x64xf32> to vector<8x32xf32>
      %c1_i32_81 = arith.constant 1 : i32
      %241 = arith.subi %213, %c1_i32_81 : i32
      %242 = arith.index_cast %241 : i32 to index
      %c0_82 = arith.constant 0 : index
      %c0_83 = arith.constant 0 : index
      %243 = vector.load %arg7[%242, %c0_82, %c0_83] : memref<45x32x128xf32, #tpu.memory_space<vmem>>, vector<1x32x128xf32>
      %244 = vector.shape_cast %243 : vector<1x32x128xf32> to vector<32x128xf32>
      %cst_84 = arith.constant dense<0.000000e+00> : vector<8x128xf32>
      %245 = tpu.matmul %240, %244, %cst_84 {dimension_numbers = #tpu.dot_dimension_numbers<[1], [0], [0], [1], [0, 0, 1, 1], [], []>} : vector<8x32xf32>, vector<32x128xf32>, vector<8x128xf32> -> vector<8x128xf32>
      %246 = arith.addf %210, %245 : vector<8x128xf32>
      %c11_i32_85 = arith.constant 11 : i32
      %247 = arith.muli %arg11, %c11_i32_85 : i32
      %c1_i32_86 = arith.constant 1 : i32
      %248 = arith.addi %c1_i32_86, %247 : i32
      %c5_i32 = arith.constant 5 : i32
      %249 = arith.addi %248, %c5_i32 : i32
      %c8_i32_87 = arith.constant 8 : i32
      %250 = arith.muli %249, %c8_i32_87 : i32
      %251 = tpu.assume_multiple %250, 8 : i32
      %252 = arith.index_cast %251 : i32 to index
      %c0_88 = arith.constant 0 : index
      %253 = vector.load %arg10[%252, %c0_88] : memref<360x256xf32, #tpu.memory_space<vmem>>, vector<8x256xf32>
      %254 = arith.addf %253, %239 : vector<8x256xf32>
      %cst_89 = arith.constant dense<0.000000e+00> : vector<8x256xf32>
      %255 = tpu.matmul %235, %7, %cst_89 {dimension_numbers = #tpu.dot_dimension_numbers<[1], [0], [0], [1], [0, 0, 1, 1], [], []>} : vector<8x64xf32>, vector<64x256xf32>, vector<8x256xf32> -> vector<8x256xf32>
      %256 = arith.addf %254, %255 : vector<8x256xf32>
      %257 = arith.negf %256 : vector<8x256xf32>
      %258 = math.exp %257 : vector<8x256xf32>
      %cst_90 = arith.constant 1.000000e+00 : f32
      %259 = vector.broadcast %cst_90 : f32 to vector<8x256xf32>
      %260 = arith.addf %259, %258 : vector<8x256xf32>
      %261 = arith.divf %259, %260 : vector<8x256xf32>
      %262 = vector.extract_strided_slice %261 {offsets = [0, 0], sizes = [8, 64], strides = [1, 1]} : vector<8x256xf32> to vector<8x64xf32>
      %263 = vector.extract_strided_slice %261 {offsets = [0, 64], sizes = [8, 64], strides = [1, 1]} : vector<8x256xf32> to vector<8x64xf32>
      %264 = vector.extract_strided_slice %256 {offsets = [0, 128], sizes = [8, 64], strides = [1, 1]} : vector<8x256xf32> to vector<8x64xf32>
      %265 = math.tanh %264 : vector<8x64xf32>
      %266 = vector.extract_strided_slice %261 {offsets = [0, 192], sizes = [8, 64], strides = [1, 1]} : vector<8x256xf32> to vector<8x64xf32>
      %267 = arith.mulf %263, %233 : vector<8x64xf32>
      %268 = arith.mulf %262, %265 : vector<8x64xf32>
      %269 = arith.addf %267, %268 : vector<8x64xf32>
      %270 = math.tanh %269 : vector<8x64xf32>
      %271 = arith.mulf %266, %270 : vector<8x64xf32>
      %272 = vector.extract_strided_slice %271 {offsets = [0, 0], sizes = [8, 32], strides = [1, 1]} : vector<8x64xf32> to vector<8x32xf32>
      %cst_91 = arith.constant dense<0.000000e+00> : vector<8x256xf32>
      %273 = tpu.matmul %272, %8, %cst_91 {dimension_numbers = #tpu.dot_dimension_numbers<[1], [0], [0], [1], [0, 0, 1, 1], [], []>} : vector<8x32xf32>, vector<32x256xf32>, vector<8x256xf32> -> vector<8x256xf32>
      %274 = vector.broadcast %9 : vector<1x256xf32> to vector<8x256xf32>
      %275 = arith.addf %273, %274 : vector<8x256xf32>
      %276 = vector.extract_strided_slice %271 {offsets = [0, 32], sizes = [8, 32], strides = [1, 1]} : vector<8x64xf32> to vector<8x32xf32>
      %c1_i32_92 = arith.constant 1 : i32
      %277 = arith.subi %249, %c1_i32_92 : i32
      %278 = arith.index_cast %277 : i32 to index
      %c0_93 = arith.constant 0 : index
      %c0_94 = arith.constant 0 : index
      %279 = vector.load %arg7[%278, %c0_93, %c0_94] : memref<45x32x128xf32, #tpu.memory_space<vmem>>, vector<1x32x128xf32>
      %280 = vector.shape_cast %279 : vector<1x32x128xf32> to vector<32x128xf32>
      %cst_95 = arith.constant dense<0.000000e+00> : vector<8x128xf32>
      %281 = tpu.matmul %276, %280, %cst_95 {dimension_numbers = #tpu.dot_dimension_numbers<[1], [0], [0], [1], [0, 0, 1, 1], [], []>} : vector<8x32xf32>, vector<32x128xf32>, vector<8x128xf32> -> vector<8x128xf32>
      %282 = arith.addf %246, %281 : vector<8x128xf32>
      %c11_i32_96 = arith.constant 11 : i32
      %283 = arith.muli %arg11, %c11_i32_96 : i32
      %c1_i32_97 = arith.constant 1 : i32
      %284 = arith.addi %c1_i32_97, %283 : i32
      %c6_i32 = arith.constant 6 : i32
      %285 = arith.addi %284, %c6_i32 : i32
      %c8_i32_98 = arith.constant 8 : i32
      %286 = arith.muli %285, %c8_i32_98 : i32
      %287 = tpu.assume_multiple %286, 8 : i32
      %288 = arith.index_cast %287 : i32 to index
      %c0_99 = arith.constant 0 : index
      %289 = vector.load %arg10[%288, %c0_99] : memref<360x256xf32, #tpu.memory_space<vmem>>, vector<8x256xf32>
      %290 = arith.addf %289, %275 : vector<8x256xf32>
      %cst_100 = arith.constant dense<0.000000e+00> : vector<8x256xf32>
      %291 = tpu.matmul %271, %7, %cst_100 {dimension_numbers = #tpu.dot_dimension_numbers<[1], [0], [0], [1], [0, 0, 1, 1], [], []>} : vector<8x64xf32>, vector<64x256xf32>, vector<8x256xf32> -> vector<8x256xf32>
      %292 = arith.addf %290, %291 : vector<8x256xf32>
      %293 = arith.negf %292 : vector<8x256xf32>
      %294 = math.exp %293 : vector<8x256xf32>
      %cst_101 = arith.constant 1.000000e+00 : f32
      %295 = vector.broadcast %cst_101 : f32 to vector<8x256xf32>
      %296 = arith.addf %295, %294 : vector<8x256xf32>
      %297 = arith.divf %295, %296 : vector<8x256xf32>
      %298 = vector.extract_strided_slice %297 {offsets = [0, 0], sizes = [8, 64], strides = [1, 1]} : vector<8x256xf32> to vector<8x64xf32>
      %299 = vector.extract_strided_slice %297 {offsets = [0, 64], sizes = [8, 64], strides = [1, 1]} : vector<8x256xf32> to vector<8x64xf32>
      %300 = vector.extract_strided_slice %292 {offsets = [0, 128], sizes = [8, 64], strides = [1, 1]} : vector<8x256xf32> to vector<8x64xf32>
      %301 = math.tanh %300 : vector<8x64xf32>
      %302 = vector.extract_strided_slice %297 {offsets = [0, 192], sizes = [8, 64], strides = [1, 1]} : vector<8x256xf32> to vector<8x64xf32>
      %303 = arith.mulf %299, %269 : vector<8x64xf32>
      %304 = arith.mulf %298, %301 : vector<8x64xf32>
      %305 = arith.addf %303, %304 : vector<8x64xf32>
      %306 = math.tanh %305 : vector<8x64xf32>
      %307 = arith.mulf %302, %306 : vector<8x64xf32>
      %308 = vector.extract_strided_slice %307 {offsets = [0, 0], sizes = [8, 32], strides = [1, 1]} : vector<8x64xf32> to vector<8x32xf32>
      %cst_102 = arith.constant dense<0.000000e+00> : vector<8x256xf32>
      %309 = tpu.matmul %308, %8, %cst_102 {dimension_numbers = #tpu.dot_dimension_numbers<[1], [0], [0], [1], [0, 0, 1, 1], [], []>} : vector<8x32xf32>, vector<32x256xf32>, vector<8x256xf32> -> vector<8x256xf32>
      %310 = vector.broadcast %9 : vector<1x256xf32> to vector<8x256xf32>
      %311 = arith.addf %309, %310 : vector<8x256xf32>
      %312 = vector.extract_strided_slice %307 {offsets = [0, 32], sizes = [8, 32], strides = [1, 1]} : vector<8x64xf32> to vector<8x32xf32>
      %c1_i32_103 = arith.constant 1 : i32
      %313 = arith.subi %285, %c1_i32_103 : i32
      %314 = arith.index_cast %313 : i32 to index
      %c0_104 = arith.constant 0 : index
      %c0_105 = arith.constant 0 : index
      %315 = vector.load %arg7[%314, %c0_104, %c0_105] : memref<45x32x128xf32, #tpu.memory_space<vmem>>, vector<1x32x128xf32>
      %316 = vector.shape_cast %315 : vector<1x32x128xf32> to vector<32x128xf32>
      %cst_106 = arith.constant dense<0.000000e+00> : vector<8x128xf32>
      %317 = tpu.matmul %312, %316, %cst_106 {dimension_numbers = #tpu.dot_dimension_numbers<[1], [0], [0], [1], [0, 0, 1, 1], [], []>} : vector<8x32xf32>, vector<32x128xf32>, vector<8x128xf32> -> vector<8x128xf32>
      %318 = arith.addf %282, %317 : vector<8x128xf32>
      %c11_i32_107 = arith.constant 11 : i32
      %319 = arith.muli %arg11, %c11_i32_107 : i32
      %c1_i32_108 = arith.constant 1 : i32
      %320 = arith.addi %c1_i32_108, %319 : i32
      %c7_i32 = arith.constant 7 : i32
      %321 = arith.addi %320, %c7_i32 : i32
      %c8_i32_109 = arith.constant 8 : i32
      %322 = arith.muli %321, %c8_i32_109 : i32
      %323 = tpu.assume_multiple %322, 8 : i32
      %324 = arith.index_cast %323 : i32 to index
      %c0_110 = arith.constant 0 : index
      %325 = vector.load %arg10[%324, %c0_110] : memref<360x256xf32, #tpu.memory_space<vmem>>, vector<8x256xf32>
      %326 = arith.addf %325, %311 : vector<8x256xf32>
      %cst_111 = arith.constant dense<0.000000e+00> : vector<8x256xf32>
      %327 = tpu.matmul %307, %7, %cst_111 {dimension_numbers = #tpu.dot_dimension_numbers<[1], [0], [0], [1], [0, 0, 1, 1], [], []>} : vector<8x64xf32>, vector<64x256xf32>, vector<8x256xf32> -> vector<8x256xf32>
      %328 = arith.addf %326, %327 : vector<8x256xf32>
      %329 = arith.negf %328 : vector<8x256xf32>
      %330 = math.exp %329 : vector<8x256xf32>
      %cst_112 = arith.constant 1.000000e+00 : f32
      %331 = vector.broadcast %cst_112 : f32 to vector<8x256xf32>
      %332 = arith.addf %331, %330 : vector<8x256xf32>
      %333 = arith.divf %331, %332 : vector<8x256xf32>
      %334 = vector.extract_strided_slice %333 {offsets = [0, 0], sizes = [8, 64], strides = [1, 1]} : vector<8x256xf32> to vector<8x64xf32>
      %335 = vector.extract_strided_slice %333 {offsets = [0, 64], sizes = [8, 64], strides = [1, 1]} : vector<8x256xf32> to vector<8x64xf32>
      %336 = vector.extract_strided_slice %328 {offsets = [0, 128], sizes = [8, 64], strides = [1, 1]} : vector<8x256xf32> to vector<8x64xf32>
      %337 = math.tanh %336 : vector<8x64xf32>
      %338 = vector.extract_strided_slice %333 {offsets = [0, 192], sizes = [8, 64], strides = [1, 1]} : vector<8x256xf32> to vector<8x64xf32>
      %339 = arith.mulf %335, %305 : vector<8x64xf32>
      %340 = arith.mulf %334, %337 : vector<8x64xf32>
      %341 = arith.addf %339, %340 : vector<8x64xf32>
      %342 = math.tanh %341 : vector<8x64xf32>
      %343 = arith.mulf %338, %342 : vector<8x64xf32>
      %344 = vector.extract_strided_slice %343 {offsets = [0, 0], sizes = [8, 32], strides = [1, 1]} : vector<8x64xf32> to vector<8x32xf32>
      %cst_113 = arith.constant dense<0.000000e+00> : vector<8x256xf32>
      %345 = tpu.matmul %344, %8, %cst_113 {dimension_numbers = #tpu.dot_dimension_numbers<[1], [0], [0], [1], [0, 0, 1, 1], [], []>} : vector<8x32xf32>, vector<32x256xf32>, vector<8x256xf32> -> vector<8x256xf32>
      %346 = vector.broadcast %9 : vector<1x256xf32> to vector<8x256xf32>
      %347 = arith.addf %345, %346 : vector<8x256xf32>
      %348 = vector.extract_strided_slice %343 {offsets = [0, 32], sizes = [8, 32], strides = [1, 1]} : vector<8x64xf32> to vector<8x32xf32>
      %c1_i32_114 = arith.constant 1 : i32
      %349 = arith.subi %321, %c1_i32_114 : i32
      %350 = arith.index_cast %349 : i32 to index
      %c0_115 = arith.constant 0 : index
      %c0_116 = arith.constant 0 : index
      %351 = vector.load %arg7[%350, %c0_115, %c0_116] : memref<45x32x128xf32, #tpu.memory_space<vmem>>, vector<1x32x128xf32>
      %352 = vector.shape_cast %351 : vector<1x32x128xf32> to vector<32x128xf32>
      %cst_117 = arith.constant dense<0.000000e+00> : vector<8x128xf32>
      %353 = tpu.matmul %348, %352, %cst_117 {dimension_numbers = #tpu.dot_dimension_numbers<[1], [0], [0], [1], [0, 0, 1, 1], [], []>} : vector<8x32xf32>, vector<32x128xf32>, vector<8x128xf32> -> vector<8x128xf32>
      %354 = arith.addf %318, %353 : vector<8x128xf32>
      %c11_i32_118 = arith.constant 11 : i32
      %355 = arith.muli %arg11, %c11_i32_118 : i32
      %c1_i32_119 = arith.constant 1 : i32
      %356 = arith.addi %c1_i32_119, %355 : i32
      %c8_i32_120 = arith.constant 8 : i32
      %357 = arith.addi %356, %c8_i32_120 : i32
      %c8_i32_121 = arith.constant 8 : i32
      %358 = arith.muli %357, %c8_i32_121 : i32
      %359 = tpu.assume_multiple %358, 8 : i32
      %360 = arith.index_cast %359 : i32 to index
      %c0_122 = arith.constant 0 : index
      %361 = vector.load %arg10[%360, %c0_122] : memref<360x256xf32, #tpu.memory_space<vmem>>, vector<8x256xf32>
      %362 = arith.addf %361, %347 : vector<8x256xf32>
      %cst_123 = arith.constant dense<0.000000e+00> : vector<8x256xf32>
      %363 = tpu.matmul %343, %7, %cst_123 {dimension_numbers = #tpu.dot_dimension_numbers<[1], [0], [0], [1], [0, 0, 1, 1], [], []>} : vector<8x64xf32>, vector<64x256xf32>, vector<8x256xf32> -> vector<8x256xf32>
      %364 = arith.addf %362, %363 : vector<8x256xf32>
      %365 = arith.negf %364 : vector<8x256xf32>
      %366 = math.exp %365 : vector<8x256xf32>
      %cst_124 = arith.constant 1.000000e+00 : f32
      %367 = vector.broadcast %cst_124 : f32 to vector<8x256xf32>
      %368 = arith.addf %367, %366 : vector<8x256xf32>
      %369 = arith.divf %367, %368 : vector<8x256xf32>
      %370 = vector.extract_strided_slice %369 {offsets = [0, 0], sizes = [8, 64], strides = [1, 1]} : vector<8x256xf32> to vector<8x64xf32>
      %371 = vector.extract_strided_slice %369 {offsets = [0, 64], sizes = [8, 64], strides = [1, 1]} : vector<8x256xf32> to vector<8x64xf32>
      %372 = vector.extract_strided_slice %364 {offsets = [0, 128], sizes = [8, 64], strides = [1, 1]} : vector<8x256xf32> to vector<8x64xf32>
      %373 = math.tanh %372 : vector<8x64xf32>
      %374 = vector.extract_strided_slice %369 {offsets = [0, 192], sizes = [8, 64], strides = [1, 1]} : vector<8x256xf32> to vector<8x64xf32>
      %375 = arith.mulf %371, %341 : vector<8x64xf32>
      %376 = arith.mulf %370, %373 : vector<8x64xf32>
      %377 = arith.addf %375, %376 : vector<8x64xf32>
      %378 = math.tanh %377 : vector<8x64xf32>
      %379 = arith.mulf %374, %378 : vector<8x64xf32>
      %380 = vector.extract_strided_slice %379 {offsets = [0, 0], sizes = [8, 32], strides = [1, 1]} : vector<8x64xf32> to vector<8x32xf32>
      %cst_125 = arith.constant dense<0.000000e+00> : vector<8x256xf32>
      %381 = tpu.matmul %380, %8, %cst_125 {dimension_numbers = #tpu.dot_dimension_numbers<[1], [0], [0], [1], [0, 0, 1, 1], [], []>} : vector<8x32xf32>, vector<32x256xf32>, vector<8x256xf32> -> vector<8x256xf32>
      %382 = vector.broadcast %9 : vector<1x256xf32> to vector<8x256xf32>
      %383 = arith.addf %381, %382 : vector<8x256xf32>
      %384 = vector.extract_strided_slice %379 {offsets = [0, 32], sizes = [8, 32], strides = [1, 1]} : vector<8x64xf32> to vector<8x32xf32>
      %c1_i32_126 = arith.constant 1 : i32
      %385 = arith.subi %357, %c1_i32_126 : i32
      %386 = arith.index_cast %385 : i32 to index
      %c0_127 = arith.constant 0 : index
      %c0_128 = arith.constant 0 : index
      %387 = vector.load %arg7[%386, %c0_127, %c0_128] : memref<45x32x128xf32, #tpu.memory_space<vmem>>, vector<1x32x128xf32>
      %388 = vector.shape_cast %387 : vector<1x32x128xf32> to vector<32x128xf32>
      %cst_129 = arith.constant dense<0.000000e+00> : vector<8x128xf32>
      %389 = tpu.matmul %384, %388, %cst_129 {dimension_numbers = #tpu.dot_dimension_numbers<[1], [0], [0], [1], [0, 0, 1, 1], [], []>} : vector<8x32xf32>, vector<32x128xf32>, vector<8x128xf32> -> vector<8x128xf32>
      %390 = arith.addf %354, %389 : vector<8x128xf32>
      %c11_i32_130 = arith.constant 11 : i32
      %391 = arith.muli %arg11, %c11_i32_130 : i32
      %c1_i32_131 = arith.constant 1 : i32
      %392 = arith.addi %c1_i32_131, %391 : i32
      %c9_i32 = arith.constant 9 : i32
      %393 = arith.addi %392, %c9_i32 : i32
      %c8_i32_132 = arith.constant 8 : i32
      %394 = arith.muli %393, %c8_i32_132 : i32
      %395 = tpu.assume_multiple %394, 8 : i32
      %396 = arith.index_cast %395 : i32 to index
      %c0_133 = arith.constant 0 : index
      %397 = vector.load %arg10[%396, %c0_133] : memref<360x256xf32, #tpu.memory_space<vmem>>, vector<8x256xf32>
      %398 = arith.addf %397, %383 : vector<8x256xf32>
      %cst_134 = arith.constant dense<0.000000e+00> : vector<8x256xf32>
      %399 = tpu.matmul %379, %7, %cst_134 {dimension_numbers = #tpu.dot_dimension_numbers<[1], [0], [0], [1], [0, 0, 1, 1], [], []>} : vector<8x64xf32>, vector<64x256xf32>, vector<8x256xf32> -> vector<8x256xf32>
      %400 = arith.addf %398, %399 : vector<8x256xf32>
      %401 = arith.negf %400 : vector<8x256xf32>
      %402 = math.exp %401 : vector<8x256xf32>
      %cst_135 = arith.constant 1.000000e+00 : f32
      %403 = vector.broadcast %cst_135 : f32 to vector<8x256xf32>
      %404 = arith.addf %403, %402 : vector<8x256xf32>
      %405 = arith.divf %403, %404 : vector<8x256xf32>
      %406 = vector.extract_strided_slice %405 {offsets = [0, 0], sizes = [8, 64], strides = [1, 1]} : vector<8x256xf32> to vector<8x64xf32>
      %407 = vector.extract_strided_slice %405 {offsets = [0, 64], sizes = [8, 64], strides = [1, 1]} : vector<8x256xf32> to vector<8x64xf32>
      %408 = vector.extract_strided_slice %400 {offsets = [0, 128], sizes = [8, 64], strides = [1, 1]} : vector<8x256xf32> to vector<8x64xf32>
      %409 = math.tanh %408 : vector<8x64xf32>
      %410 = vector.extract_strided_slice %405 {offsets = [0, 192], sizes = [8, 64], strides = [1, 1]} : vector<8x256xf32> to vector<8x64xf32>
      %411 = arith.mulf %407, %377 : vector<8x64xf32>
      %412 = arith.mulf %406, %409 : vector<8x64xf32>
      %413 = arith.addf %411, %412 : vector<8x64xf32>
      %414 = math.tanh %413 : vector<8x64xf32>
      %415 = arith.mulf %410, %414 : vector<8x64xf32>
      %416 = vector.extract_strided_slice %415 {offsets = [0, 0], sizes = [8, 32], strides = [1, 1]} : vector<8x64xf32> to vector<8x32xf32>
      %cst_136 = arith.constant dense<0.000000e+00> : vector<8x256xf32>
      %417 = tpu.matmul %416, %8, %cst_136 {dimension_numbers = #tpu.dot_dimension_numbers<[1], [0], [0], [1], [0, 0, 1, 1], [], []>} : vector<8x32xf32>, vector<32x256xf32>, vector<8x256xf32> -> vector<8x256xf32>
      %418 = vector.broadcast %9 : vector<1x256xf32> to vector<8x256xf32>
      %419 = arith.addf %417, %418 : vector<8x256xf32>
      %420 = vector.extract_strided_slice %415 {offsets = [0, 32], sizes = [8, 32], strides = [1, 1]} : vector<8x64xf32> to vector<8x32xf32>
      %c1_i32_137 = arith.constant 1 : i32
      %421 = arith.subi %393, %c1_i32_137 : i32
      %422 = arith.index_cast %421 : i32 to index
      %c0_138 = arith.constant 0 : index
      %c0_139 = arith.constant 0 : index
      %423 = vector.load %arg7[%422, %c0_138, %c0_139] : memref<45x32x128xf32, #tpu.memory_space<vmem>>, vector<1x32x128xf32>
      %424 = vector.shape_cast %423 : vector<1x32x128xf32> to vector<32x128xf32>
      %cst_140 = arith.constant dense<0.000000e+00> : vector<8x128xf32>
      %425 = tpu.matmul %420, %424, %cst_140 {dimension_numbers = #tpu.dot_dimension_numbers<[1], [0], [0], [1], [0, 0, 1, 1], [], []>} : vector<8x32xf32>, vector<32x128xf32>, vector<8x128xf32> -> vector<8x128xf32>
      %426 = arith.addf %390, %425 : vector<8x128xf32>
      %c11_i32_141 = arith.constant 11 : i32
      %427 = arith.muli %arg11, %c11_i32_141 : i32
      %c1_i32_142 = arith.constant 1 : i32
      %428 = arith.addi %c1_i32_142, %427 : i32
      %c10_i32 = arith.constant 10 : i32
      %429 = arith.addi %428, %c10_i32 : i32
      %c8_i32_143 = arith.constant 8 : i32
      %430 = arith.muli %429, %c8_i32_143 : i32
      %431 = tpu.assume_multiple %430, 8 : i32
      %432 = arith.index_cast %431 : i32 to index
      %c0_144 = arith.constant 0 : index
      %433 = vector.load %arg10[%432, %c0_144] : memref<360x256xf32, #tpu.memory_space<vmem>>, vector<8x256xf32>
      %434 = arith.addf %433, %419 : vector<8x256xf32>
      %cst_145 = arith.constant dense<0.000000e+00> : vector<8x256xf32>
      %435 = tpu.matmul %415, %7, %cst_145 {dimension_numbers = #tpu.dot_dimension_numbers<[1], [0], [0], [1], [0, 0, 1, 1], [], []>} : vector<8x64xf32>, vector<64x256xf32>, vector<8x256xf32> -> vector<8x256xf32>
      %436 = arith.addf %434, %435 : vector<8x256xf32>
      %437 = arith.negf %436 : vector<8x256xf32>
      %438 = math.exp %437 : vector<8x256xf32>
      %cst_146 = arith.constant 1.000000e+00 : f32
      %439 = vector.broadcast %cst_146 : f32 to vector<8x256xf32>
      %440 = arith.addf %439, %438 : vector<8x256xf32>
      %441 = arith.divf %439, %440 : vector<8x256xf32>
      %442 = vector.extract_strided_slice %441 {offsets = [0, 0], sizes = [8, 64], strides = [1, 1]} : vector<8x256xf32> to vector<8x64xf32>
      %443 = vector.extract_strided_slice %441 {offsets = [0, 64], sizes = [8, 64], strides = [1, 1]} : vector<8x256xf32> to vector<8x64xf32>
      %444 = vector.extract_strided_slice %436 {offsets = [0, 128], sizes = [8, 64], strides = [1, 1]} : vector<8x256xf32> to vector<8x64xf32>
      %445 = math.tanh %444 : vector<8x64xf32>
      %446 = vector.extract_strided_slice %441 {offsets = [0, 192], sizes = [8, 64], strides = [1, 1]} : vector<8x256xf32> to vector<8x64xf32>
      %447 = arith.mulf %443, %413 : vector<8x64xf32>
      %448 = arith.mulf %442, %445 : vector<8x64xf32>
      %449 = arith.addf %447, %448 : vector<8x64xf32>
      %450 = math.tanh %449 : vector<8x64xf32>
      %451 = arith.mulf %446, %450 : vector<8x64xf32>
      %452 = vector.extract_strided_slice %451 {offsets = [0, 0], sizes = [8, 32], strides = [1, 1]} : vector<8x64xf32> to vector<8x32xf32>
      %cst_147 = arith.constant dense<0.000000e+00> : vector<8x256xf32>
      %453 = tpu.matmul %452, %8, %cst_147 {dimension_numbers = #tpu.dot_dimension_numbers<[1], [0], [0], [1], [0, 0, 1, 1], [], []>} : vector<8x32xf32>, vector<32x256xf32>, vector<8x256xf32> -> vector<8x256xf32>
      %454 = vector.broadcast %9 : vector<1x256xf32> to vector<8x256xf32>
      %455 = arith.addf %453, %454 : vector<8x256xf32>
      %456 = vector.extract_strided_slice %451 {offsets = [0, 32], sizes = [8, 32], strides = [1, 1]} : vector<8x64xf32> to vector<8x32xf32>
      %c1_i32_148 = arith.constant 1 : i32
      %457 = arith.subi %429, %c1_i32_148 : i32
      %458 = arith.index_cast %457 : i32 to index
      %c0_149 = arith.constant 0 : index
      %c0_150 = arith.constant 0 : index
      %459 = vector.load %arg7[%458, %c0_149, %c0_150] : memref<45x32x128xf32, #tpu.memory_space<vmem>>, vector<1x32x128xf32>
      %460 = vector.shape_cast %459 : vector<1x32x128xf32> to vector<32x128xf32>
      %cst_151 = arith.constant dense<0.000000e+00> : vector<8x128xf32>
      %461 = tpu.matmul %456, %460, %cst_151 {dimension_numbers = #tpu.dot_dimension_numbers<[1], [0], [0], [1], [0, 0, 1, 1], [], []>} : vector<8x32xf32>, vector<32x128xf32>, vector<8x128xf32> -> vector<8x128xf32>
      %462 = arith.addf %426, %461 : vector<8x128xf32>
      scf.yield %451, %449, %455, %462 : vector<8x64xf32>, vector<8x64xf32>, vector<8x256xf32>, vector<8x128xf32>
    }
    %c4_i32_19 = arith.constant 4 : i32
    %cst_20 = arith.constant dense<0.000000e+00> : vector<8x256xf32>
    %41 = tpu.matmul %40#0, %7, %cst_20 {dimension_numbers = #tpu.dot_dimension_numbers<[1], [0], [0], [1], [0, 0, 1, 1], [], []>} : vector<8x64xf32>, vector<64x256xf32>, vector<8x256xf32> -> vector<8x256xf32>
    %42 = arith.addf %40#2, %41 : vector<8x256xf32>
    %43 = arith.negf %42 : vector<8x256xf32>
    %44 = math.exp %43 : vector<8x256xf32>
    %cst_21 = arith.constant 1.000000e+00 : f32
    %45 = vector.broadcast %cst_21 : f32 to vector<8x256xf32>
    %46 = arith.addf %45, %44 : vector<8x256xf32>
    %47 = arith.divf %45, %46 : vector<8x256xf32>
    %48 = vector.extract_strided_slice %47 {offsets = [0, 0], sizes = [8, 64], strides = [1, 1]} : vector<8x256xf32> to vector<8x64xf32>
    %49 = vector.extract_strided_slice %47 {offsets = [0, 64], sizes = [8, 64], strides = [1, 1]} : vector<8x256xf32> to vector<8x64xf32>
    %50 = vector.extract_strided_slice %42 {offsets = [0, 128], sizes = [8, 64], strides = [1, 1]} : vector<8x256xf32> to vector<8x64xf32>
    %51 = math.tanh %50 : vector<8x64xf32>
    %52 = vector.extract_strided_slice %47 {offsets = [0, 192], sizes = [8, 64], strides = [1, 1]} : vector<8x256xf32> to vector<8x64xf32>
    %53 = arith.mulf %49, %40#1 : vector<8x64xf32>
    %54 = arith.mulf %48, %51 : vector<8x64xf32>
    %55 = arith.addf %53, %54 : vector<8x64xf32>
    %56 = math.tanh %55 : vector<8x64xf32>
    %57 = arith.mulf %52, %56 : vector<8x64xf32>
    %58 = vector.extract_strided_slice %57 {offsets = [0, 32], sizes = [8, 32], strides = [1, 1]} : vector<8x64xf32> to vector<8x32xf32>
    %c44 = arith.constant 44 : index
    %c0_22 = arith.constant 0 : index
    %c0_23 = arith.constant 0 : index
    %59 = vector.load %arg7[%c44, %c0_22, %c0_23] : memref<45x32x128xf32, #tpu.memory_space<vmem>>, vector<1x32x128xf32>
    %60 = vector.shape_cast %59 : vector<1x32x128xf32> to vector<32x128xf32>
    %cst_24 = arith.constant dense<0.000000e+00> : vector<8x128xf32>
    %61 = tpu.matmul %58, %60, %cst_24 {dimension_numbers = #tpu.dot_dimension_numbers<[1], [0], [0], [1], [0, 0, 1, 1], [], []>} : vector<8x32xf32>, vector<32x128xf32>, vector<8x128xf32> -> vector<8x128xf32>
    %62 = arith.addf %40#3, %61 : vector<8x128xf32>
    %c0_25 = arith.constant 0 : index
    %c0_26 = arith.constant 0 : index
    %63 = vector.load %arg8[%c0_25, %c0_26] : memref<1x128xf32, #tpu.memory_space<vmem>>, vector<1x128xf32>
    %64 = vector.broadcast %63 : vector<1x128xf32> to vector<8x128xf32>
    %65 = arith.addf %62, %64 : vector<8x128xf32>
    %c0_27 = arith.constant 0 : index
    %c0_28 = arith.constant 0 : index
    %66 = vector.load %arg9[%c0_27, %c0_28] : memref<8x128xf32, #tpu.memory_space<vmem>>, vector<8x128xf32>
    tpu.vector_store %arg9[%c0_27, %c0_28], %65 {strides = array<i32>} : memref<8x128xf32, #tpu.memory_space<vmem>>, vector<8x128xf32>,
    return
  }
  func.func @transform_0(%arg0: i32) -> (i32, i32) {
    %c0_i32 = arith.constant 0 : i32
    %c0_i32_0 = arith.constant 0 : i32
    return %arg0, %c0_i32 : i32, i32
  }
  func.func @transform_1(%arg0: i32) -> (i32, i32) {
    %c0_i32 = arith.constant 0 : i32
    %c0_i32_0 = arith.constant 0 : i32
    %c0_i32_1 = arith.constant 0 : i32
    return %c0_i32, %c0_i32_0 : i32, i32
  }
  func.func @transform_2(%arg0: i32) -> (i32, i32) {
    %c0_i32 = arith.constant 0 : i32
    %c0_i32_0 = arith.constant 0 : i32
    %c0_i32_1 = arith.constant 0 : i32
    return %c0_i32, %c0_i32_0 : i32, i32
  }
  func.func @transform_3(%arg0: i32) -> (i32, i32) {
    %c0_i32 = arith.constant 0 : i32
    %c0_i32_0 = arith.constant 0 : i32
    %c0_i32_1 = arith.constant 0 : i32
    return %c0_i32, %c0_i32_0 : i32, i32
  }
  func.func @transform_4(%arg0: i32) -> (i32, i32) {
    %c0_i32 = arith.constant 0 : i32
    %c0_i32_0 = arith.constant 0 : i32
    %c0_i32_1 = arith.constant 0 : i32
    return %c0_i32, %c0_i32_0 : i32, i32
  }
  func.func @transform_5(%arg0: i32) -> (i32, i32) {
    %c0_i32 = arith.constant 0 : i32
    %c0_i32_0 = arith.constant 0 : i32
    %c0_i32_1 = arith.constant 0 : i32
    return %c0_i32, %c0_i32_0 : i32, i32
  }
  func.func @transform_6(%arg0: i32) -> (i32, i32, i32) {
    %c0_i32 = arith.constant 0 : i32
    %c0_i32_0 = arith.constant 0 : i32
    %c0_i32_1 = arith.constant 0 : i32
    %c0_i32_2 = arith.constant 0 : i32
    return %c0_i32, %c0_i32_0, %c0_i32_1 : i32, i32, i32
  }
  func.func @transform_7(%arg0: i32) -> (i32, i32) {
    %c0_i32 = arith.constant 0 : i32
    %c0_i32_0 = arith.constant 0 : i32
    %c0_i32_1 = arith.constant 0 : i32
    return %c0_i32, %c0_i32_0 : i32, i32
  }
  func.func @transform_8(%arg0: i32) -> (i32, i32) {
    %c0_i32 = arith.constant 0 : i32
    %c0_i32_0 = arith.constant 0 : i32
    return %arg0, %c0_i32 : i32, i32
  }
}

</mosaic_0001>

<bundles_post_ra>
// kernel: rnn_lstm_forward.1
= control target key start
LH: loop header
LB: loop body
LE: loop exit
PB: predicated region body
PF: predicated region fallthrough
CT: control target
= control target key end

     0   :  { %13 = vsyncpa [#allocation4], 0  ;;  %s5183_s27 = smov [#allocation3]   ;;  %s6224_s0 = inlined_call_operand.vmem [shape: f32[360,8], index: 0, kind: input, shape index: {}]   ;;  %s6225_s1 = inlined_call_operand.vmem [shape: f32[8,256], index: 1, kind: input, shape index: {}]   ;;  %s6226_s2 = inlined_call_operand.vmem [shape: f32[1,256], index: 2, kind: input, shape index: {}]   ;;  %s6227_s3 = inlined_call_operand.vmem [shape: f32[32,256], index: 3, kind: input, shape index: {}]   ;;  %s6228_s4 = inlined_call_operand.vmem [shape: f32[1,256], index: 4, kind: input, shape index: {}]   ;;  %s6229_s5 = inlined_call_operand.vmem [shape: f32[64,256], index: 5, kind: input, shape index: {}]   ;;  %s6230_s6 = inlined_call_operand.hbm [shape: f32[45,32,128], index: 6, kind: input, shape index: {}]   ;;  %s6231_s7 = inlined_call_operand.vmem [shape: f32[1,128], index: 7, kind: input, shape index: {}]   ;;  %s6232_s8 = inlined_call_operand.vmem [shape: f32[8,128], index: 8, kind: output, shape index: {}]  }
   0x1   :  { %s31_s28 = sshll.u32 %s5183_s27, 4  ;;  %s5111_s9 = scalar_lea.hbm %s6230_s6, 23040  ;;  %s32_s28 = int_to_ptr.vmem [resolvable:$true] %s31_s28 }
   0x2   :  { %p5112_p0 = scmp.ne.s32.totalorder %s6230_s6, %s5111_s9  ;;  %p5115_p1 = scmp.lt.u32.totalorder %s5111_s9, %s6230_s6 }
   0x4   :  { %p5117_p2 = pnand %p5115_p1, %p5112_p0 }
   0x6   :  { %5120 = shalt.err (!%p5117_p2)
}
   0x7   :  { %s5121_s14 = scalar_lea.vmem %s32_s28, 23040  ;;  %p5126_p4 = scmp.lt.s32.totalorder %s32_s28, %s32_s28 }
   0x8   :  { %p5122_p3 = scmp.ne.s32.totalorder %s32_s28, %s5121_s14  ;;  %p5127_p5 = scmp.lt.s32.totalorder %s5121_s14, %s5121_s14 }
   0xa   :  { %p5128_p6 = por %p5127_p5, %p5126_p4 }
   0xc   :  { %p5129_p7 = pnand %p5128_p6, %p5122_p3 }
   0xe   :  { %5132 = shalt.err (!%p5129_p7)
}
   0xf   :  { %s5184_s15 = smov 128   ;;  %s5185_s16 = smov 8  }
  0x10   :  { %37 = dma.hbm_to_vmem [thread:$0]  %s6230_s6, 23040, %s32_s28, [#allocation4], %s5184_s15, %s5184_s15, %s5185_s16  }
  0x11   :  { %5157 = dma.done.wait [#allocation4], 23040  }
  0x12   :  { %5158 = vsyncadd [#allocation4], 4294944256  ;;  %v5186_v0 = vmov 0.0   ;;  %v5258_v1 = vld [vmem:[%s6229_s5] sm:$0xff]  ;;  %v5263_v2 = vld [vmem:[%s6229_s5 + $0x8] sm:$0xff]  ;;  %vm102_vm0 = vcmask 64512   ;;  %v92_v20 = vlaneseq }
  0x13   :  { %302 = vmatprep.mubr.f32.mxu0 %v5186_v0  ;;  %440 = vmatprep.mubr.f32.mxu1 %v5186_v0  ;;  %v5268_v3 = vld [vmem:[%s6229_s5 + $0x10] sm:$0xff]  ;;  %v5273_v4 = vld [vmem:[%s6229_s5 + $0x18] sm:$0xff]  ;;  %v5278_v5 = vld [vmem:[%s6229_s5 + $0x20] sm:$0xff]  ;;  %vm737_vm2 = vcmask 261120  }
  0x14   :  { %v5283_v6 = vld [vmem:[%s6229_s5 + $0x28] sm:$0xff]  ;;  %v5288_v7 = vld [vmem:[%s6229_s5 + $0x30] sm:$0xff]  ;;  %v5293_v8 = vld [vmem:[%s6229_s5 + $0x38] sm:$0xff]  ;;  %v5346_v21 = vshrl.u32 %v92_v20, 7  ;;  %v689_v34 = vand.u32 127, %v92_v20 }
  0x15   :  { %v5298_v9 = vld [vmem:[%s6229_s5 + $0x40] sm:$0xff]  ;;  %v5303_v10 = vld [vmem:[%s6229_s5 + $0x48] sm:$0xff]  ;;  %v5308_v11 = vld [vmem:[%s6229_s5 + $0x50] sm:$0xff] }
  0x16   :  { %v5313_v12 = vld [vmem:[%s6229_s5 + $0x58] sm:$0xff]  ;;  %v5318_v13 = vld [vmem:[%s6229_s5 + $0x60] sm:$0xff]  ;;  %v5323_v14 = vld [vmem:[%s6229_s5 + $0x68] sm:$0xff]  ;;  %v94_v22 = vsub.s32 0, %v5346_v21  ;;  %v98_v24 = vsub.s32 1, %v5346_v21  ;;  %vm690_vm1 = vcmp.lt.s32.totalorder %v689_v34, 32 }
  0x17   :  { %v5328_v15 = vld [vmem:[%s6229_s5 + $0x70] sm:$0xff]  ;;  %v5333_v16 = vld [vmem:[%s6229_s5 + $0x78] sm:$0xff]  ;;  %v89_v17 = vld [vmem:[%s6225_s1 + $0x8] sm:$0xff]  ;;  %v4067_v38 = vsel %vm690_vm1, 1.0, %v5186_v0 }
  0x18   :  { %v88_v18 = vld [vmem:[%s6225_s1] sm:$0xff]  ;;  %238 = vmatprep.subr.mxu0 %v89_v17  ;;  %4811 = vmatprep.subr.mxu1 %v89_v17  ;;  %v66_v39 = vld [vmem:[%s6224_s0 + $0xb8] sm:$0xff]  ;;  %v680_v40 = vld [vmem:[%s6227_s3 + $0x8] sm:$0xff] }
  0x19   :  { %v43_v19 = vld [vmem:[%s6224_s0] sm:$0xff]  ;;  %239 = vmatpush1.msra.mxu0 %v88_v18  ;;  %4812 = vmatpush1.msra.mxu1 %v88_v18  ;;  %v682_v41 = vld [vmem:[%s6227_s3 + $0x18] sm:$0xff]  ;;  %v681_v44 = vld [vmem:[%s6227_s3 + $0x10] sm:$0xff] }
  0x1a   :  { %4022 = vmatmul.mubr.msk.f32.vlgmr.msra.gmra.mrb[0].mxu0 %vm102_vm0, %v43_v19  ;;  %v90_v23 = vld [vmem:[%s6226_s2] sm:$0x3]  ;;  %s5187_s2 = smov 64   ;;  %4045 = vmatmul.mubr.msk.f32.vlgmr.msra.gmra.mrb[0].mxu1 %vm102_vm0, %v66_v39  ;;  %v5383_v42 = vpack.c.bf16 %v682_v41, %v680_v40  ;;  %v44_v45 = vld [vmem:[%s6224_s0 + $0x8] sm:$0xff]  ;;  %v45_v48 = vld [vmem:[%s6224_s0 + $0x10] sm:$0xff] }
  0x1b   :  { %308 = vmatprep.mubr.f32.mxu0 %v5186_v0  ;;  %v5355_v25 = vrot.slane %v90_v23, %v94_v22  ;;  %v5359_v26 = vrot.slane %v90_v23, %v98_v24  ;;  %v679_v43 = vld [vmem:[%s6227_s3] sm:$0xff]  ;;  %446 = vmatprep.mubr.f32.mxu1 %v5186_v0  ;;  %v68_v49 = vld [vmem:[%s6224_s0 + $0xc8] sm:$0xff]  ;;  %v46_v50 = vld [vmem:[%s6224_s0 + $0x18] sm:$0xff] }
  0x1c   :  { %v5394_v46 = vpack.c.bf16 %v681_v44, %v679_v43  ;;  %v67_v47 = vld [vmem:[%s6224_s0 + $0xc0] sm:$0xff]  ;;  %4452 = vmatprep.subr.bf16.mxu1 %v5383_v42  ;;  %v684_v51 = vld [vmem:[%s6227_s3 + $0x28] sm:$0xff]  ;;  %v686_v52 = vld [vmem:[%s6227_s3 + $0x38] sm:$0xff] }
  0x1d   :  { %v683_v53 = vld [vmem:[%s6227_s3 + $0x20] sm:$0xff]  ;;  %v69_v54 = vld [vmem:[%s6224_s0 + $0xd0] sm:$0xff]  ;;  %v5432_v55 = vpack.c.bf16 %v686_v52, %v684_v51  ;;  %v70_v59 = vld [vmem:[%s6224_s0 + $0xd8] sm:$0xff] }
  0x1e   :  { %4023 = vmatmul.mubr.msk.f32.gmra.mrb[2].mxu0 %vm102_vm0, %v44_v45  ;;  %4454 = vmatpush1.bf16.msra.mxu1 %v5394_v46  ;;  %v685_v56 = vld [vmem:[%s6227_s3 + $0x30] sm:$0xff]  ;;  %v47_v57 = vld [vmem:[%s6224_s0 + $0x20] sm:$0xff]  ;;  %v48_v60 = vld [vmem:[%s6224_s0 + $0x28] sm:$0xff] }
  0x1f   :  { %314 = vmatprep.mubr.f32.mxu0 %v5186_v0  ;;  %4046 = vmatmul.mubr.msk.f32.gmra.mrb[2].mxu1 %vm102_vm0, %v67_v47  ;;  %v5441_v58 = vpack.c.bf16 %v685_v56, %v683_v53  ;;  %v71_v61 = vld [vmem:[%s6224_s0 + $0xe0] sm:$0xff]  ;;  %v49_v62 = vld [vmem:[%s6224_s0 + $0x30] sm:$0xff]  ;;  %v72_v63 = vld [vmem:[%s6224_s0 + $0xe8] sm:$0xff] }
  0x20   :  { %452 = vmatprep.mubr.f32.mxu1 %v5186_v0  ;;  %4456 = vmatprep.subr.bf16.mxu1 %v5432_v55  ;;  %v50_v17 = vld [vmem:[%s6224_s0 + $0x38] sm:$0xff]  ;;  %v73_v18 = vld [vmem:[%s6224_s0 + $0xf0] sm:$0xff]  ;;  %v51_v19 = vld [vmem:[%s6224_s0 + $0x40] sm:$0xff] }
  0x21   :  { %v74_v20 = vld [vmem:[%s6224_s0 + $0xf8] sm:$0xff]  ;;  %v52_v23 = vld [vmem:[%s6224_s0 + $0x48] sm:$0xff]  ;;  %v81_v41 = vld [vmem:[%s6224_s0 + $0x130] sm:$0xff] }
  0x22   :  { %4024 = vmatmul.mubr.msk.f32.gmra.mrb[4].mxu0 %vm102_vm0, %v45_v48  ;;  %4458 = vmatpush1.bf16.msra.mxu1 %v5441_v58  ;;  %v78_v34 = vld [vmem:[%s6224_s0 + $0x118] sm:$0xff]  ;;  %v80_v39 = vld [vmem:[%s6224_s0 + $0x128] sm:$0xff]  ;;  %v59_v43 = vld [vmem:[%s6224_s0 + $0x80] sm:$0xff] }
  0x23   :  { %320 = vmatprep.mubr.f32.mxu0 %v5186_v0  ;;  %4047 = vmatmul.mubr.msk.f32.gmra.mrb[4].mxu1 %vm102_vm0, %v68_v49  ;;  %v58_v40 = vld [vmem:[%s6224_s0 + $0x78] sm:$0xff]  ;;  %v60_v45 = vld [vmem:[%s6224_s0 + $0x88] sm:$0xff]  ;;  %v83_v47 = vld [vmem:[%s6224_s0 + $0x140] sm:$0xff] }
  0x24   :  { %458 = vmatprep.mubr.f32.mxu1 %v5186_v0  ;;  %v82_v44 = vld [vmem:[%s6224_s0 + $0x138] sm:$0xff]  ;;  %v61_v48 = vld [vmem:[%s6224_s0 + $0x90] sm:$0xff]  ;;  %v84_v49 = vld [vmem:[%s6224_s0 + $0x148] sm:$0xff] }
  0x25   :  { %v85_v51 = vld [vmem:[%s6224_s0 + $0x150] sm:$0xff]  ;;  %v63_v52 = vld [vmem:[%s6224_s0 + $0xa0] sm:$0xff]  ;;  %v86_v53 = vld [vmem:[%s6224_s0 + $0x158] sm:$0xff] }
  0x26   :  { %4025 = vmatmul.mubr.msk.f32.gmra.mrb[6].mxu0 %vm102_vm0, %v46_v50  ;;  %v62_v50 = vld [vmem:[%s6224_s0 + $0x98] sm:$0xff]  ;;  %v87_v56 = vld [vmem:[%s6224_s0 + $0x160] sm:$0xff] }
  0x27   :  { %326 = vmatprep.mubr.f32.mxu0 %v5186_v0  ;;  %4048 = vmatmul.mubr.msk.f32.gmra.mrb[6].mxu1 %vm102_vm0, %v69_v54  ;;  %v64_v54 = vld [vmem:[%s6224_s0 + $0xa8] sm:$0xff] }
  0x28   :  { %464 = vmatprep.mubr.f32.mxu1 %v5186_v0 }
  0x2a   :  { %4026 = vmatmul.mubr.msk.f32.gmra.mrb[8].mxu0 %vm102_vm0, %v47_v57  ;;  %v65_v57 = vld [vmem:[%s6224_s0 + $0xb0] sm:$0xff] }
  0x2b   :  { %332 = vmatprep.mubr.f32.mxu0 %v5186_v0  ;;  %4049 = vmatmul.mubr.msk.f32.gmra.mrb[8].mxu1 %vm102_vm0, %v70_v59 }
  0x2c   :  { %470 = vmatprep.mubr.f32.mxu1 %v5186_v0 }
  0x2e   :  { %4027 = vmatmul.mubr.msk.f32.gmra.mrb[10].mxu0 %vm102_vm0, %v48_v60 }
  0x2f   :  { %338 = vmatprep.mubr.f32.mxu0 %v5186_v0  ;;  %4050 = vmatmul.mubr.msk.f32.gmra.mrb[10].mxu1 %vm102_vm0, %v71_v61 }
  0x30   :  { %476 = vmatprep.mubr.f32.mxu1 %v5186_v0 }
  0x32   :  { %4028 = vmatmul.mubr.msk.f32.gmra.mrb[12].mxu0 %vm102_vm0, %v49_v62 }
  0x33   :  { %344 = vmatprep.mubr.f32.mxu0 %v5186_v0  ;;  %4051 = vmatmul.mubr.msk.f32.gmra.mrb[12].mxu1 %vm102_vm0, %v72_v63 }
  0x34   :  { %482 = vmatprep.mubr.f32.mxu1 %v5186_v0 }
  0x36   :  { %4029 = vmatmul.mubr.msk.f32.gmra.mrb[14].mxu0 %vm102_vm0, %v50_v17 }
  0x37   :  { %350 = vmatprep.mubr.f32.mxu0 %v5186_v0  ;;  %4052 = vmatmul.mubr.msk.f32.gmra.mrb[14].mxu1 %vm102_vm0, %v73_v18 }
  0x38   :  { %488 = vmatprep.mubr.f32.mxu1 %v5186_v0 }
  0x3a   :  { %4030 = vmatmul.mubr.msk.f32.gmra.mrb[16].mxu0 %vm102_vm0, %v51_v19 }
  0x3b   :  { %356 = vmatprep.mubr.f32.mxu0 %v5186_v0  ;;  %4053 = vmatmul.mubr.msk.f32.gmra.mrb[16].mxu1 %vm102_vm0, %v74_v20 }
  0x3c   :  { %494 = vmatprep.mubr.f32.mxu1 %v5186_v0 }
  0x3e   :  { %4031 = vmatmul.mubr.msk.f32.gmra.mrb[18].mxu0 %vm102_vm0, %v52_v23 }
  0x3f   :  { %362 = vmatprep.mubr.f32.mxu0 %v5186_v0 }
  0xed   :  { %v304_v27 = vpop.f32.mrb[0].mxu0 }
  0xee   :  { %v305_v28 = vadd.f32 %v304_v27, %v5355_v25  ;;  %v306_v29 = vpop.f32.mrb[1].mxu0  ;;  %v75_v27 = vld [vmem:[%s6224_s0 + $0x100] sm:$0xff] }
  0xef   :  { %v5363_v30 = vadd.f32 %v306_v29, %v5359_v26  ;;  %4054 = vmatmul.mubr.msk.f32.gmra.mrb[18].mxu1 %vm102_vm0, %v75_v27  ;;  %v76_v29 = vld [vmem:[%s6224_s0 + $0x108] sm:$0xff] }
  0xf0   :  { %573 = vst [vmem:[#allocation2] sm:$0xff] %v305_v28  ;;  %v4068_v31 = vmul.f32 -1.442695, %v305_v28  ;;  %v53_v28 = vld [vmem:[%s6224_s0 + $0x50] sm:$0xff]  ;;  %500 = vmatprep.mubr.f32.mxu1 %v5186_v0 }
  0xf1   :  { %574 = vst [vmem:[#allocation2 + $0x8] sm:$0xff] %v5363_v30  ;;  %4032 = vmatmul.mubr.msk.f32.gmra.mrb[20].mxu0 %vm102_vm0, %v53_v28  ;;  %v4069_v59 = vmul.f32 -1.442695, %v5363_v30 }
  0xf2   :  { %4955 = vpow2.f32 %v4068_v31  ;;  %368 = vmatprep.mubr.f32.mxu0 %v5186_v0  ;;  %v54_v31 = vld [vmem:[%s6224_s0 + $0x58] sm:$0xff] }
  0xf3   :  { %4957 = vtanh.f32 %v5363_v30  ;;  %4055 = vmatmul.mubr.msk.f32.gmra.mrb[20].mxu1 %vm102_vm0, %v76_v29  ;;  %v442_v30 = vpop.f32.mrb[0].mxu1 }
  0xf4   :  { %506 = vmatprep.mubr.f32.mxu1 %v5186_v0  ;;  %v443_v29 = vadd.f32 %v442_v30, %v5355_v25 }
  0xf5   :  { %4033 = vmatmul.mubr.msk.f32.gmra.mrb[22].mxu0 %vm102_vm0, %v54_v31  ;;  %v444_v31 = vpop.f32.mrb[1].mxu1 }
  0xf6   :  { %374 = vmatprep.mubr.f32.mxu0 %v5186_v0  ;;  %619 = vst [vmem:[#allocation2 + $0x170] sm:$0xff] %v443_v29 }
  0xfc   :  { %v4956_v32 = vpop.eup %4955 }
  0xfd   :  { %v701_v33 = vadd.f32 1.0, %v4956_v32  ;;  %v4958_v35 = vpop.eup %4957  ;;  %v77_v32 = vld [vmem:[%s6224_s0 + $0x110] sm:$0xff] }
  0xfe   :  { %4056 = vmatmul.mubr.msk.f32.gmra.mrb[22].mxu1 %vm102_vm0, %v77_v32  ;;  %v445_v32 = vadd.f32 %v444_v31, %v5359_v26 }
  0xff   :  { %4959 = vrcp.f32 %v701_v33  ;;  %v55_v33 = vld [vmem:[%s6224_s0 + $0x60] sm:$0xff]  ;;  %512 = vmatprep.mubr.f32.mxu1 %v5186_v0 }
 0x100   :  { %4034 = vmatmul.mubr.msk.f32.gmra.mrb[24].mxu0 %vm102_vm0, %v55_v33  ;;  %4961 = vpow2.f32 %v4069_v59  ;;  %620 = vst [vmem:[#allocation2 + $0x178] sm:$0xff] %v445_v32 }
 0x101   :  { %380 = vmatprep.mubr.f32.mxu0 %v5186_v0 }
 0x102   :  { %4057 = vmatmul.mubr.msk.f32.gmra.mrb[24].mxu1 %vm102_vm0, %v78_v34 }
 0x103   :  { %518 = vmatprep.mubr.f32.mxu1 %v5186_v0 }
 0x109   :  { %v5367_v36 = vpop.eup %4959 }
 0x10a   :  { %v709_v37 = vmul.f32 %v5367_v36, %v4958_v35  ;;  %v56_v35 = vld [vmem:[%s6224_s0 + $0x68] sm:$0xff]  ;;  %v4962_v60 = vpop.eup %4961  ;;  %v708_v62 = vmul.f32 0.0, %v5367_v36  ;;  %v310_v36 = vpop.f32.mrb[2].mxu0 }
 0x10b   :  { %4035 = vmatmul.mubr.msk.f32.gmra.mrb[26].mxu0 %vm102_vm0, %v56_v35  ;;  %v702_v61 = vadd.f32 1.0, %v4962_v60  ;;  %v311_v33 = vadd.f32 %v310_v36, %v5355_v25  ;;  %v312_v34 = vpop.f32.mrb[3].mxu0 }
 0x10c   :  { %711 = vrot.lane.b32.xlu0 %v709_v37, %s5187_s2  ;;  %v79_v37 = vld [vmem:[%s6224_s0 + $0x120] sm:$0xff]  ;;  %386 = vmatprep.mubr.f32.mxu0 %v5186_v0  ;;  %v313_v35 = vadd.f32 %v312_v34, %v5359_v26 }
 0x10d   :  { %4058 = vmatmul.mubr.msk.f32.gmra.mrb[26].mxu1 %vm102_vm0, %v79_v37  ;;  %4963 = vrcp.f32 %v702_v61  ;;  %575 = vst [vmem:[#allocation2 + $0x10] sm:$0xff] %v311_v33  ;;  %v448_v37 = vpop.f32.mrb[2].mxu1 }
 0x10e   :  { %524 = vmatprep.mubr.f32.mxu1 %v5186_v0  ;;  %576 = vst [vmem:[#allocation2 + $0x18] sm:$0xff] %v313_v35 }
 0x110   :  { %718 = vrot.lane.b32.xlu0 %v4067_v38, %s5187_s2  ;;  %v57_v38 = vld [vmem:[%s6224_s0 + $0x70] sm:$0xff] }
 0x111   :  { %4036 = vmatmul.mubr.msk.f32.gmra.mrb[28].mxu0 %vm102_vm0, %v57_v38  ;;  %4059 = vmatmul.mubr.msk.f32.gmra.mrb[28].mxu1 %vm102_vm0, %v80_v39  ;;  %v449_v38 = vadd.f32 %v448_v37, %v5355_v25  ;;  %v450_v39 = vpop.f32.mrb[3].mxu1 }
 0x112   :  { %392 = vmatprep.mubr.f32.mxu0 %v5186_v0  ;;  %530 = vmatprep.mubr.f32.mxu1 %v5186_v0 }
 0x113   :  { %621 = vst [vmem:[#allocation2 + $0x180] sm:$0xff] %v449_v38 }
 0x115   :  { %4037 = vmatmul.mubr.msk.f32.gmra.mrb[30].mxu0 %vm102_vm0, %v58_v40  ;;  %4060 = vmatmul.mubr.msk.f32.gmra.mrb[30].mxu1 %vm102_vm0, %v81_v41  ;;  %v316_v40 = vpop.f32.mrb[4].mxu0  ;;  %v451_v41 = vadd.f32 %v450_v39, %v5359_v26 }
 0x116   :  { %398 = vmatprep.mubr.f32.mxu0 %v5186_v0  ;;  %536 = vmatprep.mubr.f32.mxu1 %v5186_v0 }
 0x117   :  { %v4964_v20 = vpop.eup %4963  ;;  %622 = vst [vmem:[#allocation2 + $0x188] sm:$0xff] %v451_v41 }
 0x119   :  { %4038 = vmatmul.mubr.msk.f32.gmra.mrb[32].mxu0 %vm102_vm0, %v59_v43  ;;  %4061 = vmatmul.mubr.msk.f32.gmra.mrb[32].mxu1 %vm102_vm0, %v82_v44  ;;  %v317_v43 = vadd.f32 %v316_v40, %v5355_v25  ;;  %v318_v44 = vpop.f32.mrb[5].mxu0 }
 0x11a   :  { %404 = vmatprep.mubr.f32.mxu0 %v5186_v0  ;;  %542 = vmatprep.mubr.f32.mxu1 %v5186_v0 }
 0x11b   :  { %577 = vst [vmem:[#allocation2 + $0x20] sm:$0xff] %v317_v43 }
 0x11d   :  { %4039 = vmatmul.mubr.msk.f32.gmra.mrb[34].mxu0 %vm102_vm0, %v60_v45  ;;  %4062 = vmatmul.mubr.msk.f32.gmra.mrb[34].mxu1 %vm102_vm0, %v83_v47  ;;  %v319_v45 = vadd.f32 %v318_v44, %v5359_v26  ;;  %v454_v47 = vpop.f32.mrb[4].mxu1 }
 0x11e   :  { %410 = vmatprep.mubr.f32.mxu0 %v5186_v0  ;;  %548 = vmatprep.mubr.f32.mxu1 %v5186_v0 }
 0x11f   :  { %578 = vst [vmem:[#allocation2 + $0x28] sm:$0xff] %v319_v45 }
 0x121   :  { %4040 = vmatmul.mubr.msk.f32.gmra.mrb[36].mxu0 %vm102_vm0, %v61_v48  ;;  %4063 = vmatmul.mubr.msk.f32.gmra.mrb[36].mxu1 %vm102_vm0, %v84_v49  ;;  %v455_v48 = vadd.f32 %v454_v47, %v5355_v25  ;;  %v456_v49 = vpop.f32.mrb[5].mxu1 }
 0x122   :  { %416 = vmatprep.mubr.f32.mxu0 %v5186_v0  ;;  %554 = vmatprep.mubr.f32.mxu1 %v5186_v0 }
 0x123   :  { %623 = vst [vmem:[#allocation2 + $0x190] sm:$0xff] %v455_v48 }
 0x125   :  { %4041 = vmatmul.mubr.msk.f32.gmra.mrb[38].mxu0 %vm102_vm0, %v62_v50  ;;  %4064 = vmatmul.mubr.msk.f32.gmra.mrb[38].mxu1 %vm102_vm0, %v85_v51  ;;  %v322_v50 = vpop.f32.mrb[6].mxu0  ;;  %v457_v51 = vadd.f32 %v456_v49, %v5359_v26 }
 0x126   :  { %422 = vmatprep.mubr.f32.mxu0 %v5186_v0  ;;  %560 = vmatprep.mubr.f32.mxu1 %v5186_v0 }
 0x127   :  { %624 = vst [vmem:[#allocation2 + $0x198] sm:$0xff] %v457_v51 }
 0x129   :  { %4042 = vmatmul.mubr.msk.f32.gmra.mrb[40].mxu0 %vm102_vm0, %v63_v52  ;;  %4065 = vmatmul.mubr.msk.f32.gmra.mrb[40].mxu1 %vm102_vm0, %v86_v53  ;;  %v323_v52 = vadd.f32 %v322_v50, %v5355_v25  ;;  %v324_v53 = vpop.f32.mrb[7].mxu0 }
 0x12a   :  { %428 = vmatprep.mubr.f32.mxu0 %v5186_v0  ;;  %566 = vmatprep.mubr.f32.mxu1 %v5186_v0  ;;  %v328_v60 = vpop.f32.mrb[8].mxu0 }
 0x12b   :  { %579 = vst [vmem:[#allocation2 + $0x30] sm:$0xff] %v323_v52 }
 0x12d   :  { %4043 = vmatmul.mubr.msk.f32.gmra.mrb[42].mxu0 %vm102_vm0, %v64_v54  ;;  %4066 = vmatmul.mubr.msk.f32.gmra.mrb[42].mxu1 %vm102_vm0, %v87_v56  ;;  %v325_v54 = vadd.f32 %v324_v53, %v5359_v26  ;;  %v460_v56 = vpop.f32.mrb[6].mxu1 }
 0x12e   :  { %434 = vmatprep.mubr.f32.mxu0 %v5186_v0  ;;  %804 = vmatprep.mubr.f32.mxu1 %v5186_v0  ;;  %v462_v59 = vpop.f32.mrb[7].mxu1 }
 0x12f   :  { %580 = vst [vmem:[#allocation2 + $0x38] sm:$0xff] %v325_v54  ;;  %v463_v61 = vadd.f32 %v462_v59, %v5359_v26 }
 0x131   :  { %4044 = vmatmul.mubr.msk.f32.gmra.mrb[44].mxu0 %vm102_vm0, %v65_v57  ;;  %v461_v57 = vadd.f32 %v460_v56, %v5355_v25  ;;  %626 = vst [vmem:[#allocation2 + $0x1a8] sm:$0xff] %v463_v61 }
 0x133   :  { %625 = vst [vmem:[#allocation2 + $0x1a0] sm:$0xff] %v461_v57 }
 0x17e   :  { %v712_v63 = vpop.permute.xlu0 %711 }
 0x17f   :  { %v714_v17 = vadd.f32 %v712_v63, %v708_v62  ;;  %v329_v62 = vadd.f32 %v328_v60, %v5355_v25  ;;  %v330_v63 = vpop.f32.mrb[9].mxu0 }
 0x181   :  { %4965 = vtanh.f32 %v714_v17  ;;  %581 = vst [vmem:[#allocation2 + $0x40] sm:$0xff] %v329_v62 }
 0x182   :  { %v719_v18 = vpop.permute.xlu0 %718 }
 0x183   :  { %v5630_v19 = vmul.f32 %v719_v18, %v714_v17   ;;  %v331_v17 = vadd.f32 %v330_v63, %v5359_v26 }
 0x185   :  { %582 = vst [vmem:[#allocation2 + $0x48] sm:$0xff] %v331_v17 }
 0x18b   :  { %v4966_v23 = vpop.eup %4965 }
 0x18c   :  { %v716_v27 = vmul.f32 %v4966_v23, %v4964_v20 }
 0x18e   :  { %v5632_v28 = vmul.f32 %v719_v18, %v716_v27   ;;  %v466_v18 = vpop.f32.mrb[8].mxu1  ;;  %v334_v27 = vpop.f32.mrb[10].mxu0 }
 0x18f   :  { %v467_v20 = vadd.f32 %v466_v18, %v5355_v25  ;;  %v468_v23 = vpop.f32.mrb[9].mxu1  ;;  %v335_v29 = vadd.f32 %v334_v27, %v5355_v25  ;;  %v336_v31 = vpop.f32.mrb[11].mxu0 }
 0x190   :  { %735 = vrot.lane.b32.xlu1 %v5632_v28, %s5187_s2  ;;  %v469_v30 = vadd.f32 %v468_v23, %v5359_v26  ;;  %v337_v36 = vadd.f32 %v336_v31, %v5359_v26  ;;  %v472_v32 = vpop.f32.mrb[10].mxu1  ;;  %v340_v35 = vpop.f32.mrb[12].mxu0 }
 0x191   :  { %627 = vst [vmem:[#allocation2 + $0x1b0] sm:$0xff] %v467_v20  ;;  %583 = vst [vmem:[#allocation2 + $0x50] sm:$0xff] %v335_v29  ;;  %v473_v33 = vadd.f32 %v472_v32, %v5355_v25  ;;  %v474_v34 = vpop.f32.mrb[11].mxu1  ;;  %v341_v38 = vadd.f32 %v340_v35, %v5355_v25  ;;  %v342_v39 = vpop.f32.mrb[13].mxu0 }
 0x192   :  { %628 = vst [vmem:[#allocation2 + $0x1b8] sm:$0xff] %v469_v30  ;;  %584 = vst [vmem:[#allocation2 + $0x58] sm:$0xff] %v337_v36  ;;  %v475_v37 = vadd.f32 %v474_v34, %v5359_v26  ;;  %v343_v40 = vadd.f32 %v342_v39, %v5359_v26  ;;  %v478_v41 = vpop.f32.mrb[12].mxu1  ;;  %v346_v45 = vpop.f32.mrb[14].mxu0 }
 0x193   :  { %629 = vst [vmem:[#allocation2 + $0x1c0] sm:$0xff] %v473_v33  ;;  %585 = vst [vmem:[#allocation2 + $0x60] sm:$0xff] %v341_v38  ;;  %v479_v43 = vadd.f32 %v478_v41, %v5355_v25  ;;  %v480_v44 = vpop.f32.mrb[13].mxu1  ;;  %v347_v48 = vadd.f32 %v346_v45, %v5355_v25  ;;  %v348_v49 = vpop.f32.mrb[15].mxu0 }
 0x194   :  { %630 = vst [vmem:[#allocation2 + $0x1c8] sm:$0xff] %v475_v37  ;;  %586 = vst [vmem:[#allocation2 + $0x68] sm:$0xff] %v343_v40  ;;  %v481_v47 = vadd.f32 %v480_v44, %v5359_v26  ;;  %v349_v50 = vadd.f32 %v348_v49, %v5359_v26  ;;  %v484_v51 = vpop.f32.mrb[14].mxu1  ;;  %v352_v54 = vpop.f32.mrb[16].mxu0 }
 0x195   :  { %631 = vst [vmem:[#allocation2 + $0x1d0] sm:$0xff] %v479_v43  ;;  %587 = vst [vmem:[#allocation2 + $0x70] sm:$0xff] %v347_v48  ;;  %v485_v52 = vadd.f32 %v484_v51, %v5355_v25  ;;  %v486_v53 = vpop.f32.mrb[15].mxu1  ;;  %v353_v59 = vadd.f32 %v352_v54, %v5355_v25  ;;  %v354_v60 = vpop.f32.mrb[17].mxu0 }
 0x196   :  { %632 = vst [vmem:[#allocation2 + $0x1d8] sm:$0xff] %v481_v47  ;;  %588 = vst [vmem:[#allocation2 + $0x78] sm:$0xff] %v349_v50  ;;  %v487_v57 = vadd.f32 %v486_v53, %v5359_v26  ;;  %v355_v61 = vadd.f32 %v354_v60, %v5359_v26  ;;  %v490_v62 = vpop.f32.mrb[16].mxu1  ;;  %v358_v18 = vpop.f32.mrb[18].mxu0 }
 0x197   :  { %633 = vst [vmem:[#allocation2 + $0x1e0] sm:$0xff] %v485_v52  ;;  %589 = vst [vmem:[#allocation2 + $0x80] sm:$0xff] %v353_v59  ;;  %v491_v63 = vadd.f32 %v490_v62, %v5355_v25  ;;  %v492_v17 = vpop.f32.mrb[17].mxu1  ;;  %v359_v23 = vadd.f32 %v358_v18, %v5355_v25  ;;  %v360_v27 = vpop.f32.mrb[19].mxu0 }
 0x198   :  { %634 = vst [vmem:[#allocation2 + $0x1e8] sm:$0xff] %v487_v57  ;;  %590 = vst [vmem:[#allocation2 + $0x88] sm:$0xff] %v355_v61  ;;  %v493_v20 = vadd.f32 %v492_v17, %v5359_v26  ;;  %v361_v30 = vadd.f32 %v360_v27, %v5359_v26 }
 0x199   :  { %635 = vst [vmem:[#allocation2 + $0x1f0] sm:$0xff] %v491_v63  ;;  %591 = vst [vmem:[#allocation2 + $0x90] sm:$0xff] %v359_v23 }
 0x19a   :  { %636 = vst [vmem:[#allocation2 + $0x1f8] sm:$0xff] %v493_v20  ;;  %592 = vst [vmem:[#allocation2 + $0x98] sm:$0xff] %v361_v30 }
 0x1c2   :  { %v496_v29 = vpop.f32.mrb[18].mxu1 }
 0x1c3   :  { %v497_v31 = vadd.f32 %v496_v29, %v5355_v25  ;;  %v498_v36 = vpop.f32.mrb[19].mxu1 }
 0x1c4   :  { %v364_v32 = vpop.f32.mrb[20].mxu0  ;;  %v499_v33 = vadd.f32 %v498_v36, %v5359_v26 }
 0x1c5   :  { %v365_v34 = vadd.f32 %v364_v32, %v5355_v25  ;;  %v366_v35 = vpop.f32.mrb[21].mxu0  ;;  %637 = vst [vmem:[#allocation2 + $0x200] sm:$0xff] %v497_v31 }
 0x1c6   :  { %v367_v37 = vadd.f32 %v366_v35, %v5359_v26  ;;  %638 = vst [vmem:[#allocation2 + $0x208] sm:$0xff] %v499_v33  ;;  %v502_v38 = vpop.f32.mrb[20].mxu1 }
 0x1c7   :  { %593 = vst [vmem:[#allocation2 + $0xa0] sm:$0xff] %v365_v34  ;;  %v503_v39 = vadd.f32 %v502_v38, %v5355_v25  ;;  %v504_v40 = vpop.f32.mrb[21].mxu1 }
 0x1c8   :  { %594 = vst [vmem:[#allocation2 + $0xa8] sm:$0xff] %v367_v37  ;;  %v370_v41 = vpop.f32.mrb[22].mxu0  ;;  %v505_v43 = vadd.f32 %v504_v40, %v5359_v26 }
 0x1c9   :  { %v371_v44 = vadd.f32 %v370_v41, %v5355_v25  ;;  %v372_v45 = vpop.f32.mrb[23].mxu0  ;;  %639 = vst [vmem:[#allocation2 + $0x210] sm:$0xff] %v503_v39 }
 0x1ca   :  { %v373_v47 = vadd.f32 %v372_v45, %v5359_v26  ;;  %640 = vst [vmem:[#allocation2 + $0x218] sm:$0xff] %v505_v43 }
 0x1cb   :  { %595 = vst [vmem:[#allocation2 + $0xb0] sm:$0xff] %v371_v44 }
 0x1cc   :  { %596 = vst [vmem:[#allocation2 + $0xb8] sm:$0xff] %v373_v47 }
 0x1d1   :  { %v508_v48 = vpop.f32.mrb[22].mxu1 }
 0x1d2   :  { %v509_v49 = vadd.f32 %v508_v48, %v5355_v25  ;;  %v510_v50 = vpop.f32.mrb[23].mxu1 }
 0x1d3   :  { %v376_v51 = vpop.f32.mrb[24].mxu0  ;;  %v511_v52 = vadd.f32 %v510_v50, %v5359_v26 }
 0x1d4   :  { %v377_v53 = vadd.f32 %v376_v51, %v5355_v25  ;;  %v378_v54 = vpop.f32.mrb[25].mxu0  ;;  %641 = vst [vmem:[#allocation2 + $0x220] sm:$0xff] %v509_v49 }
 0x1d5   :  { %642 = vst [vmem:[#allocation2 + $0x228] sm:$0xff] %v511_v52  ;;  %v514_v57 = vpop.f32.mrb[24].mxu1 }
 0x1d6   :  { %597 = vst [vmem:[#allocation2 + $0xc0] sm:$0xff] %v377_v53  ;;  %v515_v59 = vadd.f32 %v514_v57, %v5355_v25  ;;  %v516_v60 = vpop.f32.mrb[25].mxu1 }
 0x1d7   :  { %v517_v62 = vadd.f32 %v516_v60, %v5359_v26 }
 0x1d8   :  { %643 = vst [vmem:[#allocation2 + $0x230] sm:$0xff] %v515_v59 }
 0x1d9   :  { %644 = vst [vmem:[#allocation2 + $0x238] sm:$0xff] %v517_v62 }
 0x1de   :  { %v382_v61 = vpop.f32.mrb[26].mxu0 }
 0x1df   :  { %v383_v63 = vadd.f32 %v382_v61, %v5355_v25  ;;  %v384_v17 = vpop.f32.mrb[27].mxu0 }
 0x1e0   :  { %v385_v18 = vadd.f32 %v384_v17, %v5359_v26  ;;  %v520_v20 = vpop.f32.mrb[26].mxu1 }
 0x1e1   :  { %599 = vst [vmem:[#allocation2 + $0xd0] sm:$0xff] %v383_v63  ;;  %v521_v23 = vadd.f32 %v520_v20, %v5355_v25  ;;  %v522_v27 = vpop.f32.mrb[27].mxu1 }
 0x1e2   :  { %600 = vst [vmem:[#allocation2 + $0xd8] sm:$0xff] %v385_v18  ;;  %v523_v29 = vadd.f32 %v522_v27, %v5359_v26 }
 0x1e3   :  { %645 = vst [vmem:[#allocation2 + $0x240] sm:$0xff] %v521_v23 }
 0x1e4   :  { %v388_v30 = vpop.f32.mrb[28].mxu0  ;;  %646 = vst [vmem:[#allocation2 + $0x248] sm:$0xff] %v523_v29  ;;  %v526_v33 = vpop.f32.mrb[28].mxu1 }
 0x1e5   :  { %v389_v31 = vadd.f32 %v388_v30, %v5355_v25  ;;  %v390_v36 = vpop.f32.mrb[29].mxu0  ;;  %v527_v34 = vadd.f32 %v526_v33, %v5355_v25  ;;  %v528_v35 = vpop.f32.mrb[29].mxu1 }
 0x1e6   :  { %v391_v32 = vadd.f32 %v390_v36, %v5359_v26  ;;  %v529_v38 = vadd.f32 %v528_v35, %v5359_v26 }
 0x1e7   :  { %601 = vst [vmem:[#allocation2 + $0xe0] sm:$0xff] %v389_v31  ;;  %647 = vst [vmem:[#allocation2 + $0x250] sm:$0xff] %v527_v34 }
 0x1e8   :  { %602 = vst [vmem:[#allocation2 + $0xe8] sm:$0xff] %v391_v32  ;;  %v394_v37 = vpop.f32.mrb[30].mxu0  ;;  %648 = vst [vmem:[#allocation2 + $0x258] sm:$0xff] %v529_v38  ;;  %v532_v43 = vpop.f32.mrb[30].mxu1 }
 0x1e9   :  { %v395_v39 = vadd.f32 %v394_v37, %v5355_v25  ;;  %v396_v40 = vpop.f32.mrb[31].mxu0  ;;  %v533_v44 = vadd.f32 %v532_v43, %v5355_v25  ;;  %v534_v45 = vpop.f32.mrb[31].mxu1 }
 0x1ea   :  { %v397_v41 = vadd.f32 %v396_v40, %v5359_v26  ;;  %v535_v48 = vadd.f32 %v534_v45, %v5359_v26 }
 0x1eb   :  { %603 = vst [vmem:[#allocation2 + $0xf0] sm:$0xff] %v395_v39  ;;  %649 = vst [vmem:[#allocation2 + $0x260] sm:$0xff] %v533_v44 }
 0x1ec   :  { %604 = vst [vmem:[#allocation2 + $0xf8] sm:$0xff] %v397_v41  ;;  %v400_v47 = vpop.f32.mrb[32].mxu0  ;;  %650 = vst [vmem:[#allocation2 + $0x268] sm:$0xff] %v535_v48  ;;  %v538_v52 = vpop.f32.mrb[32].mxu1 }
 0x1ed   :  { %v401_v49 = vadd.f32 %v400_v47, %v5355_v25  ;;  %v402_v50 = vpop.f32.mrb[33].mxu0  ;;  %v539_v53 = vadd.f32 %v538_v52, %v5355_v25 }
 0x1ee   :  { %v403_v51 = vadd.f32 %v402_v50, %v5359_v26 }
 0x1ef   :  { %605 = vst [vmem:[#allocation2 + $0x100] sm:$0xff] %v401_v49  ;;  %651 = vst [vmem:[#allocation2 + $0x270] sm:$0xff] %v539_v53 }
 0x1f0   :  { %606 = vst [vmem:[#allocation2 + $0x108] sm:$0xff] %v403_v51 }
 0x202   :  { %v736_v56 = vpop.permute.xlu1 %735 }
 0x203   :  { %4070 = vmatmul.mubr.msk.f32.vlgmr.msra.gmra.mrb[44].mxu1 %vm737_vm2, %v736_v56  ;;  %v379_v56 = vadd.f32 %v378_v54, %v5359_v26  ;;  %v540_v54 = vpop.f32.mrb[33].mxu1 }
 0x204   :  { %v541_v57 = vadd.f32 %v540_v54, %v5359_v26  ;;  %v544_v62 = vpop.f32.mrb[34].mxu1 }
 0x205   :  { %598 = vst [vmem:[#allocation2 + $0xc8] sm:$0xff] %v379_v56  ;;  %v406_v56 = vpop.f32.mrb[34].mxu0  ;;  %v545_v63 = vadd.f32 %v544_v62, %v5355_v25  ;;  %v546_v17 = vpop.f32.mrb[35].mxu1 }
 0x206   :  { %v407_v59 = vadd.f32 %v406_v56, %v5355_v25  ;;  %v408_v60 = vpop.f32.mrb[35].mxu0  ;;  %652 = vst [vmem:[#allocation2 + $0x278] sm:$0xff] %v541_v57  ;;  %v547_v20 = vadd.f32 %v546_v17, %v5359_v26  ;;  %v550_v29 = vpop.f32.mrb[36].mxu1 }
 0x207   :  { %v409_v61 = vadd.f32 %v408_v60, %v5359_v26  ;;  %v412_v18 = vpop.f32.mrb[36].mxu0  ;;  %653 = vst [vmem:[#allocation2 + $0x280] sm:$0xff] %v545_v63  ;;  %v551_v31 = vadd.f32 %v550_v29, %v5355_v25  ;;  %v552_v36 = vpop.f32.mrb[37].mxu1 }
 0x208   :  { %607 = vst [vmem:[#allocation2 + $0x110] sm:$0xff] %v407_v59  ;;  %v413_v23 = vadd.f32 %v412_v18, %v5355_v25  ;;  %v414_v27 = vpop.f32.mrb[37].mxu0  ;;  %654 = vst [vmem:[#allocation2 + $0x288] sm:$0xff] %v547_v20  ;;  %v553_v33 = vadd.f32 %v552_v36, %v5359_v26  ;;  %v556_v38 = vpop.f32.mrb[38].mxu1  ;;  %v687_v20 = vld [vmem:[%s6228_s4] sm:$0x3] }
 0x209   :  { %608 = vst [vmem:[#allocation2 + $0x118] sm:$0xff] %v409_v61  ;;  %v415_v30 = vadd.f32 %v414_v27, %v5359_v26  ;;  %v418_v32 = vpop.f32.mrb[38].mxu0  ;;  %655 = vst [vmem:[#allocation2 + $0x290] sm:$0xff] %v551_v31  ;;  %v557_v39 = vadd.f32 %v556_v38, %v5355_v25  ;;  %v558_v40 = vpop.f32.mrb[39].mxu1  ;;  %v5734_v27 = vrot.slane %v687_v20, %v98_v24  ;;  %v5738_v31 = vmov 0.0   ;;  %s5750_s4 = smov 0  }
 0x20a   :  { %609 = vst [vmem:[#allocation2 + $0x120] sm:$0xff] %v413_v23  ;;  %v419_v34 = vadd.f32 %v418_v32, %v5355_v25  ;;  %v420_v35 = vpop.f32.mrb[39].mxu0  ;;  %656 = vst [vmem:[#allocation2 + $0x298] sm:$0xff] %v553_v33  ;;  %v559_v43 = vadd.f32 %v558_v40, %v5359_v26  ;;  %v562_v48 = vpop.f32.mrb[40].mxu1  ;;  %v5730_v23 = vrot.slane %v687_v20, %v94_v22 }
 0x20b   :  { %610 = vst [vmem:[#allocation2 + $0x128] sm:$0xff] %v415_v30  ;;  %v421_v37 = vadd.f32 %v420_v35, %v5359_v26  ;;  %v424_v41 = vpop.f32.mrb[40].mxu0  ;;  %657 = vst [vmem:[#allocation2 + $0x2a0] sm:$0xff] %v557_v39  ;;  %v563_v49 = vadd.f32 %v562_v48, %v5355_v25  ;;  %v564_v50 = vpop.f32.mrb[41].mxu1 }
 0x20c   :  { %611 = vst [vmem:[#allocation2 + $0x130] sm:$0xff] %v419_v34  ;;  %v425_v44 = vadd.f32 %v424_v41, %v5355_v25  ;;  %v426_v45 = vpop.f32.mrb[41].mxu0  ;;  %658 = vst [vmem:[#allocation2 + $0x2a8] sm:$0xff] %v559_v43  ;;  %v565_v52 = vadd.f32 %v564_v50, %v5359_v26  ;;  %v568_v57 = vpop.f32.mrb[42].mxu1 }
 0x20d   :  { %612 = vst [vmem:[#allocation2 + $0x138] sm:$0xff] %v421_v37  ;;  %v427_v47 = vadd.f32 %v426_v45, %v5359_v26  ;;  %v430_v51 = vpop.f32.mrb[42].mxu0  ;;  %659 = vst [vmem:[#allocation2 + $0x2b0] sm:$0xff] %v563_v49  ;;  %v569_v59 = vadd.f32 %v568_v57, %v5355_v25  ;;  %v570_v60 = vpop.f32.mrb[43].mxu1 }
 0x20e   :  { %613 = vst [vmem:[#allocation2 + $0x140] sm:$0xff] %v425_v44  ;;  %v431_v53 = vadd.f32 %v430_v51, %v5355_v25  ;;  %v432_v54 = vpop.f32.mrb[43].mxu0  ;;  %660 = vst [vmem:[#allocation2 + $0x2b8] sm:$0xff] %v565_v52  ;;  %v571_v62 = vadd.f32 %v570_v60, %v5359_v26 }
 0x20f   :  { %614 = vst [vmem:[#allocation2 + $0x148] sm:$0xff] %v427_v47  ;;  %v433_v56 = vadd.f32 %v432_v54, %v5359_v26  ;;  %v436_v61 = vpop.f32.mrb[44].mxu0  ;;  %661 = vst [vmem:[#allocation2 + $0x2c0] sm:$0xff] %v569_v59 }
 0x210   :  { %615 = vst [vmem:[#allocation2 + $0x150] sm:$0xff] %v431_v53  ;;  %v437_v63 = vadd.f32 %v436_v61, %v5355_v25  ;;  %v438_v17 = vpop.f32.mrb[45].mxu0  ;;  %662 = vst [vmem:[#allocation2 + $0x2c8] sm:$0xff] %v571_v62 }
 0x211   :  { %616 = vst [vmem:[#allocation2 + $0x158] sm:$0xff] %v433_v56  ;;  %v439_v18 = vadd.f32 %v438_v17, %v5359_v26 }
 0x212   :  { %617 = vst [vmem:[#allocation2 + $0x160] sm:$0xff] %v437_v63 }
 0x213   :  { %618 = vst [vmem:[#allocation2 + $0x168] sm:$0xff] %v439_v18 }
 0x2d6   :  { %v806_v25 = vpop.f32.mrb[44].mxu1 }
 0x2d7   :  { %v807_v30 = vadd.f32 %v806_v25, %v5730_v23   ;;  %v808_v29 = vpop.f32.mrb[45].mxu1 }
 0x2d8   :  { %v809_v26 = vadd.f32 %v808_v29, %v5734_v27  }
 0x2d9 LB: > { %v5766_v21 = vpack.c.bf16 %v5273_v4, %v5263_v2  ;;  %v5770_v22 = vpack.c.bf16 %v5268_v3, %v5258_v1  ;;  %v5774_v24 = vpack.c.bf16 %v5293_v8, %v5283_v6  ;;  %s5188_s13 = smov 64   ;;  %v5781_v36 = vpack.c.bf16 %v5288_v7, %v5278_v5  ;;  %s5814_s14 = smul.u32 88, %s5181_s4  ;;  %s5181_s4 = sphi %s5750_s4, %s816_s4   ;;  %v5177_v28 = vphi %v5632_v28, %v6240_v28   ;;  %v5173_v19 = vphi %v5630_v19, %v6239_v19   ;;  %v5169_v30 = vphi %v807_v30, %v6238_v30   ;;  %v5165_v26 = vphi %v809_v26, %v6237_v26   ;;  %v5161_v31 = vphi %v5738_v31, %v6236_v31  }
 0x2da   : > { %835 = vrot.lane.b32.xlu0 %v5177_v28, %s5188_s13  ;;  %v5189_v32 = vmov 0.0   ;;  %v5787_v33 = vpack.c.bf16 %v5313_v12, %v5303_v10  ;;  %v5792_v28 = vpack.c.bf16 %v5308_v11, %v5298_v9  ;;  %v5797_v35 = vpack.c.bf16 %v5333_v16, %v5323_v14  ;;  %s4078_s19 = smul.u32 352, %s5181_s4  ;;  %s5192_s20 = smov 32  }
 0x2db   : > { %4460 = vmatprep.subr.bf16.mxu0 %v5766_v21  ;;  %904 = vmatprep.mubr.f32.mxu0 %v5189_v32  ;;  %v5802_v37 = vpack.c.bf16 %v5328_v15, %v5318_v13  ;;  %vm837_vm3 = vcmask 523264   ;;  %s4216_s15 = sadd.s32 8, %s5814_s14  ;;  %v5190_v60 = vmov 0.0|0.0   ;;  %vm5191_vm4 = vmmov 0   ;;  %s4219_s21 = sadd.s32 16, %s5814_s14 }
 0x2dc   : > { %4462 = vmatpush1.bf16.msra.mxu0 %v5770_v22  ;;  %v6233_v34 = vmov %v5792_v28  ;;  %s825_s16 = sshra.s32 %s4216_s15, 3  ;;  %s5819_s3 = scalar_lea.vmem [#allocation3], %s4078_s19  ;;  %4483 = vmatprep.subr.bf16.mxu1 %v5190_v60 }
 0x2dd   : > { %4464 = vmatprep.subr.bf16.mxu0 %v5774_v24  ;;  %s4217_s17 = sshll.u32 %s825_s16, 4  ;;  %v1013_v56 = vld [vmem:[%s5819_s3] sm:$0xff]  ;;  %v1014_v57 = vld [vmem:[%s5819_s3 + $0x8] sm:$0xff]  ;;  %v1015_v59 = vld [vmem:[%s5819_s3 + $0x10] sm:$0xff]  ;;  %4327 = vmatprep.mubr.msk.f32.mxu1 %vm5191_vm4, %v5189_v32  ;;  %s1094_s22 = sshra.s32 %s4219_s21, 3 }
 0x2de   : > { %s829_s18 = scalar_lea.vmem [#allocation2], %s4217_s17  ;;  %v4484_v61 = vpack.c.bf16 %v1014_v57, %v1013_v56  ;;  %v1016_v62 = vld [vmem:[%s5819_s3 + $0x18] sm:$0xff]  ;;  %s4220_s23 = sshll.u32 %s1094_s22, 4 }
 0x2df   : > { %v830_v39 = vld [vmem:[%s829_s18] sm:$0xff]  ;;  %v831_v47 = vld [vmem:[%s829_s18 + $0x8] sm:$0xff]  ;;  %v4487_v63 = vpack.c.bf16 %v1016_v62, %v1015_v59  ;;  %s1098_s24 = scalar_lea.vmem [#allocation2], %s4220_s23  ;;  %s4222_s6 = sadd.s32 24, %s5814_s14 }
 0x2e0   : > { %4466 = vmatpush1.bf16.msra.mxu0 %v5781_v36  ;;  %v832_v40 = vadd.f32 %v5169_v30, %v830_v39  ;;  %v833_v48 = vadd.f32 %v5165_v26, %v831_v47  ;;  %4485 = vmatpush3.bf16.msra.mxu1 %v4484_v61  ;;  %v1100_v47 = vld [vmem:[%s1098_s24 + $0x8] sm:$0xff]  ;;  %s1359_s25 = sshra.s32 %s4222_s6, 3  ;;  %s4225_s28 = sadd.s32 32, %s5814_s14 }
 0x2e1   : > { %4468 = vmatprep.subr.bf16.mxu0 %v5787_v33  ;;  %4486 = vmatprep.subr.bf16.mxu1 %v5190_v60  ;;  %s4223_s26 = sshll.u32 %s1359_s25, 4  ;;  %s1624_s29 = sshra.s32 %s4225_s28, 3 }
 0x2e2   : > { %s1363_s27 = scalar_lea.vmem [#allocation2], %s4223_s26  ;;  %s4226_s30 = sshll.u32 %s1624_s29, 4 }
 0x2e3   : > { %s1628_s9 = scalar_lea.vmem [#allocation2], %s4226_s30  ;;  %s4228_s10 = sadd.s32 40, %s5814_s14 }
 0x2e4   : > { %4470 = vmatpush1.bf16.msra.mxu0 %v6233_v34  ;;  %4488 = vmatpush3.bf16.msra.mxu1 %v4487_v63  ;;  %s1889_s5 = sshra.s32 %s4228_s10, 3  ;;  %s4231_s0 = sadd.s32 48, %s5814_s14 }
 0x2e5   : > { %4472 = vmatprep.subr.bf16.mxu0 %v5797_v35  ;;  %4490 = vmatprep.subr.bf16.mxu1 %v5766_v21  ;;  %s4229_s1 = sshll.u32 %s1889_s5, 4  ;;  %s2154_s12 = sshra.s32 %s4231_s0, 3 }
 0x2e6   : > { %s1893_s11 = scalar_lea.vmem [#allocation2], %s4229_s1  ;;  %s4232_s15 = sshll.u32 %s2154_s12, 4 }
 0x2e7   : > { %s2158_s16 = scalar_lea.vmem [#allocation2], %s4232_s15  ;;  %s4234_s17 = sadd.s32 56, %s5814_s14 }
 0x2e8   : > { %4474 = vmatpush1.bf16.msra.mxu0 %v5802_v37  ;;  %s2419_s18 = sshra.s32 %s4234_s17, 3  ;;  %s4237_s22 = sadd.s32 64, %s5814_s14 }
 0x2e9   : > { %4476 = vmatprep.subr.bf16.mxu0 %v5383_v42  ;;  %s4235_s19 = sshll.u32 %s2419_s18, 4  ;;  %s2684_s23 = sshra.s32 %s4237_s22, 3 }
 0x2ea   : > { %s2423_s21 = scalar_lea.vmem [#allocation2], %s4235_s19  ;;  %s4240_s25 = sadd.s32 72, %s5814_s14 }
 0x2eb   : > { %s2949_s26 = sshra.s32 %s4240_s25, 3  ;;  %s4243_s29 = sadd.s32 80, %s5814_s14 }
 0x2ec   : > { %s3214_s30 = sshra.s32 %s4243_s29, 3  ;;  %s4246_s5 = sadd.s32 88, %s5814_s14 }
 0x2ed   : > { %s3479_s1 = sshra.s32 %s4246_s5, 3  ;;  %s816_s4 = sadd.s32 1, %s5181_s4  }
 0x2ee   : > { %p813_p8 = scmp.ge.s32.totalorder %s816_s4, 4  }
 0x2ef   :  { %v3844_v12 = vld [vmem:[#allocation3 + $0x580] sm:$0xff] (%p813_p8)  ;;  %v3845_v13 = vld [vmem:[#allocation3 + $0x588] sm:$0xff] (%p813_p8)  ;;  %v3846_v14 = vld [vmem:[#allocation3 + $0x590] sm:$0xff] (%p813_p8)  ;;  %v5193_v15 = vmov (%p813_p8), 0.0|0.0   ;;  %vm5194_vm5 = vmmov (%p813_p8), 0  }
 0x2f0   :  { %v4806_v16 = vpack.c.bf16 (%p813_p8), %v3845_v13, %v3844_v12 }
 0x34c   : > { %v836_v38 = vpop.permute.xlu0 %835 }
 0x34d   : > { %4074 = vmatmul.mubr.msk.f32.vlgmr.msra.gmra.mrb[0].mxu0 %vm837_vm3, %v836_v38 }
 0x34e   : > { %4478 = vmatpush1.bf16.msra.mxu0 %v5394_v46  ;;  %1004 = vmatprep.mubr.f32.mxu0 %v5189_v32 }
 0x34f   : > { %4480 = vmatprep.subr.bf16.mxu0 %v5432_v55 }
 0x352   : > { %4482 = vmatpush1.bf16.msra.mxu0 %v5441_v58 }
 0x353   : > { %4506 = vmatprep.subr.bf16.mxu0 %v5383_v42 }
 0x420   : > { %v906_v41 = vpop.f32.mrb[0].mxu0 }
 0x421   : > { %v911_v43 = vadd.f32 %v906_v41, %v832_v40  ;;  %v908_v44 = vpop.f32.mrb[1].mxu0 }
 0x422   : > { %v912_v49 = vadd.f32 %v908_v44, %v833_v48 }
 0x423   : > { %v4075_v45 = vmul.f32 -1.442695, %v911_v43 }
 0x424   : > { %v4076_v17 = vmul.f32 -1.442695, %v912_v49 }
 0x425   : > { %4967 = vpow2.f32 %v4075_v45  ;;  %v1099_v45 = vld [vmem:[%s1098_s24] sm:$0xff]  ;;  %s4238_s24 = sshll.u32 %s2684_s23, 4 }
 0x426   : > { %4969 = vtanh.f32 %v912_v49  ;;  %s2688_s6 = scalar_lea.vmem [#allocation2], %s4238_s24 }
 0x42f   : > { %v4968_v50 = vpop.eup %4967 }
 0x430   : > { %v919_v51 = vadd.f32 1.0, %v4968_v50  ;;  %v4970_v52 = vpop.eup %4969 }
 0x432   : > { %4971 = vrcp.f32 %v919_v51 }
 0x433   : > { %4973 = vpow2.f32 %v4076_v17 }
 0x43c   : > { %v4972_v53 = vpop.eup %4971 }
 0x43d   : > { %v927_v54 = vmul.f32 %v4972_v53, %v4970_v52  ;;  %v4974_v18 = vpop.eup %4973  ;;  %v926_v25 = vmul.f32 %v5173_v19, %v4972_v53 }
 0x43e   : > { %v920_v20 = vadd.f32 1.0, %v4974_v18 }
 0x43f   : > { %929 = vrot.lane.b32.xlu0 %v927_v54, %s5188_s13 }
 0x440   : > { %4975 = vrcp.f32 %v920_v20 }
 0x44a   : > { %v4976_v26 = vpop.eup %4975 }
 0x4b1   : > { %v930_v30 = vpop.permute.xlu0 %929 }
 0x4b2   : > { %v932_v29 = vadd.f32 %v930_v30, %v926_v25 }
 0x4b4   : > { %4977 = vtanh.f32 %v932_v29 }
 0x4be   : > { %v4978_v28 = vpop.eup %4977 }
 0x4bf   : > { %v934_v38 = vmul.f32 %v4978_v28, %v4976_v26 }
 0x4c1   : > { %1017 = vrot.lane.b32.xlu1 %v934_v38, %s5192_s20 }
 0x4c5   : > { %936 = vrot.lane.b32.xlu1 %v934_v38, %s5188_s13 }
 0x533   : > { %v1018_v39 = vpop.permute.xlu1 %1017 }
 0x534   : > { %4328 = vmatmul.mubr.msk.f32.vlgmr.msra.gmra.mrb[0].mxu1 %vm737_vm2, %v1018_v39 }
 0x535   : > { %4492 = vmatpush1.bf16.msra.mxu1 %v5770_v22  ;;  %1169 = vmatprep.mubr.f32.mxu1 %v5189_v32 }
 0x536   : > { %4494 = vmatprep.subr.bf16.mxu1 %v5774_v24 }
 0x537   : > { %v937_v19 = vpop.permute.xlu1 %936 }
 0x538   : > { %4077 = vmatmul.mubr.msk.f32.vlgmr.msra.gmra.mrb[2].mxu0 %vm737_vm2, %v937_v19 }
 0x539   : > { %4496 = vmatpush1.bf16.msra.mxu1 %v5781_v36  ;;  %4508 = vmatpush1.bf16.msra.mxu0 %v5394_v46 }
 0x53a   : > { %4498 = vmatprep.subr.bf16.mxu1 %v5787_v33  ;;  %4510 = vmatprep.subr.bf16.mxu0 %v5432_v55 }
 0x53b   : > { %1269 = vmatprep.mubr.f32.mxu0 %v5189_v32 }
 0x53d   : > { %4500 = vmatpush1.bf16.msra.mxu1 %v6233_v34  ;;  %4512 = vmatpush1.bf16.msra.mxu0 %v5441_v58 }
 0x53e   : > { %4502 = vmatprep.subr.bf16.mxu1 %v5797_v35  ;;  %4520 = vmatprep.subr.bf16.mxu0 %v5766_v21 }
 0x541   : > { %4504 = vmatpush1.bf16.msra.mxu1 %v5802_v37 }
 0x542   : > { %4513 = vmatprep.subr.bf16.mxu1 %v5190_v60 }
 0x544   : > { %4083 = vmatmul.mubr.msk.f32.vlgmr.msra.gmra.mrb[2].mxu1 %vm837_vm3, %v937_v19 }
 0x545   : > { %4338 = vmatprep.mubr.msk.f32.mxu1 %vm5191_vm4, %v5189_v32 }
 0x60b   : > { %v1006_v40 = vpop.f32.mrb[2].mxu0 }
 0x60c   : > { %v1008_v41 = vpop.f32.mrb[3].mxu0  ;;  %v1007_v43 = vadd.f32 %v1006_v40, %v5730_v23 }
 0x60d   : > { %v1009_v44 = vadd.f32 %v1008_v41, %v5734_v27 }
 0x60e   : > { %v1101_v48 = vadd.f32 %v1099_v45, %v1007_v43  ;;  %v1365_v45 = vld [vmem:[%s1363_s27 + $0x8] sm:$0xff] }
 0x60f   : > { %v1102_v50 = vadd.f32 %v1100_v47, %v1009_v44  ;;  %v4822_v47 = vadd.f32 %v1365_v45, %v5734_v27 }
 0x617   : > { %v1171_v49 = vpop.f32.mrb[2].mxu1 }
 0x618   : > { %v1176_v51 = vadd.f32 %v1171_v49, %v1101_v48  ;;  %v1173_v52 = vpop.f32.mrb[3].mxu1 }
 0x619   : > { %v1177_v53 = vadd.f32 %v1173_v52, %v1102_v50 }
 0x61a   : > { %v4084_v54 = vmul.f32 -1.442695, %v1176_v51 }
 0x61b   : > { %v4085_v63 = vmul.f32 -1.442695, %v1177_v53 }
 0x61c   : > { %4979 = vpow2.f32 %v4084_v54  ;;  %v4088_v54 = vld [vmem:[%s5819_s3 + $0x20] sm:$0xff] }
 0x61d   : > { %4981 = vtanh.f32 %v1177_v53 }
 0x626   : > { %v4980_v56 = vpop.eup %4979 }
 0x627   : > { %v1184_v57 = vadd.f32 1.0, %v4980_v56  ;;  %v4982_v59 = vpop.eup %4981  ;;  %v4089_v56 = vld [vmem:[%s5819_s3 + $0x28] sm:$0xff] }
 0x629   : > { %4983 = vrcp.f32 %v1184_v57  ;;  %v4514_v57 = vpack.c.bf16 %v4089_v56, %v4088_v54  ;;  %v4103_v56 = vld [vmem:[%s5819_s3 + $0x50] sm:$0xff] }
 0x62a   : > { %4985 = vpow2.f32 %v4085_v63 }
 0x62b   : > { %4515 = vmatpush3.bf16.msra.mxu1 %v4514_v57  ;;  %v4104_v57 = vld [vmem:[%s5819_s3 + $0x58] sm:$0xff] }
 0x62c   : > { %4516 = vmatprep.subr.bf16.mxu1 %v5190_v60 }
 0x633   : > { %v4984_v61 = vpop.eup %4983 }
 0x634   : > { %v1192_v62 = vmul.f32 %v4984_v61, %v4982_v59  ;;  %v4986_v17 = vpop.eup %4985  ;;  %v1191_v20 = vmul.f32 %v4984_v61, %v932_v29  ;;  %v1364_v29 = vld [vmem:[%s1363_s27] sm:$0xff]  ;;  %s4241_s27 = sshll.u32 %s2949_s26, 4 }
 0x635   : > { %v1185_v18 = vadd.f32 1.0, %v4986_v17  ;;  %v4820_v19 = vadd.f32 %v1364_v29, %v5730_v23  ;;  %s2953_s28 = scalar_lea.vmem [#allocation2], %s4241_s27 }
 0x636   : > { %1194 = vrot.lane.b32.xlu0 %v1192_v62, %s5188_s13 }
 0x637   : > { %4987 = vrcp.f32 %v1185_v18 }
 0x641   : > { %v4988_v26 = vpop.eup %4987 }
 0x6a8   : > { %v1195_v25 = vpop.permute.xlu0 %1194 }
 0x6a9   : > { %v1197_v30 = vadd.f32 %v1195_v25, %v1191_v20  ;;  %v4090_v20 = vld [vmem:[%s5819_s3 + $0x30] sm:$0xff]  ;;  %v4091_v25 = vld [vmem:[%s5819_s3 + $0x38] sm:$0xff] }
 0x6ab   : > { %4989 = vtanh.f32 %v1197_v30 }
 0x6b5   : > { %v4990_v28 = vpop.eup %4989 }
 0x6b6   : > { %v5856_v38 = vmul.f32 %v4990_v28, %v4988_v26  ;;  %v4517_v26 = vpack.c.bf16 %v4091_v25, %v4090_v20 }
 0x6b8   : > { %1201 = vrot.lane.b32.xlu1 %v5856_v38, %s5188_s13  ;;  %4518 = vmatpush3.bf16.msra.mxu1 %v4517_v26 }
 0x6b9   : > { %4543 = vmatprep.subr.bf16.mxu1 %v5190_v60 }
 0x72a   : > { %v1202_v39 = vpop.permute.xlu1 %1201 }
 0x72b   : > { %4086 = vmatmul.mubr.msk.f32.vlgmr.msra.gmra.mrb[4].mxu0 %vm737_vm2, %v1202_v39 }
 0x72c   : > { %4522 = vmatpush1.bf16.msra.mxu0 %v5770_v22  ;;  %1434 = vmatprep.mubr.f32.mxu0 %v5189_v32 }
 0x72d   : > { %4524 = vmatprep.subr.bf16.mxu0 %v5774_v24 }
 0x730   : > { %4526 = vmatpush1.bf16.msra.mxu0 %v5781_v36 }
 0x731   : > { %4528 = vmatprep.subr.bf16.mxu0 %v5787_v33 }
 0x734   : > { %4530 = vmatpush1.bf16.msra.mxu0 %v6233_v34 }
 0x735   : > { %4532 = vmatprep.subr.bf16.mxu0 %v5797_v35 }
 0x738   : > { %4534 = vmatpush1.bf16.msra.mxu0 %v5802_v37 }
 0x739   : > { %4536 = vmatprep.subr.bf16.mxu0 %v5383_v42 }
 0x73b   : > { %4096 = vmatmul.mubr.msk.f32.vlgmr.msra.gmra.mrb[4].mxu0 %vm837_vm3, %v1202_v39 }
 0x73c   : > { %4538 = vmatpush1.bf16.msra.mxu0 %v5394_v46  ;;  %1534 = vmatprep.mubr.f32.mxu0 %v5189_v32 }
 0x73d   : > { %4540 = vmatprep.subr.bf16.mxu0 %v5432_v55 }
 0x740   : > { %4542 = vmatpush1.bf16.msra.mxu0 %v5441_v58 }
 0x741   : > { %4550 = vmatprep.subr.bf16.mxu0 %v5766_v21 }
 0x80e   : > { %v1436_v40 = vpop.f32.mrb[4].mxu0 }
 0x80f   : > { %v4821_v41 = vadd.f32 %v4820_v19, %v1436_v40  ;;  %v1438_v43 = vpop.f32.mrb[5].mxu0  ;;  %v4102_v40 = vld [vmem:[%s5819_s3 + $0x48] sm:$0xff] }
 0x810   : > { %v4823_v48 = vadd.f32 %v4822_v47, %v1438_v43  ;;  %v1629_v43 = vld [vmem:[%s1628_s9] sm:$0xff] }
 0x811   : > { %v4097_v44 = vmul.f32 -1.442695, %v4821_v41 }
 0x812   : > { %v4098_v59 = vmul.f32 -1.442695, %v4823_v48 }
 0x813   : > { %4991 = vpow2.f32 %v4097_v44  ;;  %v4824_v44 = vadd.f32 %v1629_v43, %v5730_v23  ;;  %v4116_v43 = vld [vmem:[%s5819_s3 + $0x70] sm:$0xff] }
 0x814   : > { %4993 = vtanh.f32 %v4823_v48 }
 0x81d   : > { %v4992_v49 = vpop.eup %4991 }
 0x81e   : > { %v1449_v50 = vadd.f32 1.0, %v4992_v49  ;;  %v4994_v51 = vpop.eup %4993 }
 0x820   : > { %4995 = vrcp.f32 %v1449_v50  ;;  %v1630_v50 = vld [vmem:[%s1628_s9 + $0x8] sm:$0xff]  ;;  %s4244_s9 = sshll.u32 %s3214_s30, 4 }
 0x821   : > { %4997 = vpow2.f32 %v4098_v59  ;;  %v4547_v59 = vpack.c.bf16 %v4104_v57, %v4103_v56  ;;  %v1895_v56 = vld [vmem:[%s1893_s11 + $0x8] sm:$0xff]  ;;  %s3218_s10 = scalar_lea.vmem [#allocation2], %s4244_s9 }
 0x822   : > { %v4830_v57 = vadd.f32 %v1895_v56, %v5734_v27 }
 0x82a   : > { %v4996_v52 = vpop.eup %4995 }
 0x82b   : > { %v1457_v53 = vmul.f32 %v4996_v52, %v4994_v51  ;;  %v4998_v61 = vpop.eup %4997  ;;  %v1456_v63 = vmul.f32 %v4996_v52, %v1197_v30  ;;  %v4826_v51 = vadd.f32 %v1630_v50, %v5734_v27 }
 0x82c   : > { %v1450_v62 = vadd.f32 1.0, %v4998_v61 }
 0x82d   : > { %1459 = vrot.lane.b32.xlu0 %v1457_v53, %s5188_s13 }
 0x82e   : > { %4999 = vrcp.f32 %v1450_v62 }
 0x838   : > { %v5000_v28 = vpop.eup %4999 }
 0x89f   : > { %v1460_v17 = vpop.permute.xlu0 %1459 }
 0x8a0   : > { %v5883_v18 = vadd.f32 %v1460_v17, %v1456_v63 }
 0x8a2   : > { %5001 = vtanh.f32 %v5883_v18 }
 0x8ac   : > { %v5002_v39 = vpop.eup %5001 }
 0x8ad   : > { %v1464_v29 = vmul.f32 %v5002_v39, %v5000_v28 }
 0x8af   : > { %1466 = vrot.lane.b32.xlu1 %v1464_v29, %s5188_s13 }
 0x8b3   : > { %1282 = vrot.lane.b32.xlu1 %v5856_v38, %s5192_s20  ;;  %v4101_v38 = vld [vmem:[%s5819_s3 + $0x40] sm:$0xff] }
 0x8b4   : > { %v4544_v41 = vpack.c.bf16 %v4102_v40, %v4101_v38  ;;  %v4114_v38 = vld [vmem:[%s5819_s3 + $0x60] sm:$0xff]  ;;  %v4115_v40 = vld [vmem:[%s5819_s3 + $0x68] sm:$0xff] }
 0x921   : > { %v1467_v30 = vpop.permute.xlu1 %1466 }
 0x922   : > { %4099 = vmatmul.mubr.msk.f32.vlgmr.msra.gmra.mrb[6].mxu0 %vm737_vm2, %v1467_v30 }
 0x923   : > { %4552 = vmatpush1.bf16.msra.mxu0 %v5770_v22  ;;  %1699 = vmatprep.mubr.f32.mxu0 %v5189_v32 }
 0x924   : > { %4554 = vmatprep.subr.bf16.mxu0 %v5774_v24 }
 0x925   : > { %v1283_v19 = vpop.permute.xlu1 %1282 }
 0x926   : > { %4339 = vmatmul.mubr.msk.f32.vlgmr.msra.gmra.mrb[0].mxu1 %vm737_vm2, %v1283_v19 }
 0x927   : > { %4556 = vmatpush1.bf16.msra.mxu0 %v5781_v36  ;;  %4349 = vmatprep.mubr.msk.f32.mxu1 %vm5191_vm4, %v5189_v32 }
 0x928   : > { %4558 = vmatprep.subr.bf16.mxu0 %v5787_v33  ;;  %4545 = vmatpush3.bf16.msra.mxu1 %v4544_v41  ;;  %v4574_v41 = vpack.c.bf16 %v4115_v40, %v4114_v38 }
 0x929   : > { %4546 = vmatprep.subr.bf16.mxu1 %v5190_v60 }
 0x92b   : > { %4560 = vmatpush1.bf16.msra.mxu0 %v6233_v34 }
 0x92c   : > { %4562 = vmatprep.subr.bf16.mxu0 %v5797_v35  ;;  %4548 = vmatpush3.bf16.msra.mxu1 %v4547_v59 }
 0x92d   : > { %4566 = vmatprep.subr.bf16.mxu1 %v5383_v42 }
 0x92f   : > { %4564 = vmatpush1.bf16.msra.mxu0 %v5802_v37 }
 0x930   : > { %4596 = vmatprep.subr.bf16.mxu0 %v5383_v42 }
 0x932   : > { %4109 = vmatmul.mubr.msk.f32.vlgmr.msra.gmra.mrb[6].mxu0 %vm837_vm3, %v1467_v30 }
 0x933   : > { %4598 = vmatpush1.bf16.msra.mxu0 %v5394_v46  ;;  %2064 = vmatprep.mubr.f32.mxu0 %v5189_v32 }
 0x934   : > { %4600 = vmatprep.subr.bf16.mxu0 %v5432_v55 }
 0x937   : > { %4602 = vmatpush1.bf16.msra.mxu0 %v5441_v58 }
 0x938   : > { %4610 = vmatprep.subr.bf16.mxu0 %v5766_v21 }
 0xa05   : > { %v1701_v45 = vpop.f32.mrb[6].mxu0 }
 0xa06   : > { %v4825_v47 = vadd.f32 %v4824_v44, %v1701_v45  ;;  %v1703_v48 = vpop.f32.mrb[7].mxu0  ;;  %v4117_v44 = vld [vmem:[%s5819_s3 + $0x78] sm:$0xff] }
 0xa07   : > { %v4827_v52 = vadd.f32 %v4826_v51, %v1703_v48 }
 0xa08   : > { %v4110_v49 = vmul.f32 -1.442695, %v4825_v47  ;;  %v4577_v47 = vpack.c.bf16 %v4117_v44, %v4116_v43 }
 0xa09   : > { %v4111_v17 = vmul.f32 -1.442695, %v4827_v52 }
 0xa0a   : > { %5003 = vpow2.f32 %v4110_v49  ;;  %v1894_v49 = vld [vmem:[%s1893_s11] sm:$0xff]  ;;  %s4247_s11 = sshll.u32 %s3479_s1, 4 }
 0xa0b   : > { %5005 = vtanh.f32 %v4827_v52  ;;  %v4828_v50 = vadd.f32 %v1894_v49, %v5730_v23  ;;  %v2160_v49 = vld [vmem:[%s2158_s16 + $0x8] sm:$0xff]  ;;  %s3483_s0 = scalar_lea.vmem [#allocation2], %s4247_s11 }
 0xa14   : > { %v5004_v53 = vpop.eup %5003 }
 0xa15   : > { %v1714_v54 = vadd.f32 1.0, %v5004_v53  ;;  %v5006_v61 = vpop.eup %5005 }
 0xa17   : > { %5007 = vrcp.f32 %v1714_v54 }
 0xa18   : > { %5009 = vpow2.f32 %v4111_v17 }
 0xa21   : > { %v5008_v62 = vpop.eup %5007 }
 0xa22   : > { %v1722_v63 = vmul.f32 %v5008_v62, %v5006_v61  ;;  %v5010_v20 = vpop.eup %5009  ;;  %v1721_v26 = vmul.f32 %v5008_v62, %v5883_v18 }
 0xa23   : > { %v1715_v25 = vadd.f32 1.0, %v5010_v20 }
 0xa24   : > { %1724 = vrot.lane.b32.xlu0 %v1722_v63, %s5188_s13 }
 0xa25   : > { %5011 = vrcp.f32 %v1715_v25 }
 0xa28   : > { %1547 = vrot.lane.b32.xlu0 %v1464_v29, %s5192_s20 }
 0xa2f   : > { %v5012_v18 = vpop.eup %5011 }
 0xa96   : > { %v1725_v28 = vpop.permute.xlu0 %1724 }
 0xa97   : > { %v5923_v39 = vadd.f32 %v1725_v28, %v1721_v26 }
 0xa99   : > { %5013 = vtanh.f32 %v5923_v39 }
 0xa9a   : > { %v1548_v30 = vpop.permute.xlu0 %1547 }
 0xa9b   : > { %4350 = vmatmul.mubr.msk.f32.vlgmr.msra.gmra.mrb[0].mxu1 %vm737_vm2, %v1548_v30 }
 0xa9c   : > { %4568 = vmatpush1.bf16.msra.mxu1 %v5394_v46  ;;  %1799 = vmatprep.mubr.f32.mxu1 %v5189_v32 }
 0xa9d   : > { %4570 = vmatprep.subr.bf16.mxu1 %v5432_v55 }
 0xaa0   : > { %4572 = vmatpush1.bf16.msra.mxu1 %v5441_v58 }
 0xaa1   : > { %4573 = vmatprep.subr.bf16.mxu1 %v5190_v60 }
 0xaa3   : > { %v5014_v29 = vpop.eup %5013 }
 0xaa4   : > { %v1729_v19 = vmul.f32 %v5014_v29, %v5012_v18 }
 0xaa6   : > { %1812 = vrot.lane.b32.xlu0 %v1729_v19, %s5192_s20  ;;  %1731 = vrot.lane.b32.xlu1 %v1729_v19, %s5188_s13 }
 0xb18   : > { %v1732_v45 = vpop.permute.xlu1 %1731  ;;  %v1813_v48 = vpop.permute.xlu0 %1812 }
 0xb19   : > { %4112 = vmatmul.mubr.msk.f32.vlgmr.msra.gmra.mrb[4].mxu1 %vm737_vm2, %v1732_v45 }
 0xb1a   : > { %4575 = vmatpush3.bf16.msra.mxu1 %v4574_v41  ;;  %4360 = vmatprep.mubr.msk.f32.mxu1 %vm5191_vm4, %v5189_v32 }
 0xb1b   : > { %4576 = vmatprep.subr.bf16.mxu1 %v5190_v60 }
 0xb1e   : > { %4578 = vmatpush3.bf16.msra.mxu1 %v4577_v47 }
 0xb1f   : > { %4580 = vmatprep.subr.bf16.mxu1 %v5766_v21 }
 0xb21   : > { %4361 = vmatmul.mubr.msk.f32.vlgmr.msra.gmra.mrb[0].mxu1 %vm737_vm2, %v1813_v48 }
 0xb22   : > { %4582 = vmatpush1.bf16.msra.mxu1 %v5770_v22  ;;  %1964 = vmatprep.mubr.f32.mxu1 %v5189_v32 }
 0xb23   : > { %4584 = vmatprep.subr.bf16.mxu1 %v5774_v24 }
 0xb26   : > { %4586 = vmatpush1.bf16.msra.mxu1 %v5781_v36 }
 0xb27   : > { %4588 = vmatprep.subr.bf16.mxu1 %v5787_v33 }
 0xb2a   : > { %4590 = vmatpush1.bf16.msra.mxu1 %v6233_v34 }
 0xb2b   : > { %4592 = vmatprep.subr.bf16.mxu1 %v5797_v35 }
 0xb2e   : > { %4594 = vmatpush1.bf16.msra.mxu1 %v5802_v37 }
 0xb2f   : > { %4603 = vmatprep.subr.bf16.mxu1 %v5190_v60 }
 0xb31   : > { %4122 = vmatmul.mubr.msk.f32.vlgmr.msra.gmra.mrb[4].mxu1 %vm837_vm3, %v1732_v45 }
 0xb32   : > { %4371 = vmatprep.mubr.msk.f32.mxu1 %vm5191_vm4, %v5189_v32 }
 0xc04   : > { %v1966_v51 = vpop.f32.mrb[4].mxu1 }
 0xc05   : > { %v4829_v52 = vadd.f32 %v4828_v50, %v1966_v51  ;;  %v1968_v53 = vpop.f32.mrb[5].mxu1  ;;  %v4834_v50 = vadd.f32 %v2160_v49, %v5734_v27 }
 0xc06   : > { %v4831_v59 = vadd.f32 %v4830_v57, %v1968_v53 }
 0xc07   : > { %v4123_v54 = vmul.f32 -1.442695, %v4829_v52 }
 0xc08   : > { %v4124_v25 = vmul.f32 -1.442695, %v4831_v59 }
 0xc09   : > { %5015 = vpow2.f32 %v4123_v54 }
 0xc0a   : > { %5017 = vtanh.f32 %v4831_v59  ;;  %v4127_v59 = vld [vmem:[%s5819_s3 + $0x80] sm:$0xff] }
 0xc13   : > { %v5016_v61 = vpop.eup %5015 }
 0xc14   : > { %v1979_v62 = vadd.f32 1.0, %v5016_v61  ;;  %v5018_v63 = vpop.eup %5017  ;;  %v4128_v61 = vld [vmem:[%s5819_s3 + $0x88] sm:$0xff] }
 0xc16   : > { %5019 = vrcp.f32 %v1979_v62  ;;  %v4604_v62 = vpack.c.bf16 %v4128_v61, %v4127_v59  ;;  %v4142_v61 = vld [vmem:[%s5819_s3 + $0xb0] sm:$0xff] }
 0xc17   : > { %5021 = vpow2.f32 %v4124_v25 }
 0xc18   : > { %4605 = vmatpush3.bf16.msra.mxu1 %v4604_v62  ;;  %v4143_v62 = vld [vmem:[%s5819_s3 + $0xb8] sm:$0xff] }
 0xc19   : > { %4606 = vmatprep.subr.bf16.mxu1 %v5190_v60 }
 0xc20   : > { %v5020_v17 = vpop.eup %5019 }
 0xc21   : > { %v1987_v20 = vmul.f32 %v5020_v17, %v5018_v63  ;;  %v5022_v26 = vpop.eup %5021  ;;  %v1986_v30 = vmul.f32 %v5020_v17, %v5923_v39  ;;  %v2159_v39 = vld [vmem:[%s2158_s16] sm:$0xff] }
 0xc22   : > { %v1980_v28 = vadd.f32 1.0, %v5022_v26  ;;  %v4832_v43 = vadd.f32 %v2159_v39, %v5730_v23 }
 0xc23   : > { %1989 = vrot.lane.b32.xlu1 %v1987_v20, %s5188_s13 }
 0xc24   : > { %5023 = vrcp.f32 %v1980_v28 }
 0xc2e   : > { %v5024_v19 = vpop.eup %5023 }
 0xc95   : > { %v1990_v18 = vpop.permute.xlu1 %1989 }
 0xc96   : > { %v1992_v29 = vadd.f32 %v1990_v18, %v1986_v30  ;;  %v4129_v30 = vld [vmem:[%s5819_s3 + $0x90] sm:$0xff]  ;;  %v4130_v18 = vld [vmem:[%s5819_s3 + $0x98] sm:$0xff] }
 0xc98   : > { %5025 = vtanh.f32 %v1992_v29 }
 0xca2   : > { %v5026_v38 = vpop.eup %5025 }
 0xca3   : > { %v5961_v40 = vmul.f32 %v5026_v38, %v5024_v19  ;;  %v4607_v19 = vpack.c.bf16 %v4130_v18, %v4129_v30 }
 0xca5   : > { %1996 = vrot.lane.b32.xlu0 %v5961_v40, %s5188_s13  ;;  %4608 = vmatpush3.bf16.msra.mxu1 %v4607_v19 }
 0xca6   : > { %4633 = vmatprep.subr.bf16.mxu1 %v5190_v60 }
 0xd17   : > { %v1997_v41 = vpop.permute.xlu0 %1996 }
 0xd18   : > { %4125 = vmatmul.mubr.msk.f32.vlgmr.msra.gmra.mrb[8].mxu0 %vm737_vm2, %v1997_v41 }
 0xd19   : > { %4612 = vmatpush1.bf16.msra.mxu0 %v5770_v22  ;;  %2229 = vmatprep.mubr.f32.mxu0 %v5189_v32 }
 0xd1a   : > { %4614 = vmatprep.subr.bf16.mxu0 %v5774_v24 }
 0xd1d   : > { %4616 = vmatpush1.bf16.msra.mxu0 %v5781_v36 }
 0xd1e   : > { %4618 = vmatprep.subr.bf16.mxu0 %v5787_v33 }
 0xd21   : > { %4620 = vmatpush1.bf16.msra.mxu0 %v6233_v34 }
 0xd22   : > { %4622 = vmatprep.subr.bf16.mxu0 %v5797_v35 }
 0xd25   : > { %4624 = vmatpush1.bf16.msra.mxu0 %v5802_v37 }
 0xd26   : > { %4626 = vmatprep.subr.bf16.mxu0 %v5383_v42 }
 0xd28   : > { %4135 = vmatmul.mubr.msk.f32.vlgmr.msra.gmra.mrb[8].mxu0 %vm837_vm3, %v1997_v41 }
 0xd29   : > { %4628 = vmatpush1.bf16.msra.mxu0 %v5394_v46  ;;  %2329 = vmatprep.mubr.f32.mxu0 %v5189_v32 }
 0xd2a   : > { %4630 = vmatprep.subr.bf16.mxu0 %v5432_v55 }
 0xd2d   : > { %4632 = vmatpush1.bf16.msra.mxu0 %v5441_v58 }
 0xd2e   : > { %4640 = vmatprep.subr.bf16.mxu0 %v5766_v21 }
 0xdfb   : > { %v2231_v44 = vpop.f32.mrb[8].mxu0 }
 0xdfc   : > { %v4833_v45 = vadd.f32 %v4832_v43, %v2231_v44  ;;  %v2233_v47 = vpop.f32.mrb[9].mxu0  ;;  %v4141_v44 = vld [vmem:[%s5819_s3 + $0xa8] sm:$0xff] }
 0xdfd   : > { %v4835_v51 = vadd.f32 %v4834_v50, %v2233_v47  ;;  %v2424_v47 = vld [vmem:[%s2423_s21] sm:$0xff] }
 0xdfe   : > { %v4136_v48 = vmul.f32 -1.442695, %v4833_v45 }
 0xdff   : > { %v4137_v63 = vmul.f32 -1.442695, %v4835_v51 }
 0xe00   : > { %5027 = vpow2.f32 %v4136_v48  ;;  %v4836_v48 = vadd.f32 %v2424_v47, %v5730_v23  ;;  %v4155_v47 = vld [vmem:[%s5819_s3 + $0xd0] sm:$0xff] }
 0xe01   : > { %5029 = vtanh.f32 %v4835_v51 }
 0xe0a   : > { %v5028_v52 = vpop.eup %5027 }
 0xe0b   : > { %v2244_v53 = vadd.f32 1.0, %v5028_v52  ;;  %v5030_v54 = vpop.eup %5029 }
 0xe0d   : > { %5031 = vrcp.f32 %v2244_v53  ;;  %v2425_v53 = vld [vmem:[%s2423_s21 + $0x8] sm:$0xff] }
 0xe0e   : > { %5033 = vpow2.f32 %v4137_v63  ;;  %v4637_v63 = vpack.c.bf16 %v4143_v62, %v4142_v61  ;;  %v2690_v61 = vld [vmem:[%s2688_s6 + $0x8] sm:$0xff] }
 0xe0f   : > { %v4842_v62 = vadd.f32 %v2690_v61, %v5734_v27 }
 0xe17   : > { %v5032_v56 = vpop.eup %5031 }
 0xe18   : > { %v2252_v57 = vmul.f32 %v5032_v56, %v5030_v54  ;;  %v5034_v17 = vpop.eup %5033  ;;  %v2251_v25 = vmul.f32 %v5032_v56, %v1992_v29  ;;  %v4838_v54 = vadd.f32 %v2425_v53, %v5734_v27 }
 0xe19   : > { %v2245_v20 = vadd.f32 1.0, %v5034_v17 }
 0xe1a   : > { %2254 = vrot.lane.b32.xlu1 %v2252_v57, %s5188_s13 }
 0xe1b   : > { %5035 = vrcp.f32 %v2245_v20 }
 0xe25   : > { %v5036_v38 = vpop.eup %5035 }
 0xe8c   : > { %v2255_v26 = vpop.permute.xlu1 %2254 }
 0xe8d   : > { %v5988_v28 = vadd.f32 %v2255_v26, %v2251_v25 }
 0xe8f   : > { %5037 = vtanh.f32 %v5988_v28 }
 0xe99   : > { %v5038_v41 = vpop.eup %5037 }
 0xe9a   : > { %v2259_v39 = vmul.f32 %v5038_v41, %v5036_v38 }
 0xe9c   : > { %2261 = vrot.lane.b32.xlu0 %v2259_v39, %s5188_s13 }
 0xea0   : > { %2077 = vrot.lane.b32.xlu0 %v5961_v40, %s5192_s20  ;;  %v4140_v40 = vld [vmem:[%s5819_s3 + $0xa0] sm:$0xff] }
 0xea1   : > { %v4634_v45 = vpack.c.bf16 %v4141_v44, %v4140_v40  ;;  %v4153_v40 = vld [vmem:[%s5819_s3 + $0xc0] sm:$0xff]  ;;  %v4154_v44 = vld [vmem:[%s5819_s3 + $0xc8] sm:$0xff] }
 0xf0e   : > { %v2262_v29 = vpop.permute.xlu0 %2261 }
 0xf0f   : > { %4138 = vmatmul.mubr.msk.f32.vlgmr.msra.gmra.mrb[10].mxu0 %vm737_vm2, %v2262_v29 }
 0xf10   : > { %4642 = vmatpush1.bf16.msra.mxu0 %v5770_v22  ;;  %2494 = vmatprep.mubr.f32.mxu0 %v5189_v32 }
 0xf11   : > { %4644 = vmatprep.subr.bf16.mxu0 %v5774_v24 }
 0xf12   : > { %v2078_v43 = vpop.permute.xlu0 %2077 }
 0xf13   : > { %4372 = vmatmul.mubr.msk.f32.vlgmr.msra.gmra.mrb[0].mxu1 %vm737_vm2, %v2078_v43 }
 0xf14   : > { %4646 = vmatpush1.bf16.msra.mxu0 %v5781_v36  ;;  %4382 = vmatprep.mubr.msk.f32.mxu1 %vm5191_vm4, %v5189_v32 }
 0xf15   : > { %4648 = vmatprep.subr.bf16.mxu0 %v5787_v33  ;;  %4635 = vmatpush3.bf16.msra.mxu1 %v4634_v45  ;;  %v4664_v45 = vpack.c.bf16 %v4154_v44, %v4153_v40 }
 0xf16   : > { %4636 = vmatprep.subr.bf16.mxu1 %v5190_v60 }
 0xf18   : > { %4650 = vmatpush1.bf16.msra.mxu0 %v6233_v34 }
 0xf19   : > { %4652 = vmatprep.subr.bf16.mxu0 %v5797_v35  ;;  %4638 = vmatpush3.bf16.msra.mxu1 %v4637_v63 }
 0xf1a   : > { %4656 = vmatprep.subr.bf16.mxu1 %v5383_v42 }
 0xf1c   : > { %4654 = vmatpush1.bf16.msra.mxu0 %v5802_v37 }
 0xf1d   : > { %4686 = vmatprep.subr.bf16.mxu0 %v5383_v42 }
 0xf1f   : > { %4148 = vmatmul.mubr.msk.f32.vlgmr.msra.gmra.mrb[10].mxu0 %vm837_vm3, %v2262_v29 }
 0xf20   : > { %4688 = vmatpush1.bf16.msra.mxu0 %v5394_v46  ;;  %2859 = vmatprep.mubr.f32.mxu0 %v5189_v32 }
 0xf21   : > { %4690 = vmatprep.subr.bf16.mxu0 %v5432_v55 }
 0xf24   : > { %4692 = vmatpush1.bf16.msra.mxu0 %v5441_v58 }
 0xf25   : > { %4700 = vmatprep.subr.bf16.mxu0 %v5766_v21 }
 0xff2   : > { %v2496_v49 = vpop.f32.mrb[10].mxu0 }
 0xff3   : > { %v4837_v50 = vadd.f32 %v4836_v48, %v2496_v49  ;;  %v2498_v51 = vpop.f32.mrb[11].mxu0  ;;  %v4156_v48 = vld [vmem:[%s5819_s3 + $0xd8] sm:$0xff] }
 0xff4   : > { %v4839_v56 = vadd.f32 %v4838_v54, %v2498_v51 }
 0xff5   : > { %v4149_v52 = vmul.f32 -1.442695, %v4837_v50  ;;  %v4667_v50 = vpack.c.bf16 %v4156_v48, %v4155_v47 }
 0xff6   : > { %v4150_v26 = vmul.f32 -1.442695, %v4839_v56 }
 0xff7   : > { %5039 = vpow2.f32 %v4149_v52  ;;  %v2689_v52 = vld [vmem:[%s2688_s6] sm:$0xff] }
 0xff8   : > { %5041 = vtanh.f32 %v4839_v56  ;;  %v4840_v53 = vadd.f32 %v2689_v52, %v5730_v23  ;;  %v2955_v52 = vld [vmem:[%s2953_s28 + $0x8] sm:$0xff] }
0x1001   : > { %v5040_v57 = vpop.eup %5039 }
0x1002   : > { %v2509_v59 = vadd.f32 1.0, %v5040_v57  ;;  %v5042_v17 = vpop.eup %5041 }
0x1004   : > { %5043 = vrcp.f32 %v2509_v59 }
0x1005   : > { %5045 = vpow2.f32 %v4150_v26 }
0x100e   : > { %v5044_v20 = vpop.eup %5043 }
0x100f   : > { %v2517_v25 = vmul.f32 %v5044_v20, %v5042_v17  ;;  %v5046_v30 = vpop.eup %5045  ;;  %v2516_v19 = vmul.f32 %v5044_v20, %v5988_v28 }
0x1010   : > { %v2510_v18 = vadd.f32 1.0, %v5046_v30 }
0x1011   : > { %2519 = vrot.lane.b32.xlu1 %v2517_v25, %s5188_s13 }
0x1012   : > { %5047 = vrcp.f32 %v2510_v18 }
0x1015   : > { %2342 = vrot.lane.b32.xlu1 %v2259_v39, %s5192_s20 }
0x101c   : > { %v5048_v28 = vpop.eup %5047 }
0x1083   : > { %v2520_v38 = vpop.permute.xlu1 %2519 }
0x1084   : > { %v6028_v41 = vadd.f32 %v2520_v38, %v2516_v19 }
0x1086   : > { %5049 = vtanh.f32 %v6028_v41 }
0x1087   : > { %v2343_v29 = vpop.permute.xlu1 %2342 }
0x1088   : > { %4383 = vmatmul.mubr.msk.f32.vlgmr.msra.gmra.mrb[0].mxu1 %vm737_vm2, %v2343_v29 }
0x1089   : > { %4658 = vmatpush1.bf16.msra.mxu1 %v5394_v46  ;;  %2594 = vmatprep.mubr.f32.mxu1 %v5189_v32 }
0x108a   : > { %4660 = vmatprep.subr.bf16.mxu1 %v5432_v55 }
0x108d   : > { %4662 = vmatpush1.bf16.msra.mxu1 %v5441_v58 }
0x108e   : > { %4663 = vmatprep.subr.bf16.mxu1 %v5190_v60 }
0x1090   : > { %v5050_v39 = vpop.eup %5049 }
0x1091   : > { %v2524_v43 = vmul.f32 %v5050_v39, %v5048_v28 }
0x1093   : > { %2607 = vrot.lane.b32.xlu1 %v2524_v43, %s5192_s20  ;;  %2526 = vrot.lane.b32.xlu0 %v2524_v43, %s5188_s13 }
0x1105   : > { %v2527_v49 = vpop.permute.xlu0 %2526  ;;  %v2608_v51 = vpop.permute.xlu1 %2607 }
0x1106   : > { %4151 = vmatmul.mubr.msk.f32.vlgmr.msra.gmra.mrb[6].mxu1 %vm737_vm2, %v2527_v49 }
0x1107   : > { %4665 = vmatpush3.bf16.msra.mxu1 %v4664_v45  ;;  %4393 = vmatprep.mubr.msk.f32.mxu1 %vm5191_vm4, %v5189_v32 }
0x1108   : > { %4666 = vmatprep.subr.bf16.mxu1 %v5190_v60 }
0x110b   : > { %4668 = vmatpush3.bf16.msra.mxu1 %v4667_v50 }
0x110c   : > { %4670 = vmatprep.subr.bf16.mxu1 %v5766_v21 }
0x110e   : > { %4394 = vmatmul.mubr.msk.f32.vlgmr.msra.gmra.mrb[0].mxu1 %vm737_vm2, %v2608_v51 }
0x110f   : > { %4672 = vmatpush1.bf16.msra.mxu1 %v5770_v22  ;;  %2759 = vmatprep.mubr.f32.mxu1 %v5189_v32 }
0x1110   : > { %4674 = vmatprep.subr.bf16.mxu1 %v5774_v24 }
0x1113   : > { %4676 = vmatpush1.bf16.msra.mxu1 %v5781_v36 }
0x1114   : > { %4678 = vmatprep.subr.bf16.mxu1 %v5787_v33 }
0x1117   : > { %4680 = vmatpush1.bf16.msra.mxu1 %v6233_v34 }
0x1118   : > { %4682 = vmatprep.subr.bf16.mxu1 %v5797_v35 }
0x111b   : > { %4684 = vmatpush1.bf16.msra.mxu1 %v5802_v37 }
0x111c   : > { %4693 = vmatprep.subr.bf16.mxu1 %v5190_v60 }
0x111e   : > { %4161 = vmatmul.mubr.msk.f32.vlgmr.msra.gmra.mrb[6].mxu1 %vm837_vm3, %v2527_v49 }
0x111f   : > { %4404 = vmatprep.mubr.msk.f32.mxu1 %vm5191_vm4, %v5189_v32 }
0x11f1   : > { %v2761_v54 = vpop.f32.mrb[6].mxu1 }
0x11f2   : > { %v4841_v56 = vadd.f32 %v4840_v53, %v2761_v54  ;;  %v2763_v57 = vpop.f32.mrb[7].mxu1  ;;  %v4846_v53 = vadd.f32 %v2955_v52, %v5734_v27 }
0x11f3   : > { %v4843_v63 = vadd.f32 %v4842_v62, %v2763_v57 }
0x11f4   : > { %v4162_v59 = vmul.f32 -1.442695, %v4841_v56 }
0x11f5   : > { %v4163_v18 = vmul.f32 -1.442695, %v4843_v63 }
0x11f6   : > { %5051 = vpow2.f32 %v4162_v59 }
0x11f7   : > { %5053 = vtanh.f32 %v4843_v63  ;;  %v4166_v63 = vld [vmem:[%s5819_s3 + $0xe0] sm:$0xff] }
0x1200   : > { %v5052_v17 = vpop.eup %5051 }
0x1201   : > { %v2774_v20 = vadd.f32 1.0, %v5052_v17  ;;  %v5054_v25 = vpop.eup %5053  ;;  %v4167_v17 = vld [vmem:[%s5819_s3 + $0xe8] sm:$0xff] }
0x1203   : > { %5055 = vrcp.f32 %v2774_v20  ;;  %v4694_v20 = vpack.c.bf16 %v4167_v17, %v4166_v63  ;;  %v4181_v17 = vld [vmem:[%s5819_s3 + $0x110] sm:$0xff] }
0x1204   : > { %5057 = vpow2.f32 %v4163_v18 }
0x1205   : > { %4695 = vmatpush3.bf16.msra.mxu1 %v4694_v20  ;;  %v4182_v20 = vld [vmem:[%s5819_s3 + $0x118] sm:$0xff] }
0x1206   : > { %4696 = vmatprep.subr.bf16.mxu1 %v5190_v60 }
0x120d   : > { %v5056_v26 = vpop.eup %5055 }
0x120e   : > { %v2782_v30 = vmul.f32 %v5056_v26, %v5054_v25  ;;  %v5058_v19 = vpop.eup %5057  ;;  %v2781_v29 = vmul.f32 %v5056_v26, %v6028_v41  ;;  %v2954_v41 = vld [vmem:[%s2953_s28] sm:$0xff] }
0x120f   : > { %v2775_v38 = vadd.f32 1.0, %v5058_v19  ;;  %v4844_v47 = vadd.f32 %v2954_v41, %v5730_v23 }
0x1210   : > { %2784 = vrot.lane.b32.xlu0 %v2782_v30, %s5188_s13 }
0x1211   : > { %5059 = vrcp.f32 %v2775_v38 }
0x121b   : > { %v5060_v43 = vpop.eup %5059 }
0x1282   : > { %v2785_v28 = vpop.permute.xlu0 %2784 }
0x1283   : > { %v2787_v39 = vadd.f32 %v2785_v28, %v2781_v29  ;;  %v4168_v29 = vld [vmem:[%s5819_s3 + $0xf0] sm:$0xff]  ;;  %v4169_v28 = vld [vmem:[%s5819_s3 + $0xf8] sm:$0xff] }
0x1285   : > { %5061 = vtanh.f32 %v2787_v39 }
0x128f   : > { %v5062_v40 = vpop.eup %5061 }
0x1290   : > { %v6066_v44 = vmul.f32 %v5062_v40, %v5060_v43  ;;  %v4697_v43 = vpack.c.bf16 %v4169_v28, %v4168_v29 }
0x1292   : > { %2791 = vrot.lane.b32.xlu1 %v6066_v44, %s5188_s13  ;;  %4698 = vmatpush3.bf16.msra.mxu1 %v4697_v43 }
0x1293   : > { %4723 = vmatprep.subr.bf16.mxu1 %v5190_v60 }
0x1304   : > { %v2792_v45 = vpop.permute.xlu1 %2791 }
0x1305   : > { %4164 = vmatmul.mubr.msk.f32.vlgmr.msra.gmra.mrb[12].mxu0 %vm737_vm2, %v2792_v45 }
0x1306   : > { %4702 = vmatpush1.bf16.msra.mxu0 %v5770_v22  ;;  %3024 = vmatprep.mubr.f32.mxu0 %v5189_v32 }
0x1307   : > { %4704 = vmatprep.subr.bf16.mxu0 %v5774_v24 }
0x130a   : > { %4706 = vmatpush1.bf16.msra.mxu0 %v5781_v36 }
0x130b   : > { %4708 = vmatprep.subr.bf16.mxu0 %v5787_v33 }
0x130e   : > { %4710 = vmatpush1.bf16.msra.mxu0 %v6233_v34 }
0x130f   : > { %4712 = vmatprep.subr.bf16.mxu0 %v5797_v35 }
0x1312   : > { %4714 = vmatpush1.bf16.msra.mxu0 %v5802_v37 }
0x1313   : > { %4716 = vmatprep.subr.bf16.mxu0 %v5383_v42 }
0x1315   : > { %4174 = vmatmul.mubr.msk.f32.vlgmr.msra.gmra.mrb[12].mxu0 %vm837_vm3, %v2792_v45 }
0x1316   : > { %4718 = vmatpush1.bf16.msra.mxu0 %v5394_v46  ;;  %3124 = vmatprep.mubr.f32.mxu0 %v5189_v32 }
0x1317   : > { %4720 = vmatprep.subr.bf16.mxu0 %v5432_v55 }
0x131a   : > { %4722 = vmatpush1.bf16.msra.mxu0 %v5441_v58 }
0x131b   : > { %4730 = vmatprep.subr.bf16.mxu0 %v5766_v21 }
0x13e8   : > { %v3026_v48 = vpop.f32.mrb[12].mxu0 }
0x13e9   : > { %v4845_v49 = vadd.f32 %v4844_v47, %v3026_v48  ;;  %v3028_v50 = vpop.f32.mrb[13].mxu0  ;;  %v4180_v48 = vld [vmem:[%s5819_s3 + $0x108] sm:$0xff] }
0x13ea   : > { %v4847_v54 = vadd.f32 %v4846_v53, %v3028_v50  ;;  %v3219_v50 = vld [vmem:[%s3218_s10] sm:$0xff] }
0x13eb   : > { %v4175_v51 = vmul.f32 -1.442695, %v4845_v49 }
0x13ec   : > { %v4176_v25 = vmul.f32 -1.442695, %v4847_v54 }
0x13ed   : > { %5063 = vpow2.f32 %v4175_v51  ;;  %v4848_v51 = vadd.f32 %v3219_v50, %v5730_v23  ;;  %v4194_v50 = vld [vmem:[%s5819_s3 + $0x130] sm:$0xff] }
0x13ee   : > { %5065 = vtanh.f32 %v4847_v54 }
0x13f7   : > { %v5064_v56 = vpop.eup %5063 }
0x13f8   : > { %v3039_v57 = vadd.f32 1.0, %v5064_v56  ;;  %v5066_v59 = vpop.eup %5065 }
0x13fa   : > { %5067 = vrcp.f32 %v3039_v57  ;;  %v3220_v57 = vld [vmem:[%s3218_s10 + $0x8] sm:$0xff] }
0x13fb   : > { %5069 = vpow2.f32 %v4176_v25  ;;  %v4727_v25 = vpack.c.bf16 %v4182_v20, %v4181_v17  ;;  %v3485_v17 = vld [vmem:[%s3483_s0 + $0x8] sm:$0xff] }
0x13fc   : > { %v4854_v20 = vadd.f32 %v3485_v17, %v5734_v27 }
0x1404   : > { %v5068_v61 = vpop.eup %5067 }
0x1405   : > { %v3047_v62 = vmul.f32 %v5068_v61, %v5066_v59  ;;  %v5070_v26 = vpop.eup %5069  ;;  %v3046_v18 = vmul.f32 %v5068_v61, %v2787_v39  ;;  %v4850_v59 = vadd.f32 %v3220_v57, %v5734_v27 }
0x1406   : > { %v3040_v30 = vadd.f32 1.0, %v5070_v26 }
0x1407   : > { %3049 = vrot.lane.b32.xlu0 %v3047_v62, %s5188_s13 }
0x1408   : > { %5071 = vrcp.f32 %v3040_v30 }
0x1412   : > { %v5072_v40 = vpop.eup %5071 }
0x1479   : > { %v3050_v19 = vpop.permute.xlu0 %3049 }
0x147a   : > { %v6093_v38 = vadd.f32 %v3050_v19, %v3046_v18 }
0x147c   : > { %5073 = vtanh.f32 %v6093_v38 }
0x1486   : > { %v5074_v45 = vpop.eup %5073 }
0x1487   : > { %v3054_v41 = vmul.f32 %v5074_v45, %v5072_v40 }
0x1489   : > { %3056 = vrot.lane.b32.xlu1 %v3054_v41, %s5188_s13 }
0x148d   : > { %2872 = vrot.lane.b32.xlu1 %v6066_v44, %s5192_s20  ;;  %v4179_v44 = vld [vmem:[%s5819_s3 + $0x100] sm:$0xff] }
0x148e   : > { %v4724_v49 = vpack.c.bf16 %v4180_v48, %v4179_v44  ;;  %v4192_v44 = vld [vmem:[%s5819_s3 + $0x120] sm:$0xff]  ;;  %v4193_v48 = vld [vmem:[%s5819_s3 + $0x128] sm:$0xff] }
0x14fb   : > { %v3057_v39 = vpop.permute.xlu1 %3056 }
0x14fc   : > { %4177 = vmatmul.mubr.msk.f32.vlgmr.msra.gmra.mrb[14].mxu0 %vm737_vm2, %v3057_v39 }
0x14fd   : > { %4732 = vmatpush1.bf16.msra.mxu0 %v5770_v22  ;;  %3289 = vmatprep.mubr.f32.mxu0 %v5189_v32 }
0x14fe   : > { %4734 = vmatprep.subr.bf16.mxu0 %v5774_v24 }
0x14ff   : > { %v2873_v47 = vpop.permute.xlu1 %2872 }
0x1500   : > { %4405 = vmatmul.mubr.msk.f32.vlgmr.msra.gmra.mrb[0].mxu1 %vm737_vm2, %v2873_v47 }
0x1501   : > { %4736 = vmatpush1.bf16.msra.mxu0 %v5781_v36  ;;  %4415 = vmatprep.mubr.msk.f32.mxu1 %vm5191_vm4, %v5189_v32 }
0x1502   : > { %4738 = vmatprep.subr.bf16.mxu0 %v5787_v33  ;;  %4725 = vmatpush3.bf16.msra.mxu1 %v4724_v49  ;;  %v4754_v49 = vpack.c.bf16 %v4193_v48, %v4192_v44 }
0x1503   : > { %4726 = vmatprep.subr.bf16.mxu1 %v5190_v60 }
0x1505   : > { %4740 = vmatpush1.bf16.msra.mxu0 %v6233_v34 }
0x1506   : > { %4742 = vmatprep.subr.bf16.mxu0 %v5797_v35  ;;  %4728 = vmatpush3.bf16.msra.mxu1 %v4727_v25 }
0x1507   : > { %4746 = vmatprep.subr.bf16.mxu1 %v5383_v42 }
0x1509   : > { %4744 = vmatpush1.bf16.msra.mxu0 %v5802_v37 }
0x150a   : > { %4776 = vmatprep.subr.bf16.mxu0 %v5383_v42  ;;  %v3847_v42 = vld [vmem:[#allocation3 + $0x598] sm:$0xff] (%p813_p8) }
0x150c   : > { %4187 = vmatmul.mubr.msk.f32.vlgmr.msra.gmra.mrb[14].mxu0 %vm837_vm3, %v3057_v39 }
0x150d   : > { %4778 = vmatpush1.bf16.msra.mxu0 %v5394_v46  ;;  %3654 = vmatprep.mubr.f32.mxu0 %v5189_v32 }
0x150e   : > { %4780 = vmatprep.subr.bf16.mxu0 %v5432_v55 }
0x1511   : > { %4782 = vmatpush1.bf16.msra.mxu0 %v5441_v58 }
0x1512   :  { %4790 = vmatprep.subr.bf16.mxu0 (%p813_p8), %v5766_v21 }
0x15df   : > { %v3291_v52 = vpop.f32.mrb[14].mxu0 }
0x15e0   : > { %v4849_v53 = vadd.f32 %v4848_v51, %v3291_v52  ;;  %v3293_v54 = vpop.f32.mrb[15].mxu0  ;;  %v4195_v51 = vld [vmem:[%s5819_s3 + $0x138] sm:$0xff] }
0x15e1   : > { %v4851_v61 = vadd.f32 %v4850_v59, %v3293_v54 }
0x15e2   : > { %v4188_v56 = vmul.f32 -1.442695, %v4849_v53  ;;  %v4757_v53 = vpack.c.bf16 %v4195_v51, %v4194_v50 }
0x15e3   : > { %v4189_v19 = vmul.f32 -1.442695, %v4851_v61 }
0x15e4   : > { %5075 = vpow2.f32 %v4188_v56  ;;  %v3484_v56 = vld [vmem:[%s3483_s0] sm:$0xff] }
0x15e5   : > { %5077 = vtanh.f32 %v4851_v61  ;;  %v4852_v57 = vadd.f32 %v3484_v56, %v5730_v23 }
0x15ee   : > { %v5076_v62 = vpop.eup %5075 }
0x15ef   : > { %v3304_v63 = vadd.f32 1.0, %v5076_v62  ;;  %v5078_v26 = vpop.eup %5077 }
0x15f1   : > { %5079 = vrcp.f32 %v3304_v63 }
0x15f2   : > { %5081 = vpow2.f32 %v4189_v19 }
0x15fb   : > { %v5080_v30 = vpop.eup %5079 }
0x15fc   : > { %v3312_v18 = vmul.f32 %v5080_v30, %v5078_v26  ;;  %v5082_v29 = vpop.eup %5081  ;;  %v3311_v43 = vmul.f32 %v5080_v30, %v6093_v38 }
0x15fd   : > { %v3305_v28 = vadd.f32 1.0, %v5082_v29  ;;  %v4205_v29 = vld [vmem:[%s5819_s3 + $0x140] sm:$0xff] }
0x15fe   : > { %3314 = vrot.lane.b32.xlu0 %v3312_v18, %s5188_s13 }
0x15ff   : > { %5083 = vrcp.f32 %v3305_v28  ;;  %v4206_v28 = vld [vmem:[%s5819_s3 + $0x148] sm:$0xff] }
0x1602   : > { %3137 = vrot.lane.b32.xlu0 %v3054_v41, %s5192_s20 }
0x1609   : > { %v5084_v38 = vpop.eup %5083 }
0x1670   : > { %v3315_v40 = vpop.permute.xlu0 %3314 }
0x1671   : > { %v6132_v45 = vadd.f32 %v3315_v40, %v3311_v43  ;;  %v4207_v43 = vld [vmem:[%s5819_s3 + $0x150] sm:$0xff]  ;;  %v4784_v40 = vpack.c.bf16 %v4206_v28, %v4205_v29 }
0x1673   : > { %5085 = vtanh.f32 %v6132_v45 }
0x1674   : > { %v3138_v39 = vpop.permute.xlu0 %3137 }
0x1675   : > { %4416 = vmatmul.mubr.msk.f32.vlgmr.msra.gmra.mrb[0].mxu1 %vm737_vm2, %v3138_v39  ;;  %v4208_v39 = vld [vmem:[%s5819_s3 + $0x158] sm:$0xff] }
0x1676   : > { %4748 = vmatpush1.bf16.msra.mxu1 %v5394_v46  ;;  %3389 = vmatprep.mubr.f32.mxu1 %v5189_v32  ;;  %v4809_v46 = vpack.c.bf16 (%p813_p8), %v3847_v42, %v3846_v14 }
0x1677   : > { %4750 = vmatprep.subr.bf16.mxu1 %v5432_v55 }
0x167a   : > { %4752 = vmatpush1.bf16.msra.mxu1 %v5441_v58 }
0x167b   : > { %4753 = vmatprep.subr.bf16.mxu1 %v5190_v60 }
0x167d   : > { %v5086_v41 = vpop.eup %5085 }
0x167e   : > { %v3319_v47 = vmul.f32 %v5086_v41, %v5084_v38  ;;  %v4787_v38 = vpack.c.bf16 %v4208_v39, %v4207_v43 }
0x1680   : > { %3402 = vrot.lane.b32.xlu0 %v3319_v47, %s5192_s20  ;;  %3321 = vrot.lane.b32.xlu1 %v3319_v47, %s5188_s13 }
0x16f2   : > { %v3322_v52 = vpop.permute.xlu1 %3321  ;;  %v3403_v54 = vpop.permute.xlu0 %3402 }
0x16f3   : > { %4190 = vmatmul.mubr.msk.f32.vlgmr.msra.gmra.mrb[8].mxu1 %vm737_vm2, %v3322_v52 }
0x16f4   : > { %4755 = vmatpush3.bf16.msra.mxu1 %v4754_v49  ;;  %4426 = vmatprep.mubr.msk.f32.mxu1 %vm5191_vm4, %v5189_v32 }
0x16f5   : > { %4756 = vmatprep.subr.bf16.mxu1 %v5190_v60 }
0x16f8   : > { %4758 = vmatpush3.bf16.msra.mxu1 %v4757_v53 }
0x16f9   : > { %4760 = vmatprep.subr.bf16.mxu1 %v5766_v21 }
0x16fb   : > { %4427 = vmatmul.mubr.msk.f32.vlgmr.msra.gmra.mrb[0].mxu1 %vm737_vm2, %v3403_v54 }
0x16fc   : > { %4762 = vmatpush1.bf16.msra.mxu1 %v5770_v22  ;;  %3554 = vmatprep.mubr.f32.mxu1 %v5189_v32 }
0x16fd   : > { %4764 = vmatprep.subr.bf16.mxu1 %v5774_v24 }
0x1700   : > { %4766 = vmatpush1.bf16.msra.mxu1 %v5781_v36 }
0x1701   : > { %4768 = vmatprep.subr.bf16.mxu1 %v5787_v33 }
0x1704   : > { %4770 = vmatpush1.bf16.msra.mxu1 %v6233_v34 }
0x1705   : > { %4772 = vmatprep.subr.bf16.mxu1 %v5797_v35 }
0x1708   : > { %4774 = vmatpush1.bf16.msra.mxu1 %v5802_v37 }
0x1709   : > { %4783 = vmatprep.subr.bf16.mxu1 %v5190_v60 }
0x170b   : > { %4200 = vmatmul.mubr.msk.f32.vlgmr.msra.gmra.mrb[8].mxu1 %vm837_vm3, %v3322_v52 }
0x170c   : > { %4437 = vmatprep.mubr.msk.f32.mxu1 %vm5191_vm4, %v5189_v32  ;;  %4785 = vmatpush3.bf16.msra.mxu1 %v4784_v40 }
0x170d   : > { %4786 = vmatprep.subr.bf16.mxu1 %v5190_v60 }
0x1710   : > { %4788 = vmatpush3.bf16.msra.mxu1 %v4787_v38 }
0x1711   :  { %4805 = vmatprep.subr.bf16.mxu1 (%p813_p8), %v5193_v15 }
0x17de   : > { %v3556_v59 = vpop.f32.mrb[8].mxu1 }
0x17df   : > { %v4853_v61 = vadd.f32 %v4852_v57, %v3556_v59  ;;  %v3558_v62 = vpop.f32.mrb[9].mxu1 }
0x17e0   : > { %v4855_v32 = vadd.f32 %v4854_v20, %v3558_v62 }
0x17e1   : > { %v4201_v63 = vmul.f32 -1.442695, %v4853_v61 }
0x17e2   : > { %v4202_v41 = vmul.f32 -1.442695, %v4855_v32 }
0x17e3   : > { %5087 = vpow2.f32 %v4201_v63 }
0x17e4   : > { %5089 = vtanh.f32 %v4855_v32 }
0x17ed   : > { %v5088_v25 = vpop.eup %5087 }
0x17ee   : > { %v3569_v26 = vadd.f32 1.0, %v5088_v25  ;;  %v5090_v30 = vpop.eup %5089 }
0x17f0   : > { %5091 = vrcp.f32 %v3569_v26 }
0x17f1   : > { %5093 = vpow2.f32 %v4202_v41 }
0x17fa   : > { %v5092_v18 = vpop.eup %5091 }
0x17fb   : > { %v3577_v19 = vmul.f32 %v5092_v18, %v5090_v30  ;;  %v5094_v47 = vpop.eup %5093  ;;  %v3576_v48 = vmul.f32 %v5092_v18, %v6132_v45 }
0x17fc   : > { %v3570_v44 = vadd.f32 1.0, %v5094_v47 }
0x17fd   : > { %3579 = vrot.lane.b32.xlu1 %v3577_v19, %s5188_s13 }
0x17fe   : > { %5095 = vrcp.f32 %v3570_v44 }
0x1808   : > { %v5096_v51 = vpop.eup %5095 }
0x186f   : > { %v3580_v49 = vpop.permute.xlu1 %3579 }
0x1870   : > { %v6175_v19 = vadd.f32 %v3580_v49, %v3576_v48  }
0x1872   : > { %v6234_v50 = vmov %v6175_v19 }
0x1873   : > { %5097 = vtanh.f32 %v6234_v50  ;;  %v6239_v19 = vmov %v6234_v50 }
0x187d   : > { %v5098_v52 = vpop.eup %5097 }
0x187e   : > { %v3584_v53 = vmul.f32 %v5098_v52, %v5096_v51  }
0x1880   : > { %3667 = vrot.lane.b32.xlu1 %v3584_v53, %s5192_s20  ;;  %3586 = vrot.lane.b32.xlu0 %v3584_v53, %s5188_s13  ;;  %v6240_v28 = vmov %v3584_v53 }
0x1884   :  { %3743 = vrot.lane.b32.xlu0 (%p813_p8), %v3584_v53, %s5187_s2 }
0x18f2   : > { %v3668_v60 = vpop.permute.xlu1 %3667  ;;  %v3587_v54 = vpop.permute.xlu0 %3586 }
0x18f3   : > { %4203 = vmatmul.mubr.msk.f32.vlgmr.msra.gmra.mrb[16].mxu0 %vm737_vm2, %v3587_v54  ;;  %4438 = vmatmul.mubr.msk.f32.vlgmr.msra.gmra.mrb[0].mxu1 %vm737_vm2, %v3668_v60 }
0x18f4   :  { %4792 = vmatpush1.bf16.msra.mxu0 (%p813_p8), %v5770_v22  ;;  %3812 = vmatprep.mubr.f32.mxu0 (%p813_p8), %v5186_v0 }
0x18f5   :  { %4794 = vmatprep.subr.bf16.mxu0 (%p813_p8), %v5774_v24  ;;  %4448 = vmatprep.mubr.msk.f32.mxu1 (%p813_p8), %vm5194_vm5, %v5186_v0 }
0x18f6   :  { %v3744_v1 = vpop.permute.xlu0 (%p813_p8), %3743  ;;  %4807 = vmatpush3.bf16.msra.mxu1 (%p813_p8), %v4806_v16 }
0x18f7   :  { %4808 = vmatprep.subr.bf16.mxu1 (%p813_p8), %v5193_v15 }
0x18f8   :  { %4796 = vmatpush1.bf16.msra.mxu0 (%p813_p8), %v5781_v36 }
0x18f9   :  { %4798 = vmatprep.subr.bf16.mxu0 (%p813_p8), %v5787_v33 }
0x18fa   :  { %4810 = vmatpush3.bf16.msra.mxu1 (%p813_p8), %v4809_v46 }
0x18fc   :  { %4800 = vmatpush1.bf16.msra.mxu0 (%p813_p8), %v6233_v34  ;;  %v4214_v34 = vld [vmem:[%s6231_s7] ss:$0 sm:$0xff] (%p813_p8) }
0x18fd   :  { %4802 = vmatprep.subr.bf16.mxu0 (%p813_p8), %v5797_v35 }
0x1900   :  { %4804 = vmatpush1.bf16.msra.mxu0 (%p813_p8), %v5802_v37 }
0x1903   :  { %4210 = vmatmul.mubr.msk.f32.vlgmr.msra.gmra.mrb[0].mxu0 (%p813_p8), %vm837_vm3, %v3744_v1 }
0x19c4   :  { %815 = sbr.rel (!%p813_p8) target bundleno = 729 (0x2d9), region = 86 }
0x19c6   : > { %v3656_v45 = vpop.f32.mrb[16].mxu0  ;;  %v3737_v56 = vpop.f32.mrb[0].mxu1 }
0x19c7   : > { %v3657_v57 = vadd.f32 %v3656_v45, %v5730_v23   ;;  %v6184_v31 = vadd.f32 %v5161_v31, %v3737_v56   ;;  %v3658_v61 = vpop.f32.mrb[17].mxu0  ;;  %v4439_v62 = vpop.f32.mrb[1].mxu1 }
0x19c8   : > { %v3659_v63 = vadd.f32 %v3658_v61, %v5734_v27  }
0x19c9   : > { %v6235_v59 = vmov %v6184_v31  ;;  %v6238_v30 = vmov %v3657_v57 }
0x19ca   : > { %v6236_v31 = vmov %v6235_v59  ;;  %v6237_v26 = vmov %v3659_v63 }
0x19d6   :  { %v3814_v2 = vpop.f32.mrb[0].mxu0 }
0x19d7   :  { %v3819_v3 = vadd.f32 %v3814_v2, %v3657_v57  ;;  %v3816_v4 = vpop.f32.mrb[1].mxu0 }
0x19d8   :  { %v3820_v6 = vadd.f32 %v3816_v4, %v3659_v63 }
0x19d9   :  { %v4211_v5 = vmul.f32 -1.442695, %v3819_v3 }
0x19da   :  { %v4212_v55 = vmul.f32 -1.442695, %v3820_v6 }
0x19db   :  { %5099 = vpow2.f32 %v4211_v5 }
0x19dc   :  { %5101 = vtanh.f32 %v3820_v6 }
0x19e5   :  { %v5100_v7 = vpop.eup %5099 }
0x19e6   :  { %v3827_v8 = vadd.f32 1.0, %v5100_v7  ;;  %v5102_v9 = vpop.eup %5101 }
0x19e8   :  { %5103 = vrcp.f32 %v3827_v8 }
0x19e9   :  { %5105 = vpow2.f32 %v4212_v55 }
0x19f2   :  { %v5104_v10 = vpop.eup %5103 }
0x19f3   :  { %v3835_v11 = vmul.f32 %v5104_v10, %v5102_v9  ;;  %v5106_v58 = vpop.eup %5105  ;;  %v3834_v27 = vmul.f32 %v5104_v10, %v6234_v50 }
0x19f4   :  { %v3828_v23 = vadd.f32 1.0, %v5106_v58 }
0x19f5   :  { %3837 = vrot.lane.b32.xlu0 %v3835_v11, %s5187_s2  ;;  %s5195_s2 = smov 32  }
0x19f6   :  { %5107 = vrcp.f32 %v3828_v23 }
0x1a00   :  { %v5108_v22 = vpop.eup %5107 }
0x1a67   :  { %v3838_v31 = vpop.permute.xlu0 %3837 }
0x1a68   :  { %v3840_v21 = vadd.f32 %v3838_v31, %v3834_v27 }
0x1a6a   :  { %5109 = vtanh.f32 %v3840_v21 }
0x1a74   :  { %v5110_v24 = vpop.eup %5109 }
0x1a75   :  { %v3842_v36 = vmul.f32 %v5110_v24, %v5108_v22 }
0x1a77   :  { %3849 = vrot.lane.b32.xlu1 %v3842_v36, %s5195_s2 }
0x1ae9   :  { %v3850_v0 = vpop.permute.xlu1 %3849 }
0x1aea   :  { %4449 = vmatmul.mubr.msk.f32.vlgmr.msra.gmra.mrb[0].mxu1 %vm737_vm2, %v3850_v0 }
0x1bbd   :  { %v3919_v33 = vpop.f32.mrb[0].mxu1 }
0x1bbe   :  { %v3923_v35 = vadd.f32 %v6235_v59, %v3919_v33  ;;  %v4450_v37 = vpop.f32.mrb[1].mxu1 }
0x1bc0   :  { %v3931_v17 = vadd.f32 %v4214_v34, %v3923_v35 }
0x1bc2   :  { %3932 = vst [vmem:[%s6232_s8] sm:$0xff] %v3931_v17 }
0x1bc3   :  { %3937 = vsyncpa [#allocation4], 1 }

</bundles_post_ra>
